<compile_context>
chip_gen: v7x
topology: tpu7x:2x2x1
jax: 0.10.0
libtpu: 0.0.40
codegen_flags: <defaults>
</compile_context>

<pallas_src>
import jax
import jax.numpy as jnp
from jax import lax
from jax.experimental import pallas as pl
from jax.experimental.pallas import tpu as pltpu

C = 128  # lane width == padded channel dim for intermediate activations


def _conv3x3(read_patch, m, get_w, b_row):
    """3x3 conv + bias + ReLU as 9 accumulating MXU matmuls (no im2col slab).

    read_patch(kh, kw) -> spatial patch for tap (kh, kw); flattened to (m, K).
    get_w(t)           -> (K, C) bf16 weight tile for tap t.
    b_row              -> (1, C) f32 bias.
    Returns the (m, C) f32 activation.
    """
    acc = None
    for t in range(9):
        kh, kw = divmod(t, 3)
        xt = read_patch(kh, kw).reshape(m, -1).astype(jnp.bfloat16)
        part = jnp.dot(xt, get_w(t), preferred_element_type=jnp.float32)
        acc = part if acc is None else acc + part
    return jnp.maximum(acc + b_row, 0.0)          # bias + ReLU in f32


def _backbone_kernel(x_ref, ws0_ref, ws12_ref, b_ref, f1_ref, f2_ref,
                     s0_ref, s1_ref):
    """Fused stages 0..2 of the synthetic backbone for one batch element.

    x_ref   : (1, H+2, W+2, cin_p) bf16  halo-padded input, REAL channels only
    ws0_ref : (9, cin_p, C)        bf16  stage-0 per-tap weights
    ws12_ref: (2, 9, C, C)         bf16  stage-1/2 per-tap weights
    b_ref   : (3, 1, C)            f32   per-stage bias
    f1_ref  : (1, H/2*W/2, C)      f32   stage-1 activation (feature_list[-3])
    f2_ref  : (1, H/4*W/4, C)      f32   stage-2 activation (feature_list[-2])
    s0_ref  : (H+2,  W+16,  C)     f32   scratch: stage-0 act, 8-wide left halo
    s1_ref  : (H/2+2,W/2+16,C)     f32   scratch: stage-1 act, 8-wide left halo
    """
    h_in, w_in = x_ref.shape[1] - 2, x_ref.shape[2] - 2
    h1, w1 = h_in // 2, w_in // 2
    h2, w2 = h1 // 2, w1 // 2

    # Zero only the halo slabs read by the stride-2 taps (top row, left 8 cols
    # incl. col 7).  Thin, unmasked, every step -> megacore-safe and far less
    # vst work than the old full-buffer fill.
    for ref in (s0_ref, s1_ref):
        ref[0:1, :, :] = jnp.zeros((1,) + ref.shape[1:], ref.dtype)
        ref[:, 0:8, :] = jnp.zeros((ref.shape[0], 8, ref.shape[2]), ref.dtype)

    # ---- stage 0: stride-1 conv over the halo-padded, real-channel input ----
    y0 = _conv3x3(lambda kh, kw: x_ref[0, kh:kh + h_in, kw:kw + w_in, :],
                  h_in * w_in, lambda t: ws0_ref[t], b_ref[0])
    s0_ref[1:1 + h_in, 8:8 + w_in, :] = y0.reshape(h_in, w_in, C)

    # ---- stage 1: direct stride-2 conv (strided tap reads from scratch) -----
    # TODO(synk): an even/odd-deinterleaved (bf16) scratch layout would turn
    # these 9 sublane gathers per stage into dense slices at large sizes.
    y1 = _conv3x3(lambda kh, kw: s0_ref[pl.ds(kh, h1, stride=2),
                                        pl.ds(7 + kw, w1, stride=2), :],
                  h1 * w1, lambda t: ws12_ref[0, t], b_ref[1])
    f1_ref[0] = y1                                     # returned feature map #1
    s1_ref[1:1 + h1, 8:8 + w1, :] = y1.reshape(h1, w1, C)

    # ---- stage 2: direct stride-2 conv ---------------------------------------
    y2 = _conv3x3(lambda kh, kw: s1_ref[pl.ds(kh, h2, stride=2),
                                        pl.ds(7 + kw, w2, stride=2), :],
                  h2 * w2, lambda t: ws12_ref[1, t], b_ref[2])
    f2_ref[0] = y2                                     # returned feature map #2


def make_backbone_params(key, in_ch=4, widths=(8, 16, 32, 64)):
    """Deterministic synthetic backbone parameters (HWIO conv weights)."""
    params = []
    cin = in_ch
    for cout in widths:
        key, kw_key, kb_key = jax.random.split(key, 3)
        fan_in = 3 * 3 * cin
        w = (jax.random.normal(kw_key, (3, 3, cin, cout), jnp.float32)
             / jnp.sqrt(float(fan_in)))
        b = 0.01 * jax.random.normal(kb_key, (cout,), jnp.float32)
        params.append((w, b))
        cin = cout
    return params


def _pack_params(params, cin_p):
    """Per-tap weight packing: stage 0 keeps K = padded-real cin; stages 1-2
    use the 128-lane activation width.  Output channels padded to 128 lanes."""
    (w0, b0), (w1, b1), (w2, b2) = params

    def taps(w, k_pad):
        ci, co = w.shape[2], w.shape[3]
        return jnp.pad(w.reshape(9, ci, co),
                       ((0, 0), (0, k_pad - ci), (0, C - co)))

    ws0 = taps(w0, cin_p).astype(jnp.bfloat16)                     # (9,cin_p,C)
    ws12 = jnp.stack([taps(w1, C), taps(w2, C)]).astype(jnp.bfloat16)  # (2,9,C,C)
    b_all = jnp.stack([jnp.pad(b, (0, C - b.shape[0])).reshape(1, C)
                       for b in (b0, b1, b2)]).astype(jnp.float32)     # (3,1,C)
    widths = [b0.shape[0], b1.shape[0], b2.shape[0]]
    return ws0, ws12, b_all, widths


def patchcore_net_forward(x_nchw, params, return_feature=True):
    """Mirrors PatchcoreNet.forward: returns [feature_list[-3], feature_list[-2]].

    x_nchw: (N, C, H, W) like the PyTorch module; outputs are NCHW feature maps.
    `return_feature` is accepted (and ignored) exactly like the reference code.
    Stage 3 never influences the returned features, so it is not computed.
    """
    del return_feature
    n, cin, h, w = x_nchw.shape
    assert h % 4 == 0 and w % 4 == 0

    # NCHW -> NHWC, +1 spatial halo, channels padded only to a multiple of 16
    # (NOT to 128: avoids the 32x HBM input inflation), cast to bf16.
    cin_p = ((cin + 15) // 16) * 16
    x = jnp.transpose(x_nchw, (0, 2, 3, 1))
    x = jnp.pad(x, ((0, 0), (1, 1), (1, 1), (0, cin_p - cin))).astype(jnp.bfloat16)

    # Only stages 0..2 feed the two returned features.
    ws0, ws12, b_all, widths = _pack_params(params[:3], cin_p)

    h1, w1 = h // 2, w // 2
    h2, w2 = h // 4, w // 4

    f1, f2 = pl.pallas_call(
        _backbone_kernel,
        out_shape=(jax.ShapeDtypeStruct((n, h1 * w1, C), jnp.float32),
                   jax.ShapeDtypeStruct((n, h2 * w2, C), jnp.float32)),
        grid_spec=pltpu.PrefetchScalarGridSpec(
            num_scalar_prefetch=0,
            grid=(n,),
            in_specs=[
                pl.BlockSpec((1, h + 2, w + 2, cin_p), lambda i: (i, 0, 0, 0)),
                pl.BlockSpec((9, cin_p, C), lambda i: (0, 0, 0)),
                pl.BlockSpec((2, 9, C, C), lambda i: (0, 0, 0, 0)),
                pl.BlockSpec((3, 1, C), lambda i: (0, 0, 0)),
            ],
            out_specs=[
                pl.BlockSpec((1, h1 * w1, C), lambda i: (i, 0, 0)),
                pl.BlockSpec((1, h2 * w2, C), lambda i: (i, 0, 0)),
            ],
            scratch_shapes=[
                pltpu.VMEM((h + 2, w + 16, C), jnp.float32),
                pltpu.VMEM((h1 + 2, w1 + 16, C), jnp.float32),
            ],
        ),
        compiler_params=pltpu.CompilerParams(
            dimension_semantics=("parallel",),     # batch across TCs on v7x
            vmem_limit_bytes=32 * 1024 * 1024,     # explicit; usage is ~1-2 MiB
        ),
    )(x, ws0, ws12, b_all)

    # Un-flatten, slice off channel padding, back to NCHW like the PyTorch net.
    f1 = f1.reshape(n, h1, w1, C)[..., :widths[1]]
    f2 = f2.reshape(n, h2, w2, C)[..., :widths[2]]
    return [jnp.transpose(f1, (0, 3, 1, 2)), jnp.transpose(f2, (0, 3, 1, 2))]


def _reference_forward(x_nchw, params):
    """Pure-JAX reference with the same bf16 operand quantization as the kernel."""
    h = jnp.transpose(x_nchw, (0, 2, 3, 1)).astype(jnp.float32)
    h = h.astype(jnp.bfloat16).astype(jnp.float32)   # kernel input is bf16
    feats = []
    for idx, (w, b) in enumerate(params):
        stride = 1 if idx == 0 else 2                # pad-1, stride-2 downsample
        wq = w.astype(jnp.bfloat16).astype(jnp.float32)
        h = lax.conv_general_dilated(
            h, wq, window_strides=(stride, stride), padding=((1, 1), (1, 1)),
            dimension_numbers=("NHWC", "HWIO", "NHWC"),
            precision=lax.Precision.HIGHEST)
        h = jnp.maximum(h + b, 0.0)
        feats.append(h)
        h = h.astype(jnp.bfloat16).astype(jnp.float32)  # next matmul input is bf16
    sel = [feats[-3], feats[-2]]
    return [jnp.transpose(f, (0, 3, 1, 2)) for f in sel]


if __name__ == "__main__":
    key = jax.random.PRNGKey(0)
    k_x, k_p = jax.random.split(key)

    x = jax.random.normal(k_x, (2, 4, 16, 16), jnp.float32)      # NCHW input
    params = make_backbone_params(k_p, in_ch=4, widths=(8, 16, 32, 64))

    feats = patchcore_net_forward(x, params, return_feature=True)
    feats = [jax.block_until_ready(f) for f in feats]

    # Expected: stage-1 (N,16,8,8) and stage-2 (N,32,4,4) feature maps.
    assert feats[0].shape == (2, 16, 8, 8), feats[0].shape
    assert feats[1].shape == (2, 32, 4, 4), feats[1].shape
    assert all(bool(jnp.all(jnp.isfinite(f))) for f in feats)

    # Numerical check vs. a pure-JAX reference (bf16 operands, f32 accumulate).
    ref = _reference_forward(x, params)
    for got, want in zip(feats, ref):
        assert got.shape == want.shape
        err = float(jnp.max(jnp.abs(got - want)))
        assert err < 2e-2, err

    print("KERNEL_OK")
</pallas_src>

<mosaic_0001>
module attributes {stable_mosaic.version = 11 : i64} {
  func.func @_backbone_kernel(%arg0: i32, %arg1: memref<1x18x18x16xbf16, #tpu.memory_space<vmem>>, %arg2: memref<9x16x128xbf16, #tpu.memory_space<vmem>>, %arg3: memref<2x9x128x128xbf16, #tpu.memory_space<vmem>>, %arg4: memref<3x1x128xf32, #tpu.memory_space<vmem>>, %arg5: memref<1x64x128xf32, #tpu.memory_space<vmem>>, %arg6: memref<1x16x128xf32, #tpu.memory_space<vmem>>, %arg7: memref<18x32x128xf32, #tpu.memory_space<vmem>>, %arg8: memref<10x24x128xf32, #tpu.memory_space<vmem>>) attributes {dimension_semantics = [#tpu.dimension_semantics<parallel>], iteration_bounds = array<i64: 2>, scalar_prefetch = 0 : i64, scratch_operands = 2 : i64, tpu.core_type = #tpu.core_type<tc>, window_params = [{transform_indices = @transform_0, window_bounds = array<i64: 1, 18, 18, 16>}, {pipeline_mode = #tpu.pipeline_mode<synchronous>, transform_indices = @transform_1, window_bounds = array<i64: 9, 16, 128>}, {pipeline_mode = #tpu.pipeline_mode<synchronous>, transform_indices = @transform_2, window_bounds = array<i64: 2, 9, 128, 128>}, {pipeline_mode = #tpu.pipeline_mode<synchronous>, transform_indices = @transform_3, window_bounds = array<i64: 3, 1, 128>}, {transform_indices = @transform_4, window_bounds = array<i64: 1, 64, 128>}, {transform_indices = @transform_5, window_bounds = array<i64: 1, 16, 128>}]} {
    %cst = arith.constant 0.000000e+00 : f32
    %0 = vector.broadcast %cst : f32 to vector<1x32x128xf32>
    %c0 = arith.constant 0 : index
    %c0_0 = arith.constant 0 : index
    %c0_1 = arith.constant 0 : index
    %1 = vector.load %arg7[%c0, %c0_0, %c0_1] : memref<18x32x128xf32, #tpu.memory_space<vmem>>, vector<1x32x128xf32>
    tpu.vector_store %arg7[%c0, %c0_0, %c0_1], %0 {strides = array<i32>} : memref<18x32x128xf32, #tpu.memory_space<vmem>>, vector<1x32x128xf32>,
    %cst_2 = arith.constant 0.000000e+00 : f32
    %2 = vector.broadcast %cst_2 : f32 to vector<18x8x128xf32>
    %c0_3 = arith.constant 0 : index
    %c0_4 = arith.constant 0 : index
    %c0_5 = arith.constant 0 : index
    %3 = vector.load %arg7[%c0_3, %c0_4, %c0_5] : memref<18x32x128xf32, #tpu.memory_space<vmem>>, vector<18x8x128xf32>
    tpu.vector_store %arg7[%c0_3, %c0_4, %c0_5], %2 {strides = array<i32>} : memref<18x32x128xf32, #tpu.memory_space<vmem>>, vector<18x8x128xf32>,
    %cst_6 = arith.constant 0.000000e+00 : f32
    %4 = vector.broadcast %cst_6 : f32 to vector<1x24x128xf32>
    %c0_7 = arith.constant 0 : index
    %c0_8 = arith.constant 0 : index
    %c0_9 = arith.constant 0 : index
    %5 = vector.load %arg8[%c0_7, %c0_8, %c0_9] : memref<10x24x128xf32, #tpu.memory_space<vmem>>, vector<1x24x128xf32>
    tpu.vector_store %arg8[%c0_7, %c0_8, %c0_9], %4 {strides = array<i32>} : memref<10x24x128xf32, #tpu.memory_space<vmem>>, vector<1x24x128xf32>,
    %cst_10 = arith.constant 0.000000e+00 : f32
    %6 = vector.broadcast %cst_10 : f32 to vector<10x8x128xf32>
    %c0_11 = arith.constant 0 : index
    %c0_12 = arith.constant 0 : index
    %c0_13 = arith.constant 0 : index
    %7 = vector.load %arg8[%c0_11, %c0_12, %c0_13] : memref<10x24x128xf32, #tpu.memory_space<vmem>>, vector<10x8x128xf32>
    tpu.vector_store %arg8[%c0_11, %c0_12, %c0_13], %6 {strides = array<i32>} : memref<10x24x128xf32, #tpu.memory_space<vmem>>, vector<10x8x128xf32>,
    %c0_14 = arith.constant 0 : index
    %c0_15 = arith.constant 0 : index
    %c0_16 = arith.constant 0 : index
    %8 = vector.load %arg4[%c0_14, %c0_15, %c0_16] : memref<3x1x128xf32, #tpu.memory_space<vmem>>, vector<1x1x128xf32>
    %9 = vector.shape_cast %8 : vector<1x1x128xf32> to vector<1x128xf32>
    %c0_17 = arith.constant 0 : index
    %c0_18 = arith.constant 0 : index
    %c0_19 = arith.constant 0 : index
    %c0_20 = arith.constant 0 : index
    %10 = vector.load %arg1[%c0_17, %c0_18, %c0_19, %c0_20] : memref<1x18x18x16xbf16, #tpu.memory_space<vmem>>, vector<1x16x16x16xbf16>
    %11 = vector.shape_cast %10 : vector<1x16x16x16xbf16> to vector<16x16x16xbf16>
    %12 = vector.shape_cast %11 : vector<16x16x16xbf16> to vector<256x16xbf16>
    %c0_21 = arith.constant 0 : index
    %c0_22 = arith.constant 0 : index
    %c0_23 = arith.constant 0 : index
    %13 = vector.load %arg2[%c0_21, %c0_22, %c0_23] : memref<9x16x128xbf16, #tpu.memory_space<vmem>>, vector<1x16x128xbf16>
    %14 = vector.shape_cast %13 : vector<1x16x128xbf16> to vector<16x128xbf16>
    %cst_24 = arith.constant dense<0.000000e+00> : vector<256x128xf32>
    %15 = tpu.matmul %12, %14, %cst_24 {dimension_numbers = #tpu.dot_dimension_numbers<[1], [0], [0], [1], [0, 0, 1, 1], [], []>} : vector<256x16xbf16>, vector<16x128xbf16>, vector<256x128xf32> -> vector<256x128xf32>
    %c0_25 = arith.constant 0 : index
    %c0_26 = arith.constant 0 : index
    %c1 = arith.constant 1 : index
    %c0_27 = arith.constant 0 : index
    %16 = vector.load %arg1[%c0_25, %c0_26, %c1, %c0_27] : memref<1x18x18x16xbf16, #tpu.memory_space<vmem>>, vector<1x16x16x16xbf16>
    %17 = vector.shape_cast %16 : vector<1x16x16x16xbf16> to vector<16x16x16xbf16>
    %18 = vector.shape_cast %17 : vector<16x16x16xbf16> to vector<256x16xbf16>
    %c1_28 = arith.constant 1 : index
    %c0_29 = arith.constant 0 : index
    %c0_30 = arith.constant 0 : index
    %19 = vector.load %arg2[%c1_28, %c0_29, %c0_30] : memref<9x16x128xbf16, #tpu.memory_space<vmem>>, vector<1x16x128xbf16>
    %20 = vector.shape_cast %19 : vector<1x16x128xbf16> to vector<16x128xbf16>
    %cst_31 = arith.constant dense<0.000000e+00> : vector<256x128xf32>
    %21 = tpu.matmul %18, %20, %cst_31 {dimension_numbers = #tpu.dot_dimension_numbers<[1], [0], [0], [1], [0, 0, 1, 1], [], []>} : vector<256x16xbf16>, vector<16x128xbf16>, vector<256x128xf32> -> vector<256x128xf32>
    %22 = arith.addf %15, %21 : vector<256x128xf32>
    %c0_32 = arith.constant 0 : index
    %c0_33 = arith.constant 0 : index
    %c2 = arith.constant 2 : index
    %c0_34 = arith.constant 0 : index
    %23 = vector.load %arg1[%c0_32, %c0_33, %c2, %c0_34] : memref<1x18x18x16xbf16, #tpu.memory_space<vmem>>, vector<1x16x16x16xbf16>
    %24 = vector.shape_cast %23 : vector<1x16x16x16xbf16> to vector<16x16x16xbf16>
    %25 = vector.shape_cast %24 : vector<16x16x16xbf16> to vector<256x16xbf16>
    %c2_35 = arith.constant 2 : index
    %c0_36 = arith.constant 0 : index
    %c0_37 = arith.constant 0 : index
    %26 = vector.load %arg2[%c2_35, %c0_36, %c0_37] : memref<9x16x128xbf16, #tpu.memory_space<vmem>>, vector<1x16x128xbf16>
    %27 = vector.shape_cast %26 : vector<1x16x128xbf16> to vector<16x128xbf16>
    %cst_38 = arith.constant dense<0.000000e+00> : vector<256x128xf32>
    %28 = tpu.matmul %25, %27, %cst_38 {dimension_numbers = #tpu.dot_dimension_numbers<[1], [0], [0], [1], [0, 0, 1, 1], [], []>} : vector<256x16xbf16>, vector<16x128xbf16>, vector<256x128xf32> -> vector<256x128xf32>
    %29 = arith.addf %22, %28 : vector<256x128xf32>
    %c0_39 = arith.constant 0 : index
    %c1_40 = arith.constant 1 : index
    %c0_41 = arith.constant 0 : index
    %c0_42 = arith.constant 0 : index
    %30 = vector.load %arg1[%c0_39, %c1_40, %c0_41, %c0_42] : memref<1x18x18x16xbf16, #tpu.memory_space<vmem>>, vector<1x16x16x16xbf16>
    %31 = vector.shape_cast %30 : vector<1x16x16x16xbf16> to vector<16x16x16xbf16>
    %32 = vector.shape_cast %31 : vector<16x16x16xbf16> to vector<256x16xbf16>
    %c3 = arith.constant 3 : index
    %c0_43 = arith.constant 0 : index
    %c0_44 = arith.constant 0 : index
    %33 = vector.load %arg2[%c3, %c0_43, %c0_44] : memref<9x16x128xbf16, #tpu.memory_space<vmem>>, vector<1x16x128xbf16>
    %34 = vector.shape_cast %33 : vector<1x16x128xbf16> to vector<16x128xbf16>
    %cst_45 = arith.constant dense<0.000000e+00> : vector<256x128xf32>
    %35 = tpu.matmul %32, %34, %cst_45 {dimension_numbers = #tpu.dot_dimension_numbers<[1], [0], [0], [1], [0, 0, 1, 1], [], []>} : vector<256x16xbf16>, vector<16x128xbf16>, vector<256x128xf32> -> vector<256x128xf32>
    %36 = arith.addf %29, %35 : vector<256x128xf32>
    %c0_46 = arith.constant 0 : index
    %c1_47 = arith.constant 1 : index
    %c1_48 = arith.constant 1 : index
    %c0_49 = arith.constant 0 : index
    %37 = vector.load %arg1[%c0_46, %c1_47, %c1_48, %c0_49] : memref<1x18x18x16xbf16, #tpu.memory_space<vmem>>, vector<1x16x16x16xbf16>
    %38 = vector.shape_cast %37 : vector<1x16x16x16xbf16> to vector<16x16x16xbf16>
    %39 = vector.shape_cast %38 : vector<16x16x16xbf16> to vector<256x16xbf16>
    %c4 = arith.constant 4 : index
    %c0_50 = arith.constant 0 : index
    %c0_51 = arith.constant 0 : index
    %40 = vector.load %arg2[%c4, %c0_50, %c0_51] : memref<9x16x128xbf16, #tpu.memory_space<vmem>>, vector<1x16x128xbf16>
    %41 = vector.shape_cast %40 : vector<1x16x128xbf16> to vector<16x128xbf16>
    %cst_52 = arith.constant dense<0.000000e+00> : vector<256x128xf32>
    %42 = tpu.matmul %39, %41, %cst_52 {dimension_numbers = #tpu.dot_dimension_numbers<[1], [0], [0], [1], [0, 0, 1, 1], [], []>} : vector<256x16xbf16>, vector<16x128xbf16>, vector<256x128xf32> -> vector<256x128xf32>
    %43 = arith.addf %36, %42 : vector<256x128xf32>
    %c0_53 = arith.constant 0 : index
    %c1_54 = arith.constant 1 : index
    %c2_55 = arith.constant 2 : index
    %c0_56 = arith.constant 0 : index
    %44 = vector.load %arg1[%c0_53, %c1_54, %c2_55, %c0_56] : memref<1x18x18x16xbf16, #tpu.memory_space<vmem>>, vector<1x16x16x16xbf16>
    %45 = vector.shape_cast %44 : vector<1x16x16x16xbf16> to vector<16x16x16xbf16>
    %46 = vector.shape_cast %45 : vector<16x16x16xbf16> to vector<256x16xbf16>
    %c5 = arith.constant 5 : index
    %c0_57 = arith.constant 0 : index
    %c0_58 = arith.constant 0 : index
    %47 = vector.load %arg2[%c5, %c0_57, %c0_58] : memref<9x16x128xbf16, #tpu.memory_space<vmem>>, vector<1x16x128xbf16>
    %48 = vector.shape_cast %47 : vector<1x16x128xbf16> to vector<16x128xbf16>
    %cst_59 = arith.constant dense<0.000000e+00> : vector<256x128xf32>
    %49 = tpu.matmul %46, %48, %cst_59 {dimension_numbers = #tpu.dot_dimension_numbers<[1], [0], [0], [1], [0, 0, 1, 1], [], []>} : vector<256x16xbf16>, vector<16x128xbf16>, vector<256x128xf32> -> vector<256x128xf32>
    %50 = arith.addf %43, %49 : vector<256x128xf32>
    %c0_60 = arith.constant 0 : index
    %c2_61 = arith.constant 2 : index
    %c0_62 = arith.constant 0 : index
    %c0_63 = arith.constant 0 : index
    %51 = vector.load %arg1[%c0_60, %c2_61, %c0_62, %c0_63] : memref<1x18x18x16xbf16, #tpu.memory_space<vmem>>, vector<1x16x16x16xbf16>
    %52 = vector.shape_cast %51 : vector<1x16x16x16xbf16> to vector<16x16x16xbf16>
    %53 = vector.shape_cast %52 : vector<16x16x16xbf16> to vector<256x16xbf16>
    %c6 = arith.constant 6 : index
    %c0_64 = arith.constant 0 : index
    %c0_65 = arith.constant 0 : index
    %54 = vector.load %arg2[%c6, %c0_64, %c0_65] : memref<9x16x128xbf16, #tpu.memory_space<vmem>>, vector<1x16x128xbf16>
    %55 = vector.shape_cast %54 : vector<1x16x128xbf16> to vector<16x128xbf16>
    %cst_66 = arith.constant dense<0.000000e+00> : vector<256x128xf32>
    %56 = tpu.matmul %53, %55, %cst_66 {dimension_numbers = #tpu.dot_dimension_numbers<[1], [0], [0], [1], [0, 0, 1, 1], [], []>} : vector<256x16xbf16>, vector<16x128xbf16>, vector<256x128xf32> -> vector<256x128xf32>
    %57 = arith.addf %50, %56 : vector<256x128xf32>
    %c0_67 = arith.constant 0 : index
    %c2_68 = arith.constant 2 : index
    %c1_69 = arith.constant 1 : index
    %c0_70 = arith.constant 0 : index
    %58 = vector.load %arg1[%c0_67, %c2_68, %c1_69, %c0_70] : memref<1x18x18x16xbf16, #tpu.memory_space<vmem>>, vector<1x16x16x16xbf16>
    %59 = vector.shape_cast %58 : vector<1x16x16x16xbf16> to vector<16x16x16xbf16>
    %60 = vector.shape_cast %59 : vector<16x16x16xbf16> to vector<256x16xbf16>
    %c7 = arith.constant 7 : index
    %c0_71 = arith.constant 0 : index
    %c0_72 = arith.constant 0 : index
    %61 = vector.load %arg2[%c7, %c0_71, %c0_72] : memref<9x16x128xbf16, #tpu.memory_space<vmem>>, vector<1x16x128xbf16>
    %62 = vector.shape_cast %61 : vector<1x16x128xbf16> to vector<16x128xbf16>
    %cst_73 = arith.constant dense<0.000000e+00> : vector<256x128xf32>
    %63 = tpu.matmul %60, %62, %cst_73 {dimension_numbers = #tpu.dot_dimension_numbers<[1], [0], [0], [1], [0, 0, 1, 1], [], []>} : vector<256x16xbf16>, vector<16x128xbf16>, vector<256x128xf32> -> vector<256x128xf32>
    %64 = arith.addf %57, %63 : vector<256x128xf32>
    %c0_74 = arith.constant 0 : index
    %c2_75 = arith.constant 2 : index
    %c2_76 = arith.constant 2 : index
    %c0_77 = arith.constant 0 : index
    %65 = vector.load %arg1[%c0_74, %c2_75, %c2_76, %c0_77] : memref<1x18x18x16xbf16, #tpu.memory_space<vmem>>, vector<1x16x16x16xbf16>
    %66 = vector.shape_cast %65 : vector<1x16x16x16xbf16> to vector<16x16x16xbf16>
    %67 = vector.shape_cast %66 : vector<16x16x16xbf16> to vector<256x16xbf16>
    %c8 = arith.constant 8 : index
    %c0_78 = arith.constant 0 : index
    %c0_79 = arith.constant 0 : index
    %68 = vector.load %arg2[%c8, %c0_78, %c0_79] : memref<9x16x128xbf16, #tpu.memory_space<vmem>>, vector<1x16x128xbf16>
    %69 = vector.shape_cast %68 : vector<1x16x128xbf16> to vector<16x128xbf16>
    %cst_80 = arith.constant dense<0.000000e+00> : vector<256x128xf32>
    %70 = tpu.matmul %67, %69, %cst_80 {dimension_numbers = #tpu.dot_dimension_numbers<[1], [0], [0], [1], [0, 0, 1, 1], [], []>} : vector<256x16xbf16>, vector<16x128xbf16>, vector<256x128xf32> -> vector<256x128xf32>
    %71 = arith.addf %64, %70 : vector<256x128xf32>
    %72 = vector.broadcast %9 : vector<1x128xf32> to vector<256x128xf32>
    %73 = arith.addf %71, %72 : vector<256x128xf32>
    %cst_81 = arith.constant 0.000000e+00 : f32
    %74 = vector.broadcast %cst_81 : f32 to vector<256x128xf32>
    %75 = arith.maximumf %73, %74 : vector<256x128xf32>
    %76 = vector.shape_cast %75 : vector<256x128xf32> to vector<16x16x128xf32>
    %c1_82 = arith.constant 1 : index
    %c8_83 = arith.constant 8 : index
    %c0_84 = arith.constant 0 : index
    %77 = vector.load %arg7[%c1_82, %c8_83, %c0_84] : memref<18x32x128xf32, #tpu.memory_space<vmem>>, vector<16x16x128xf32>
    tpu.vector_store %arg7[%c1_82, %c8_83, %c0_84], %76 {strides = array<i32>} : memref<18x32x128xf32, #tpu.memory_space<vmem>>, vector<16x16x128xf32>,
    %c1_85 = arith.constant 1 : index
    %c0_86 = arith.constant 0 : index
    %c0_87 = arith.constant 0 : index
    %78 = vector.load %arg4[%c1_85, %c0_86, %c0_87] : memref<3x1x128xf32, #tpu.memory_space<vmem>>, vector<1x1x128xf32>
    %79 = vector.shape_cast %78 : vector<1x1x128xf32> to vector<1x128xf32>
    %c0_88 = arith.constant 0 : index
    %c7_89 = arith.constant 7 : index
    %c0_90 = arith.constant 0 : index
    %80 = tpu.strided_load %arg7[%c0_88, %c7_89, %c0_90] {strides = array<i32: 2, 2, 1>} : memref<18x32x128xf32, #tpu.memory_space<vmem>>, vector<8x8x128xf32>
    %81 = vector.shape_cast %80 : vector<8x8x128xf32> to vector<64x128xf32>
    %82 = arith.truncf %81 : vector<64x128xf32> to vector<64x128xbf16>
    %c0_91 = arith.constant 0 : index
    %c0_92 = arith.constant 0 : index
    %c0_93 = arith.constant 0 : index
    %c0_94 = arith.constant 0 : index
    %83 = vector.load %arg3[%c0_91, %c0_92, %c0_93, %c0_94] : memref<2x9x128x128xbf16, #tpu.memory_space<vmem>>, vector<1x1x128x128xbf16>
    %84 = vector.shape_cast %83 : vector<1x1x128x128xbf16> to vector<128x128xbf16>
    %cst_95 = arith.constant dense<0.000000e+00> : vector<64x128xf32>
    %85 = tpu.matmul %82, %84, %cst_95 {dimension_numbers = #tpu.dot_dimension_numbers<[1], [0], [0], [1], [0, 0, 1, 1], [], []>} : vector<64x128xbf16>, vector<128x128xbf16>, vector<64x128xf32> -> vector<64x128xf32>
    %c0_96 = arith.constant 0 : index
    %c8_97 = arith.constant 8 : index
    %c0_98 = arith.constant 0 : index
    %86 = tpu.strided_load %arg7[%c0_96, %c8_97, %c0_98] {strides = array<i32: 2, 2, 1>} : memref<18x32x128xf32, #tpu.memory_space<vmem>>, vector<8x8x128xf32>
    %87 = vector.shape_cast %86 : vector<8x8x128xf32> to vector<64x128xf32>
    %88 = arith.truncf %87 : vector<64x128xf32> to vector<64x128xbf16>
    %c0_99 = arith.constant 0 : index
    %c1_100 = arith.constant 1 : index
    %c0_101 = arith.constant 0 : index
    %c0_102 = arith.constant 0 : index
    %89 = vector.load %arg3[%c0_99, %c1_100, %c0_101, %c0_102] : memref<2x9x128x128xbf16, #tpu.memory_space<vmem>>, vector<1x1x128x128xbf16>
    %90 = vector.shape_cast %89 : vector<1x1x128x128xbf16> to vector<128x128xbf16>
    %cst_103 = arith.constant dense<0.000000e+00> : vector<64x128xf32>
    %91 = tpu.matmul %88, %90, %cst_103 {dimension_numbers = #tpu.dot_dimension_numbers<[1], [0], [0], [1], [0, 0, 1, 1], [], []>} : vector<64x128xbf16>, vector<128x128xbf16>, vector<64x128xf32> -> vector<64x128xf32>
    %92 = arith.addf %85, %91 : vector<64x128xf32>
    %c0_104 = arith.constant 0 : index
    %c9 = arith.constant 9 : index
    %c0_105 = arith.constant 0 : index
    %93 = tpu.strided_load %arg7[%c0_104, %c9, %c0_105] {strides = array<i32: 2, 2, 1>} : memref<18x32x128xf32, #tpu.memory_space<vmem>>, vector<8x8x128xf32>
    %94 = vector.shape_cast %93 : vector<8x8x128xf32> to vector<64x128xf32>
    %95 = arith.truncf %94 : vector<64x128xf32> to vector<64x128xbf16>
    %c0_106 = arith.constant 0 : index
    %c2_107 = arith.constant 2 : index
    %c0_108 = arith.constant 0 : index
    %c0_109 = arith.constant 0 : index
    %96 = vector.load %arg3[%c0_106, %c2_107, %c0_108, %c0_109] : memref<2x9x128x128xbf16, #tpu.memory_space<vmem>>, vector<1x1x128x128xbf16>
    %97 = vector.shape_cast %96 : vector<1x1x128x128xbf16> to vector<128x128xbf16>
    %cst_110 = arith.constant dense<0.000000e+00> : vector<64x128xf32>
    %98 = tpu.matmul %95, %97, %cst_110 {dimension_numbers = #tpu.dot_dimension_numbers<[1], [0], [0], [1], [0, 0, 1, 1], [], []>} : vector<64x128xbf16>, vector<128x128xbf16>, vector<64x128xf32> -> vector<64x128xf32>
    %99 = arith.addf %92, %98 : vector<64x128xf32>
    %c1_111 = arith.constant 1 : index
    %c7_112 = arith.constant 7 : index
    %c0_113 = arith.constant 0 : index
    %100 = tpu.strided_load %arg7[%c1_111, %c7_112, %c0_113] {strides = array<i32: 2, 2, 1>} : memref<18x32x128xf32, #tpu.memory_space<vmem>>, vector<8x8x128xf32>
    %101 = vector.shape_cast %100 : vector<8x8x128xf32> to vector<64x128xf32>
    %102 = arith.truncf %101 : vector<64x128xf32> to vector<64x128xbf16>
    %c0_114 = arith.constant 0 : index
    %c3_115 = arith.constant 3 : index
    %c0_116 = arith.constant 0 : index
    %c0_117 = arith.constant 0 : index
    %103 = vector.load %arg3[%c0_114, %c3_115, %c0_116, %c0_117] : memref<2x9x128x128xbf16, #tpu.memory_space<vmem>>, vector<1x1x128x128xbf16>
    %104 = vector.shape_cast %103 : vector<1x1x128x128xbf16> to vector<128x128xbf16>
    %cst_118 = arith.constant dense<0.000000e+00> : vector<64x128xf32>
    %105 = tpu.matmul %102, %104, %cst_118 {dimension_numbers = #tpu.dot_dimension_numbers<[1], [0], [0], [1], [0, 0, 1, 1], [], []>} : vector<64x128xbf16>, vector<128x128xbf16>, vector<64x128xf32> -> vector<64x128xf32>
    %106 = arith.addf %99, %105 : vector<64x128xf32>
    %c1_119 = arith.constant 1 : index
    %c8_120 = arith.constant 8 : index
    %c0_121 = arith.constant 0 : index
    %107 = tpu.strided_load %arg7[%c1_119, %c8_120, %c0_121] {strides = array<i32: 2, 2, 1>} : memref<18x32x128xf32, #tpu.memory_space<vmem>>, vector<8x8x128xf32>
    %108 = vector.shape_cast %107 : vector<8x8x128xf32> to vector<64x128xf32>
    %109 = arith.truncf %108 : vector<64x128xf32> to vector<64x128xbf16>
    %c0_122 = arith.constant 0 : index
    %c4_123 = arith.constant 4 : index
    %c0_124 = arith.constant 0 : index
    %c0_125 = arith.constant 0 : index
    %110 = vector.load %arg3[%c0_122, %c4_123, %c0_124, %c0_125] : memref<2x9x128x128xbf16, #tpu.memory_space<vmem>>, vector<1x1x128x128xbf16>
    %111 = vector.shape_cast %110 : vector<1x1x128x128xbf16> to vector<128x128xbf16>
    %cst_126 = arith.constant dense<0.000000e+00> : vector<64x128xf32>
    %112 = tpu.matmul %109, %111, %cst_126 {dimension_numbers = #tpu.dot_dimension_numbers<[1], [0], [0], [1], [0, 0, 1, 1], [], []>} : vector<64x128xbf16>, vector<128x128xbf16>, vector<64x128xf32> -> vector<64x128xf32>
    %113 = arith.addf %106, %112 : vector<64x128xf32>
    %c1_127 = arith.constant 1 : index
    %c9_128 = arith.constant 9 : index
    %c0_129 = arith.constant 0 : index
    %114 = tpu.strided_load %arg7[%c1_127, %c9_128, %c0_129] {strides = array<i32: 2, 2, 1>} : memref<18x32x128xf32, #tpu.memory_space<vmem>>, vector<8x8x128xf32>
    %115 = vector.shape_cast %114 : vector<8x8x128xf32> to vector<64x128xf32>
    %116 = arith.truncf %115 : vector<64x128xf32> to vector<64x128xbf16>
    %c0_130 = arith.constant 0 : index
    %c5_131 = arith.constant 5 : index
    %c0_132 = arith.constant 0 : index
    %c0_133 = arith.constant 0 : index
    %117 = vector.load %arg3[%c0_130, %c5_131, %c0_132, %c0_133] : memref<2x9x128x128xbf16, #tpu.memory_space<vmem>>, vector<1x1x128x128xbf16>
    %118 = vector.shape_cast %117 : vector<1x1x128x128xbf16> to vector<128x128xbf16>
    %cst_134 = arith.constant dense<0.000000e+00> : vector<64x128xf32>
    %119 = tpu.matmul %116, %118, %cst_134 {dimension_numbers = #tpu.dot_dimension_numbers<[1], [0], [0], [1], [0, 0, 1, 1], [], []>} : vector<64x128xbf16>, vector<128x128xbf16>, vector<64x128xf32> -> vector<64x128xf32>
    %120 = arith.addf %113, %119 : vector<64x128xf32>
    %c2_135 = arith.constant 2 : index
    %c7_136 = arith.constant 7 : index
    %c0_137 = arith.constant 0 : index
    %121 = tpu.strided_load %arg7[%c2_135, %c7_136, %c0_137] {strides = array<i32: 2, 2, 1>} : memref<18x32x128xf32, #tpu.memory_space<vmem>>, vector<8x8x128xf32>
    %122 = vector.shape_cast %121 : vector<8x8x128xf32> to vector<64x128xf32>
    %123 = arith.truncf %122 : vector<64x128xf32> to vector<64x128xbf16>
    %c0_138 = arith.constant 0 : index
    %c6_139 = arith.constant 6 : index
    %c0_140 = arith.constant 0 : index
    %c0_141 = arith.constant 0 : index
    %124 = vector.load %arg3[%c0_138, %c6_139, %c0_140, %c0_141] : memref<2x9x128x128xbf16, #tpu.memory_space<vmem>>, vector<1x1x128x128xbf16>
    %125 = vector.shape_cast %124 : vector<1x1x128x128xbf16> to vector<128x128xbf16>
    %cst_142 = arith.constant dense<0.000000e+00> : vector<64x128xf32>
    %126 = tpu.matmul %123, %125, %cst_142 {dimension_numbers = #tpu.dot_dimension_numbers<[1], [0], [0], [1], [0, 0, 1, 1], [], []>} : vector<64x128xbf16>, vector<128x128xbf16>, vector<64x128xf32> -> vector<64x128xf32>
    %127 = arith.addf %120, %126 : vector<64x128xf32>
    %c2_143 = arith.constant 2 : index
    %c8_144 = arith.constant 8 : index
    %c0_145 = arith.constant 0 : index
    %128 = tpu.strided_load %arg7[%c2_143, %c8_144, %c0_145] {strides = array<i32: 2, 2, 1>} : memref<18x32x128xf32, #tpu.memory_space<vmem>>, vector<8x8x128xf32>
    %129 = vector.shape_cast %128 : vector<8x8x128xf32> to vector<64x128xf32>
    %130 = arith.truncf %129 : vector<64x128xf32> to vector<64x128xbf16>
    %c0_146 = arith.constant 0 : index
    %c7_147 = arith.constant 7 : index
    %c0_148 = arith.constant 0 : index
    %c0_149 = arith.constant 0 : index
    %131 = vector.load %arg3[%c0_146, %c7_147, %c0_148, %c0_149] : memref<2x9x128x128xbf16, #tpu.memory_space<vmem>>, vector<1x1x128x128xbf16>
    %132 = vector.shape_cast %131 : vector<1x1x128x128xbf16> to vector<128x128xbf16>
    %cst_150 = arith.constant dense<0.000000e+00> : vector<64x128xf32>
    %133 = tpu.matmul %130, %132, %cst_150 {dimension_numbers = #tpu.dot_dimension_numbers<[1], [0], [0], [1], [0, 0, 1, 1], [], []>} : vector<64x128xbf16>, vector<128x128xbf16>, vector<64x128xf32> -> vector<64x128xf32>
    %134 = arith.addf %127, %133 : vector<64x128xf32>
    %c2_151 = arith.constant 2 : index
    %c9_152 = arith.constant 9 : index
    %c0_153 = arith.constant 0 : index
    %135 = tpu.strided_load %arg7[%c2_151, %c9_152, %c0_153] {strides = array<i32: 2, 2, 1>} : memref<18x32x128xf32, #tpu.memory_space<vmem>>, vector<8x8x128xf32>
    %136 = vector.shape_cast %135 : vector<8x8x128xf32> to vector<64x128xf32>
    %137 = arith.truncf %136 : vector<64x128xf32> to vector<64x128xbf16>
    %c0_154 = arith.constant 0 : index
    %c8_155 = arith.constant 8 : index
    %c0_156 = arith.constant 0 : index
    %c0_157 = arith.constant 0 : index
    %138 = vector.load %arg3[%c0_154, %c8_155, %c0_156, %c0_157] : memref<2x9x128x128xbf16, #tpu.memory_space<vmem>>, vector<1x1x128x128xbf16>
    %139 = vector.shape_cast %138 : vector<1x1x128x128xbf16> to vector<128x128xbf16>
    %cst_158 = arith.constant dense<0.000000e+00> : vector<64x128xf32>
    %140 = tpu.matmul %137, %139, %cst_158 {dimension_numbers = #tpu.dot_dimension_numbers<[1], [0], [0], [1], [0, 0, 1, 1], [], []>} : vector<64x128xbf16>, vector<128x128xbf16>, vector<64x128xf32> -> vector<64x128xf32>
    %141 = arith.addf %134, %140 : vector<64x128xf32>
    %142 = vector.broadcast %79 : vector<1x128xf32> to vector<64x128xf32>
    %143 = arith.addf %141, %142 : vector<64x128xf32>
    %cst_159 = arith.constant 0.000000e+00 : f32
    %144 = vector.broadcast %cst_159 : f32 to vector<64x128xf32>
    %145 = arith.maximumf %143, %144 : vector<64x128xf32>
    %c0_160 = arith.constant 0 : index
    %c0_161 = arith.constant 0 : index
    %c0_162 = arith.constant 0 : index
    %146 = vector.load %arg5[%c0_160, %c0_161, %c0_162] : memref<1x64x128xf32, #tpu.memory_space<vmem>>, vector<1x64x128xf32>
    %147 = vector.shape_cast %146 : vector<1x64x128xf32> to vector<64x128xf32>
    %148 = vector.shape_cast %145 : vector<64x128xf32> to vector<1x64x128xf32>
    tpu.vector_store %arg5[%c0_160, %c0_161, %c0_162], %148 {strides = array<i32>} : memref<1x64x128xf32, #tpu.memory_space<vmem>>, vector<1x64x128xf32>,
    %149 = vector.shape_cast %145 : vector<64x128xf32> to vector<8x8x128xf32>
    %c1_163 = arith.constant 1 : index
    %c8_164 = arith.constant 8 : index
    %c0_165 = arith.constant 0 : index
    %150 = vector.load %arg8[%c1_163, %c8_164, %c0_165] : memref<10x24x128xf32, #tpu.memory_space<vmem>>, vector<8x8x128xf32>
    tpu.vector_store %arg8[%c1_163, %c8_164, %c0_165], %149 {strides = array<i32>} : memref<10x24x128xf32, #tpu.memory_space<vmem>>, vector<8x8x128xf32>,
    %c2_166 = arith.constant 2 : index
    %c0_167 = arith.constant 0 : index
    %c0_168 = arith.constant 0 : index
    %151 = vector.load %arg4[%c2_166, %c0_167, %c0_168] : memref<3x1x128xf32, #tpu.memory_space<vmem>>, vector<1x1x128xf32>
    %152 = vector.shape_cast %151 : vector<1x1x128xf32> to vector<1x128xf32>
    %c0_169 = arith.constant 0 : index
    %c7_170 = arith.constant 7 : index
    %c0_171 = arith.constant 0 : index
    %153 = tpu.strided_load %arg8[%c0_169, %c7_170, %c0_171] {strides = array<i32: 2, 2, 1>} : memref<10x24x128xf32, #tpu.memory_space<vmem>>, vector<4x4x128xf32>
    %154 = vector.shape_cast %153 : vector<4x4x128xf32> to vector<16x128xf32>
    %155 = arith.truncf %154 : vector<16x128xf32> to vector<16x128xbf16>
    %c1_172 = arith.constant 1 : index
    %c0_173 = arith.constant 0 : index
    %c0_174 = arith.constant 0 : index
    %c0_175 = arith.constant 0 : index
    %156 = vector.load %arg3[%c1_172, %c0_173, %c0_174, %c0_175] : memref<2x9x128x128xbf16, #tpu.memory_space<vmem>>, vector<1x1x128x128xbf16>
    %157 = vector.shape_cast %156 : vector<1x1x128x128xbf16> to vector<128x128xbf16>
    %cst_176 = arith.constant dense<0.000000e+00> : vector<16x128xf32>
    %158 = tpu.matmul %155, %157, %cst_176 {dimension_numbers = #tpu.dot_dimension_numbers<[1], [0], [0], [1], [0, 0, 1, 1], [], []>} : vector<16x128xbf16>, vector<128x128xbf16>, vector<16x128xf32> -> vector<16x128xf32>
    %c0_177 = arith.constant 0 : index
    %c8_178 = arith.constant 8 : index
    %c0_179 = arith.constant 0 : index
    %159 = tpu.strided_load %arg8[%c0_177, %c8_178, %c0_179] {strides = array<i32: 2, 2, 1>} : memref<10x24x128xf32, #tpu.memory_space<vmem>>, vector<4x4x128xf32>
    %160 = vector.shape_cast %159 : vector<4x4x128xf32> to vector<16x128xf32>
    %161 = arith.truncf %160 : vector<16x128xf32> to vector<16x128xbf16>
    %c1_180 = arith.constant 1 : index
    %c1_181 = arith.constant 1 : index
    %c0_182 = arith.constant 0 : index
    %c0_183 = arith.constant 0 : index
    %162 = vector.load %arg3[%c1_180, %c1_181, %c0_182, %c0_183] : memref<2x9x128x128xbf16, #tpu.memory_space<vmem>>, vector<1x1x128x128xbf16>
    %163 = vector.shape_cast %162 : vector<1x1x128x128xbf16> to vector<128x128xbf16>
    %cst_184 = arith.constant dense<0.000000e+00> : vector<16x128xf32>
    %164 = tpu.matmul %161, %163, %cst_184 {dimension_numbers = #tpu.dot_dimension_numbers<[1], [0], [0], [1], [0, 0, 1, 1], [], []>} : vector<16x128xbf16>, vector<128x128xbf16>, vector<16x128xf32> -> vector<16x128xf32>
    %165 = arith.addf %158, %164 : vector<16x128xf32>
    %c0_185 = arith.constant 0 : index
    %c9_186 = arith.constant 9 : index
    %c0_187 = arith.constant 0 : index
    %166 = tpu.strided_load %arg8[%c0_185, %c9_186, %c0_187] {strides = array<i32: 2, 2, 1>} : memref<10x24x128xf32, #tpu.memory_space<vmem>>, vector<4x4x128xf32>
    %167 = vector.shape_cast %166 : vector<4x4x128xf32> to vector<16x128xf32>
    %168 = arith.truncf %167 : vector<16x128xf32> to vector<16x128xbf16>
    %c1_188 = arith.constant 1 : index
    %c2_189 = arith.constant 2 : index
    %c0_190 = arith.constant 0 : index
    %c0_191 = arith.constant 0 : index
    %169 = vector.load %arg3[%c1_188, %c2_189, %c0_190, %c0_191] : memref<2x9x128x128xbf16, #tpu.memory_space<vmem>>, vector<1x1x128x128xbf16>
    %170 = vector.shape_cast %169 : vector<1x1x128x128xbf16> to vector<128x128xbf16>
    %cst_192 = arith.constant dense<0.000000e+00> : vector<16x128xf32>
    %171 = tpu.matmul %168, %170, %cst_192 {dimension_numbers = #tpu.dot_dimension_numbers<[1], [0], [0], [1], [0, 0, 1, 1], [], []>} : vector<16x128xbf16>, vector<128x128xbf16>, vector<16x128xf32> -> vector<16x128xf32>
    %172 = arith.addf %165, %171 : vector<16x128xf32>
    %c1_193 = arith.constant 1 : index
    %c7_194 = arith.constant 7 : index
    %c0_195 = arith.constant 0 : index
    %173 = tpu.strided_load %arg8[%c1_193, %c7_194, %c0_195] {strides = array<i32: 2, 2, 1>} : memref<10x24x128xf32, #tpu.memory_space<vmem>>, vector<4x4x128xf32>
    %174 = vector.shape_cast %173 : vector<4x4x128xf32> to vector<16x128xf32>
    %175 = arith.truncf %174 : vector<16x128xf32> to vector<16x128xbf16>
    %c1_196 = arith.constant 1 : index
    %c3_197 = arith.constant 3 : index
    %c0_198 = arith.constant 0 : index
    %c0_199 = arith.constant 0 : index
    %176 = vector.load %arg3[%c1_196, %c3_197, %c0_198, %c0_199] : memref<2x9x128x128xbf16, #tpu.memory_space<vmem>>, vector<1x1x128x128xbf16>
    %177 = vector.shape_cast %176 : vector<1x1x128x128xbf16> to vector<128x128xbf16>
    %cst_200 = arith.constant dense<0.000000e+00> : vector<16x128xf32>
    %178 = tpu.matmul %175, %177, %cst_200 {dimension_numbers = #tpu.dot_dimension_numbers<[1], [0], [0], [1], [0, 0, 1, 1], [], []>} : vector<16x128xbf16>, vector<128x128xbf16>, vector<16x128xf32> -> vector<16x128xf32>
    %179 = arith.addf %172, %178 : vector<16x128xf32>
    %c1_201 = arith.constant 1 : index
    %c8_202 = arith.constant 8 : index
    %c0_203 = arith.constant 0 : index
    %180 = tpu.strided_load %arg8[%c1_201, %c8_202, %c0_203] {strides = array<i32: 2, 2, 1>} : memref<10x24x128xf32, #tpu.memory_space<vmem>>, vector<4x4x128xf32>
    %181 = vector.shape_cast %180 : vector<4x4x128xf32> to vector<16x128xf32>
    %182 = arith.truncf %181 : vector<16x128xf32> to vector<16x128xbf16>
    %c1_204 = arith.constant 1 : index
    %c4_205 = arith.constant 4 : index
    %c0_206 = arith.constant 0 : index
    %c0_207 = arith.constant 0 : index
    %183 = vector.load %arg3[%c1_204, %c4_205, %c0_206, %c0_207] : memref<2x9x128x128xbf16, #tpu.memory_space<vmem>>, vector<1x1x128x128xbf16>
    %184 = vector.shape_cast %183 : vector<1x1x128x128xbf16> to vector<128x128xbf16>
    %cst_208 = arith.constant dense<0.000000e+00> : vector<16x128xf32>
    %185 = tpu.matmul %182, %184, %cst_208 {dimension_numbers = #tpu.dot_dimension_numbers<[1], [0], [0], [1], [0, 0, 1, 1], [], []>} : vector<16x128xbf16>, vector<128x128xbf16>, vector<16x128xf32> -> vector<16x128xf32>
    %186 = arith.addf %179, %185 : vector<16x128xf32>
    %c1_209 = arith.constant 1 : index
    %c9_210 = arith.constant 9 : index
    %c0_211 = arith.constant 0 : index
    %187 = tpu.strided_load %arg8[%c1_209, %c9_210, %c0_211] {strides = array<i32: 2, 2, 1>} : memref<10x24x128xf32, #tpu.memory_space<vmem>>, vector<4x4x128xf32>
    %188 = vector.shape_cast %187 : vector<4x4x128xf32> to vector<16x128xf32>
    %189 = arith.truncf %188 : vector<16x128xf32> to vector<16x128xbf16>
    %c1_212 = arith.constant 1 : index
    %c5_213 = arith.constant 5 : index
    %c0_214 = arith.constant 0 : index
    %c0_215 = arith.constant 0 : index
    %190 = vector.load %arg3[%c1_212, %c5_213, %c0_214, %c0_215] : memref<2x9x128x128xbf16, #tpu.memory_space<vmem>>, vector<1x1x128x128xbf16>
    %191 = vector.shape_cast %190 : vector<1x1x128x128xbf16> to vector<128x128xbf16>
    %cst_216 = arith.constant dense<0.000000e+00> : vector<16x128xf32>
    %192 = tpu.matmul %189, %191, %cst_216 {dimension_numbers = #tpu.dot_dimension_numbers<[1], [0], [0], [1], [0, 0, 1, 1], [], []>} : vector<16x128xbf16>, vector<128x128xbf16>, vector<16x128xf32> -> vector<16x128xf32>
    %193 = arith.addf %186, %192 : vector<16x128xf32>
    %c2_217 = arith.constant 2 : index
    %c7_218 = arith.constant 7 : index
    %c0_219 = arith.constant 0 : index
    %194 = tpu.strided_load %arg8[%c2_217, %c7_218, %c0_219] {strides = array<i32: 2, 2, 1>} : memref<10x24x128xf32, #tpu.memory_space<vmem>>, vector<4x4x128xf32>
    %195 = vector.shape_cast %194 : vector<4x4x128xf32> to vector<16x128xf32>
    %196 = arith.truncf %195 : vector<16x128xf32> to vector<16x128xbf16>
    %c1_220 = arith.constant 1 : index
    %c6_221 = arith.constant 6 : index
    %c0_222 = arith.constant 0 : index
    %c0_223 = arith.constant 0 : index
    %197 = vector.load %arg3[%c1_220, %c6_221, %c0_222, %c0_223] : memref<2x9x128x128xbf16, #tpu.memory_space<vmem>>, vector<1x1x128x128xbf16>
    %198 = vector.shape_cast %197 : vector<1x1x128x128xbf16> to vector<128x128xbf16>
    %cst_224 = arith.constant dense<0.000000e+00> : vector<16x128xf32>
    %199 = tpu.matmul %196, %198, %cst_224 {dimension_numbers = #tpu.dot_dimension_numbers<[1], [0], [0], [1], [0, 0, 1, 1], [], []>} : vector<16x128xbf16>, vector<128x128xbf16>, vector<16x128xf32> -> vector<16x128xf32>
    %200 = arith.addf %193, %199 : vector<16x128xf32>
    %c2_225 = arith.constant 2 : index
    %c8_226 = arith.constant 8 : index
    %c0_227 = arith.constant 0 : index
    %201 = tpu.strided_load %arg8[%c2_225, %c8_226, %c0_227] {strides = array<i32: 2, 2, 1>} : memref<10x24x128xf32, #tpu.memory_space<vmem>>, vector<4x4x128xf32>
    %202 = vector.shape_cast %201 : vector<4x4x128xf32> to vector<16x128xf32>
    %203 = arith.truncf %202 : vector<16x128xf32> to vector<16x128xbf16>
    %c1_228 = arith.constant 1 : index
    %c7_229 = arith.constant 7 : index
    %c0_230 = arith.constant 0 : index
    %c0_231 = arith.constant 0 : index
    %204 = vector.load %arg3[%c1_228, %c7_229, %c0_230, %c0_231] : memref<2x9x128x128xbf16, #tpu.memory_space<vmem>>, vector<1x1x128x128xbf16>
    %205 = vector.shape_cast %204 : vector<1x1x128x128xbf16> to vector<128x128xbf16>
    %cst_232 = arith.constant dense<0.000000e+00> : vector<16x128xf32>
    %206 = tpu.matmul %203, %205, %cst_232 {dimension_numbers = #tpu.dot_dimension_numbers<[1], [0], [0], [1], [0, 0, 1, 1], [], []>} : vector<16x128xbf16>, vector<128x128xbf16>, vector<16x128xf32> -> vector<16x128xf32>
    %207 = arith.addf %200, %206 : vector<16x128xf32>
    %c2_233 = arith.constant 2 : index
    %c9_234 = arith.constant 9 : index
    %c0_235 = arith.constant 0 : index
    %208 = tpu.strided_load %arg8[%c2_233, %c9_234, %c0_235] {strides = array<i32: 2, 2, 1>} : memref<10x24x128xf32, #tpu.memory_space<vmem>>, vector<4x4x128xf32>
    %209 = vector.shape_cast %208 : vector<4x4x128xf32> to vector<16x128xf32>
    %210 = arith.truncf %209 : vector<16x128xf32> to vector<16x128xbf16>
    %c1_236 = arith.constant 1 : index
    %c8_237 = arith.constant 8 : index
    %c0_238 = arith.constant 0 : index
    %c0_239 = arith.constant 0 : index
    %211 = vector.load %arg3[%c1_236, %c8_237, %c0_238, %c0_239] : memref<2x9x128x128xbf16, #tpu.memory_space<vmem>>, vector<1x1x128x128xbf16>
    %212 = vector.shape_cast %211 : vector<1x1x128x128xbf16> to vector<128x128xbf16>
    %cst_240 = arith.constant dense<0.000000e+00> : vector<16x128xf32>
    %213 = tpu.matmul %210, %212, %cst_240 {dimension_numbers = #tpu.dot_dimension_numbers<[1], [0], [0], [1], [0, 0, 1, 1], [], []>} : vector<16x128xbf16>, vector<128x128xbf16>, vector<16x128xf32> -> vector<16x128xf32>
    %214 = arith.addf %207, %213 : vector<16x128xf32>
    %215 = vector.broadcast %152 : vector<1x128xf32> to vector<16x128xf32>
    %216 = arith.addf %214, %215 : vector<16x128xf32>
    %cst_241 = arith.constant 0.000000e+00 : f32
    %217 = vector.broadcast %cst_241 : f32 to vector<16x128xf32>
    %218 = arith.maximumf %216, %217 : vector<16x128xf32>
    %c0_242 = arith.constant 0 : index
    %c0_243 = arith.constant 0 : index
    %c0_244 = arith.constant 0 : index
    %219 = vector.load %arg6[%c0_242, %c0_243, %c0_244] : memref<1x16x128xf32, #tpu.memory_space<vmem>>, vector<1x16x128xf32>
    %220 = vector.shape_cast %219 : vector<1x16x128xf32> to vector<16x128xf32>
    %221 = vector.shape_cast %218 : vector<16x128xf32> to vector<1x16x128xf32>
    tpu.vector_store %arg6[%c0_242, %c0_243, %c0_244], %221 {strides = array<i32>} : memref<1x16x128xf32, #tpu.memory_space<vmem>>, vector<1x16x128xf32>,
    return
  }
  func.func @transform_0(%arg0: i32) -> (i32, i32, i32, i32) {
    %c0_i32 = arith.constant 0 : i32
    %c0_i32_0 = arith.constant 0 : i32
    %c0_i32_1 = arith.constant 0 : i32
    %c0_i32_2 = arith.constant 0 : i32
    return %arg0, %c0_i32, %c0_i32_0, %c0_i32_1 : i32, i32, i32, i32
  }
  func.func @transform_1(%arg0: i32) -> (i32, i32, i32) {
    %c0_i32 = arith.constant 0 : i32
    %c0_i32_0 = arith.constant 0 : i32
    %c0_i32_1 = arith.constant 0 : i32
    %c0_i32_2 = arith.constant 0 : i32
    return %c0_i32, %c0_i32_0, %c0_i32_1 : i32, i32, i32
  }
  func.func @transform_2(%arg0: i32) -> (i32, i32, i32, i32) {
    %c0_i32 = arith.constant 0 : i32
    %c0_i32_0 = arith.constant 0 : i32
    %c0_i32_1 = arith.constant 0 : i32
    %c0_i32_2 = arith.constant 0 : i32
    %c0_i32_3 = arith.constant 0 : i32
    return %c0_i32, %c0_i32_0, %c0_i32_1, %c0_i32_2 : i32, i32, i32, i32
  }
  func.func @transform_3(%arg0: i32) -> (i32, i32, i32) {
    %c0_i32 = arith.constant 0 : i32
    %c0_i32_0 = arith.constant 0 : i32
    %c0_i32_1 = arith.constant 0 : i32
    %c0_i32_2 = arith.constant 0 : i32
    return %c0_i32, %c0_i32_0, %c0_i32_1 : i32, i32, i32
  }
  func.func @transform_4(%arg0: i32) -> (i32, i32, i32) {
    %c0_i32 = arith.constant 0 : i32
    %c0_i32_0 = arith.constant 0 : i32
    %c0_i32_1 = arith.constant 0 : i32
    return %arg0, %c0_i32, %c0_i32_0 : i32, i32, i32
  }
  func.func @transform_5(%arg0: i32) -> (i32, i32, i32) {
    %c0_i32 = arith.constant 0 : i32
    %c0_i32_0 = arith.constant 0 : i32
    %c0_i32_1 = arith.constant 0 : i32
    return %arg0, %c0_i32, %c0_i32_0 : i32, i32, i32
  }
}

</mosaic_0001>

<bundles_post_ra>
// kernel: tpu_custom_call.1
= control target key start
LH: loop header
LB: loop body
LE: loop exit
PB: predicated region body
PF: predicated region fallthrough
CT: control target
= control target key end

     0   :  { %11 = vsyncpa [#allocation5], 0  ;;  %s12419_s0 = inlined_call_operand.vmem [shape: bf16[2,18,18,16], index: 0, kind: input, shape index: {}]   ;;  %s12420_s1 = inlined_call_operand.vmem [shape: bf16[9,16,128], index: 1, kind: input, shape index: {}]   ;;  %s12421_s2 = inlined_call_operand.hbm [shape: bf16[2,9,128,128], index: 2, kind: input, shape index: {}]   ;;  %s12422_s3 = inlined_call_operand.vmem [shape: f32[3,1,128], index: 3, kind: input, shape index: {}]   ;;  %s12423_s4 = inlined_call_operand.hbm [shape: f32[2,64,128], index: 4, kind: output, shape index: {0}]   ;;  %s12424_s5 = inlined_call_operand.hbm [shape: f32[2,16,128], index: 5, kind: output, shape index: {1}]  }
   0x1   :  { %12 = vsyncpa [#allocation6], 0 }
   0x2   :  { %14 = vsyncpa [#allocation6 + $0x1], 0 }
   0x3   :  { %15 = vsyncpa [#allocation9], 0 }
   0x4   :  { %17 = vsyncpa [#allocation9 + $0x1], 0  ;;  %s10307_s18 = smov 0   ;;  %s10309_s19 = smov 0  }
   0x5   :  { %s10311_s20 = smov 0   ;;  %s10313_s21 = smov 0  }
   0x6 LB: > { %s10328_s22 = sadd.s32 4294967295, %s10266_s21   ;;  %s7779_s23 = sadd.s32 4294967294, %s10266_s21   ;;  %s10266_s21 = sphi %s10313_s21, %s12529_s21   ;;  %s10262_s20 = sphi %s10311_s20, %s12528_s20   ;;  %s10258_s19 = sphi %s10309_s19, %s12527_s19   ;;  %s10254_s18 = sphi %s10307_s18, %s12526_s18  }
   0x7   : > { %s10332_s24 = sadd.s32 1, %s10266_s21   ;;  %s119_s25 = sadd.s32 1, %s10262_s20 }
   0x8   : > { %s116_s26 = ssub.s32 %s10266_s21, %s10332_s24  ;;  %p129_p0 = scmp.ne.s32.totalorder %s10262_s20, %s10258_s19 }
   0x9   : > { %p117_p1 = scmp.eq.s32.totalorder %s116_s26, 0  ;;  %p130_p2 = scmp.eq.s32.totalorder %s10328_s22, 1 }
   0xa   : > { %p135_p3 = scmp.ne.s32.totalorder %s10258_s19, %s10254_s18  ;;  %p136_p4 = scmp.eq.s32.totalorder %s7779_s23, 1 }
   0xb   : > { %s10343_s27 = scalar_select %p117_p1, %s10262_s20, %s119_s25  }
   0xc   : > { %p10345_p5 = por %p130_p2, %p129_p0  ;;  %p10349_p6 = por %p136_p4, %p135_p3 }
   0xd   : > { %p7780_p7 = scmp.ge.s32.totalorder %s10266_s21, 1  ;;  %p169_p8 = scmp.lt.s32.totalorder %s10266_s21, 3 }
   0xe   : > { %s12444_s28 = scalar_select %p10345_p5, 1, 0 }
   0xf   : > { %s12445_s29 = scalar_select %p10349_p6, 1, 0 }
  0x10   : > { %p12425_p9 = scmp.eq.s32.totalorder %s10328_s22, 0  ;;  %p10356_p10 = pnand %p7780_p7, %p169_p8 }
  0x11   : > { %s10268_s6 = smov [#allocation4]   ;;  %s10140_s11 = scalar_lea.hbm %s12421_s2, 18432 }
  0x12   : > { %s12446_s30 = scalar_select %p10356_p10, 1, 0 }
  0x13   : > { %s184_s7 = sshll.u32 %s10268_s6, 4  ;;  %p9873_p11 = pneg %p10356_p10  ;;  %s185_s7 = int_to_ptr.vmem [resolvable:$true] %s184_s7 }
  0x14   : > { %p10141_p13 = scmp.ne.s32.totalorder %s12421_s2, %s10140_s11  ;;  %p10147_p3 = scmp.lt.u32.totalorder %s10140_s11, %s12421_s2 }
  0x15   : > { %p10364_p12 = pnand %p12425_p9, %p9873_p11 }
  0x17   : > { %p10142_p0 = pneg %p10364_p12 }
  0x19   : > { %p10143_p1 = pnand %p10142_p0, %p10141_p13 }
  0x1b   : > { %p10144_p2 = pneg %p10143_p1 }
  0x1d   : > { %p10149_p4 = pnand %p10147_p3, %p10144_p2 }
  0x1f   : > { %10152 = shalt.err (!%p10149_p4)
}
  0x20   : > { %s10153_s16 = scalar_lea.vmem %s185_s7, 18432  ;;  %p10161_p9 = scmp.lt.s32.totalorder %s185_s7, %s185_s7 }
  0x21   : > { %p10154_p7 = scmp.ne.s32.totalorder %s185_s7, %s10153_s16  ;;  %p10162_p6 = scmp.lt.s32.totalorder %s10153_s16, %s10153_s16 }
  0x23   : > { %p10156_p8 = pnand %p10154_p7, %p10142_p0  ;;  %p10163_p5 = por %p10162_p6, %p10161_p9 }
  0x25   : > { %p10157_p11 = pneg %p10156_p8 }
  0x27   : > { %p10164_p10 = pnand %p10163_p5, %p10157_p11 }
  0x29   : > { %10167 = shalt.err (!%p10164_p10)
}
  0x2a   : > { %s10269_s17 = smov 64   ;;  %s10270_s23 = smov 4  }
  0x2b   : > { %9876 = dma.hbm_to_vmem [thread:$0]  (!%p10364_p12), %s12421_s2, 18432, %s185_s7, [#allocation5], %s10269_s17, %s10269_s17, %s10270_s23  }
  0x2c   : > { %p12448_p13 = scmp.ne.s32.totalorder %s12446_s30, 0 }
  0x2e   : > { %211 = sbr.rel (%p12448_p13) target bundleno = 1834 (0x72a), region = 36 }
  0x35   : > { %p12449_p1 = scmp.eq.s32.totalorder %s10328_s22, 0 }
  0x37   : > { %10241 = dma.done.wait (%p12449_p1), [#allocation5], 18432   ;;  %p12450_p0 = pmov %p12449_p1 }
  0x38   : > { %p244_p5 = scmp.lt.s32.totalorder %s10328_s22, 1  ;;  %v10271_v0 = vmov 0.0   ;;  %vm336_vm0 = vsmask.f32 3328  ;;  %v9926_v1 = vld [vmem:[%s12420_s1 + $0x8] sm:$0xff]   ;;  %v10416_v10 = vld [vmem:[%s12420_s1] sm:$0xff]  }
  0x39   : > { %10243 = vsyncadd (%p12450_p0), [#allocation5], 4294948864  ;;  %253 = vst [vmem:[#allocation2 + $0x18] sm:$0xff] %v10271_v0  ;;  %8842 = vmatprep.subr.bf16.mxu0 %v9926_v1  ;;  %vm337_vm1 = vsmask.f32 7440  ;;  %vm780_vm3 = vcmask 130048  }
  0x3a   : > { %251 = vst [vmem:[#allocation2 + $0x8] sm:$0xff] %v10271_v0  ;;  %252 = vst [vmem:[#allocation2 + $0x10] sm:$0xff] %v10271_v0  ;;  %s245_s30 = scalar_select %p244_p5, %s10328_s22, 1  ;;  %8843 = vmatpush3.bf16.msra.mxu0 %v9926_v1  ;;  %vm1333_vm4 = vcmask 1042432   ;;  %vm1334_vm5 = vcmask 1046532   ;;  %vm10272_vm7 = vmmov 0  }
  0x3b   : > { %255 = vst [vmem:[#allocation2 + $0x20] sm:$0xff] %v10271_v0  ;;  %256 = vst [vmem:[#allocation2 + $0x40] sm:$0xff] %v10271_v0  ;;  %8876 = vmatprep.subr.bf16.mxu0 %v10416_v10  ;;  %s12232_s14 = sand.u32 1, %s10258_s19   ;;  %s8498_s26 = sshll.u32 %s10328_s22, 10 }
  0x3c   : > { %257 = vst [vmem:[#allocation2 + $0x60] sm:$0xff] %v10271_v0  ;;  %258 = vst [vmem:[#allocation2 + $0x80] sm:$0xff] %v10271_v0  ;;  %s9864_s6 = smul.u32 216, %s245_s30  ;;  %s7785_s17 = sshll.u32 %s12232_s14, 6 }
  0x3d   : > { %259 = vst [vmem:[#allocation2 + $0xa0] sm:$0xff] %v10271_v0  ;;  %260 = vst [vmem:[#allocation2 + $0xc0] sm:$0xff] %v10271_v0  ;;  %s12238_s23 = scalar_lea.vmem [#allocation7], %s7785_s17  ;;  %s12334_s7 = scalar_lea.hbm %s12423_s4, %s8498_s26 }
  0x3e   : > { %261 = vst [vmem:[#allocation2 + $0xe0] sm:$0xff] %v10271_v0  ;;  %262 = vst [vmem:[#allocation2 + $0x100] sm:$0xff] %v10271_v0  ;;  %s10397_s9 = scalar_lea.vmem %s12419_s0, %s9864_s6  ;;  %s7585_s25 = sshll.u32 %s12238_s23, 4  ;;  %s12328_s25 = int_to_ptr.vmem [resolvable:$true] %s7585_s25 }
  0x3f   : > { %263 = vst [vmem:[#allocation2 + $0x120] sm:$0xff] %v10271_v0  ;;  %264 = vst [vmem:[#allocation2 + $0x140] sm:$0xff] %v10271_v0  ;;  %v10403_v2 = vld [vmem:[%s10397_s9] sm:$0xf]  ;;  %v10406_v3 = vld [vmem:[%s10397_s9 + $0x4] sm:$0xf] }
  0x40   : > { %265 = vst [vmem:[#allocation2 + $0x160] sm:$0xff] %v10271_v0  ;;  %266 = vst [vmem:[#allocation2 + $0x180] sm:$0xff] %v10271_v0  ;;  %v320_v4 = vld [vmem:[%s10397_s9 + $0x8] sm:$0x1]  ;;  %v340_v5 = vshrl.u32 %v10403_v2, 16  ;;  %v343_v6 = vshll.u32 %v10403_v2, 16 }
  0x41   : > { %267 = vst [vmem:[#allocation2 + $0x1a0] sm:$0xff] %v10271_v0  ;;  %268 = vst [vmem:[#allocation2 + $0x1c0] sm:$0xff] %v10271_v0  ;;  %v349_v7 = vshll.u32 %v10406_v3, 16  ;;  %v353_v8 = vshrl.u32 %v10406_v3, 16  ;;  %v359_v9 = vshll.u32 %v320_v4, 16  ;;  %s7567_s8 = scalar_lea.sflag [#allocation6], %s12232_s14 }
  0x42   : > { %269 = vst [vmem:[#allocation2 + $0x1e0] sm:$0xff] %v10271_v0  ;;  %270 = vst [vmem:[#allocation2 + $0x200] sm:$0xff] %v10271_v0  ;;  %v342_v11 = vrot.slane %v340_v5, 4  ;;  %v345_v12 = vrot.slane %v343_v6, 5  ;;  %v10419_v15 = vld [vmem:[%s10397_s9 + $0xc] sm:$0xf] }
  0x43   : > { %273 = vst [vmem:[#allocation3 + $0x8] sm:$0xff] %v10271_v0  ;;  %276 = vst [vmem:[#allocation3 + $0x18] sm:$0xff] %v10271_v0  ;;  %v351_v13 = vrot.slane %v349_v7, 5  ;;  %v355_v14 = vrot.slane %v353_v8, 4  ;;  %v361_v16 = vrot.slane %v359_v9, 5  ;;  %v364_v19 = vshrl.u32 %v10419_v15, 16 }
  0x44   : > { %277 = vst [vmem:[#allocation3 + $0x30] sm:$0xff] %v10271_v0  ;;  %278 = vst [vmem:[#allocation3 + $0x48] sm:$0xff] %v10271_v0  ;;  %v10423_v17 = vld [vmem:[%s10397_s9 + $0x10] sm:$0xf]  ;;  %v10426_v18 = vld [vmem:[%s10397_s9 + $0x14] sm:$0x1]  ;;  %v346_v20 = vor.u32 %v345_v12, %v342_v11 }
  0x45   : > { %279 = vst [vmem:[#allocation3 + $0x60] sm:$0xff] %v10271_v0  ;;  %280 = vst [vmem:[#allocation3 + $0x78] sm:$0xff] %v10271_v0  ;;  %v356_v21 = vor.u32 %v355_v14, %v351_v13  ;;  %v367_v22 = vshll.u32 %v10419_v15, 16  ;;  %v373_v23 = vshll.u32 %v10423_v17, 16  ;;  %v10432_v24 = vld [vmem:[%s10397_s9 + $0x18] sm:$0xf] }
  0x46   : > { %281 = vst [vmem:[#allocation3 + $0x90] sm:$0xff] %v10271_v0  ;;  %282 = vst [vmem:[#allocation3 + $0xa8] sm:$0xff] %v10271_v0  ;;  %v366_v26 = vrot.slane %v364_v19, 4  ;;  %v377_v27 = vshrl.u32 %v10423_v17, 16  ;;  %v383_v28 = vshll.u32 %v10426_v18, 16  ;;  %v347_v29 = vrot.slane %v346_v20, 4 }
  0x47   : > { %283 = vst [vmem:[#allocation3 + $0xc0] sm:$0xff] %v10271_v0  ;;  %254 = vst [vmem:[#allocation2] sm:$0xff] %v10271_v0  ;;  %v357_v30 = vrot.slane %v356_v21, 4  ;;  %v369_v31 = vrot.slane %v367_v22, 5  ;;  %v375_v32 = vrot.slane %v373_v23, 5  ;;  %v388_v38 = vshrl.u32 %v10432_v24, 16 }
  0x48   : > { %275 = vst [vmem:[#allocation3] sm:$0xff] %v10271_v0  ;;  %vm10436_vm2 = vmor %vm336_vm0, %vm337_vm1  ;;  %v10443_v33 = vld [vmem:[%s10397_s9 + $0x1c] sm:$0xf]  ;;  %v379_v34 = vrot.slane %v377_v27, 4  ;;  %v385_v35 = vrot.slane %v383_v28, 5  ;;  %v391_v42 = vshll.u32 %v10432_v24, 16 }
  0x49   : > { %v322_v37 = vld [vmem:[%s10397_s9 + $0x20] sm:$0x1]  ;;  %v352_v39 = vsel %vm10436_vm2, %v347_v29, %v351_v13  ;;  %v362_v40 = vsel %vm10436_vm2, %v357_v30, %v361_v16  ;;  %v370_v41 = vor.u32 %v369_v31, %v366_v26  ;;  %v10454_v43 = vld [vmem:[%s10397_s9 + $0x24] sm:$0xf]  ;;  %v390_v46 = vrot.slane %v388_v38, 4  ;;  %v10482_v11 = vld [vmem:[%s12420_s1 + $0x10] sm:$0xff]  }
  0x4a   : > { %v7790_v44 = vcombine.low %v352_v39, %v362_v40  ;;  %v380_v45 = vor.u32 %v379_v34, %v375_v32  ;;  %v397_v47 = vshll.u32 %v10443_v33, 16  ;;  %v393_v49 = vrot.slane %v391_v42, 5  ;;  %v10459_v52 = vld [vmem:[%s10397_s9 + $0x28] sm:$0xf]  ;;  %v10467_v61 = vld [vmem:[%s10397_s9 + $0x2c] sm:$0x1]  ;;  %vm10752_vm6 = vmor %vm1333_vm4, %vm1334_vm5 }
  0x4b   : > { %v371_v48 = vrot.slane %v370_v41, 4  ;;  %v401_v50 = vshrl.u32 %v10443_v33, 16  ;;  %v407_v51 = vshll.u32 %v322_v37, 16  ;;  %v412_v55 = vshrl.u32 %v10454_v43, 16  ;;  %v10470_v62 = vld [vmem:[%s10397_s9 + $0x30] sm:$0xf] }
  0x4c   : > { %8844 = vmatprep.mubr.msk.bf16.mxu0 %vm780_vm3, %v7790_v44  ;;  %v381_v53 = vrot.slane %v380_v45, 4  ;;  %v399_v54 = vrot.slane %v397_v47, 5  ;;  %v415_v56 = vshll.u32 %v10454_v43, 16  ;;  %v394_v58 = vor.u32 %v393_v49, %v390_v46  ;;  %v10477_v9 = vld [vmem:[%s10397_s9 + $0x34] sm:$0xf]  ;;  %s10168_s10 = scalar_lea.vmem %s12328_s25, 1024 }
  0x4d   : > { %v376_v57 = vsel %vm10436_vm2, %v371_v48, %v375_v32  ;;  %v403_v59 = vrot.slane %v401_v50, 4  ;;  %v409_v60 = vrot.slane %v407_v51, 5  ;;  %v414_v0 = vrot.slane %v412_v55, 4  ;;  %v10490_v22 = vld [vmem:[%s10397_s9 + $0x38] sm:$0x1]  ;;  %p10169_p6 = scmp.ne.s32.totalorder %s12328_s25, %s10168_s10  ;;  %p12524_p9 = scmp.ne.s32.totalorder %s12444_s28, 0 }
  0x4e   : > { %v386_v63 = vsel %vm10436_vm2, %v381_v53, %v385_v35  ;;  %v417_v1 = vrot.slane %v415_v56, 5  ;;  %v421_v4 = vshll.u32 %v10459_v52, 16  ;;  %v395_v6 = vrot.slane %v394_v58, 4  ;;  %v10496_v30 = vld [vmem:[%s10397_s9 + $0x3c] sm:$0xf]  ;;  %s10273_s11 = smov [#allocation7]  }
  0x4f   : > { %v7791_v5 = vcombine.low %v376_v57, %v386_v63  ;;  %v404_v7 = vor.u32 %v403_v59, %v399_v54  ;;  %v425_v8 = vshrl.u32 %v10459_v52, 16  ;;  %v431_v14 = vshll.u32 %v10467_v61, 16  ;;  %v10502_v37 = vld [vmem:[%s10397_s9 + $0x40] sm:$0xf]  ;;  %v10509_v45 = vld [vmem:[%s10397_s9 + $0x44] sm:$0x1]  ;;  %p10170_p10 = pnand %p10169_p6, %p12524_p9 }
  0x50   : > { %v418_v12 = vor.u32 %v417_v1, %v414_v0  ;;  %v423_v13 = vrot.slane %v421_v4, 5  ;;  %v436_v16 = vshrl.u32 %v10470_v62, 16  ;;  %v400_v19 = vsel %vm10436_vm2, %v395_v6, %v399_v54  ;;  %v10517_v51 = vld [vmem:[%s10397_s9 + $0x48] sm:$0xf]  ;;  %v10522_v57 = vld [vmem:[%s10397_s9 + $0x4c] sm:$0xf] }
  0x51   : > { %8845 = vmatmul.mubr.msk.bf16.vlgmr.msra.gmra.mrb[0].mxu0 %vm780_vm3, %v7791_v5  ;;  %v405_v20 = vrot.slane %v404_v7, 4  ;;  %v427_v21 = vrot.slane %v425_v8, 4  ;;  %v439_v23 = vshll.u32 %v10470_v62, 16  ;;  %v433_v27 = vrot.slane %v431_v14, 5  ;;  %v10530_v8 = vld [vmem:[%s10397_s9 + $0x50] sm:$0x1]  ;;  %p10171_p12 = pneg %p10170_p10 }
  0x52   : > { %8877 = vmatpush3.bf16.msra.mxu0 %v10416_v10  ;;  %v419_v26 = vrot.slane %v418_v12, 4  ;;  %v438_v28 = vrot.slane %v436_v16, 4  ;;  %v445_v29 = vshll.u32 %v10477_v9, 16  ;;  %v449_v35 = vshrl.u32 %v10477_v9, 16  ;;  %v10535_v14 = vld [vmem:[%s10397_s9 + $0x54] sm:$0xf] }
  0x53   : > { %v410_v31 = vsel %vm10436_vm2, %v405_v20, %v409_v60  ;;  %v428_v32 = vor.u32 %v427_v21, %v423_v13  ;;  %v441_v34 = vrot.slane %v439_v23, 5  ;;  %8910 = vmatprep.subr.bf16.mxu0 %v10482_v11  ;;  %v455_v40 = vshll.u32 %v10490_v22, 16  ;;  %v10662_v36 = vld [vmem:[%s10397_s9 + $0xa8] sm:$0xf]  ;;  %s10172_s12 = sshll.u32 %s10273_s11, 4  ;;  %s10173_s12 = int_to_ptr.vmem [resolvable:$false] %s10172_s12 }
  0x54   : > { %v7792_v10 = vcombine.low %v400_v19, %v410_v31  ;;  %v424_v38 = vsel %vm10436_vm2, %v419_v26, %v423_v13  ;;  %v447_v39 = vrot.slane %v445_v29, 5  ;;  %v451_v44 = vrot.slane %v449_v35, 4  ;;  %p10175_p2 = scmp.lt.s32.totalorder %s12328_s25, %s10173_s12 }
  0x55   : > { %v429_v41 = vrot.slane %v428_v32, 4  ;;  %v442_v42 = vor.u32 %v441_v34, %v438_v28  ;;  %v460_v46 = vshrl.u32 %v10496_v30, 16  ;;  %v457_v47 = vrot.slane %v455_v40, 5  ;;  %v10542_v34 = vld [vmem:[%s10397_s9 + $0x58] sm:$0xf] }
  0x56   : > { %8848 = vmatprep.mubr.msk.bf16.mxu0 %vm780_vm3, %v7792_v10  ;;  %v463_v48 = vshll.u32 %v10496_v30, 16  ;;  %v469_v49 = vshll.u32 %v10502_v37, 16  ;;  %v473_v50 = vshrl.u32 %v10502_v37, 16  ;;  %v452_v55 = vor.u32 %v451_v44, %v447_v39  ;;  %v10551_v40 = vld [vmem:[%s10397_s9 + $0x5c] sm:$0x1] }
  0x57   : > { %v434_v53 = vsel %vm10436_vm2, %v429_v41, %v433_v27  ;;  %v443_v54 = vrot.slane %v442_v42, 4  ;;  %v462_v56 = vrot.slane %v460_v46, 4  ;;  %v479_v4 = vshll.u32 %v10509_v45, 16  ;;  %12453 = vst [vmem:[#allocation13_spill] sm:$0xff] %v10551_v40  ;;  %v10555_v42 = vld [vmem:[%s10397_s9 + $0x60] sm:$0xf] }
  0x58   : > { %v7793_v58 = vcombine.low %v424_v38, %v434_v53  ;;  %v465_v59 = vrot.slane %v463_v48, 5  ;;  %v471_v60 = vrot.slane %v469_v49, 5  ;;  %v475_v63 = vrot.slane %v473_v50, 4 }
  0x59   : > { %v448_v0 = vsel %vm10436_vm2, %v443_v54, %v447_v39  ;;  %v453_v1 = vrot.slane %v452_v55, 4  ;;  %v484_v5 = vshrl.u32 %v10517_v51, 16  ;;  %v487_v12 = vshll.u32 %v10517_v51, 16 }
  0x5a   : > { %8849 = vmatmul.mubr.msk.bf16.gmra.mrb[4].mxu0 %vm780_vm3, %v7793_v58  ;;  %v466_v6 = vor.u32 %v465_v59, %v462_v56  ;;  %v476_v7 = vor.u32 %v475_v63, %v471_v60  ;;  %v493_v13 = vshll.u32 %v10522_v57, 16  ;;  %v481_v19 = vrot.slane %v479_v4, 5  ;;  %v10561_v58 = vld [vmem:[%s10397_s9 + $0x64] sm:$0xf] }
  0x5b   : > { %v458_v16 = vsel %vm10436_vm2, %v453_v1, %v457_v47  ;;  %v486_v20 = vrot.slane %v484_v5, 4  ;;  %v497_v21 = vshrl.u32 %v10522_v57, 16  ;;  %v489_v28 = vrot.slane %v487_v12, 5  ;;  %v10569_v5 = vld [vmem:[%s10397_s9 + $0x68] sm:$0x1] }
  0x5c   : > { %v7794_v23 = vcombine.low %v448_v0, %v458_v16  ;;  %v467_v26 = vrot.slane %v466_v6, 4  ;;  %v477_v27 = vrot.slane %v476_v7, 4  ;;  %v495_v29 = vrot.slane %v493_v13, 5  ;;  %12454 = vst [vmem:[#allocation14_spill] sm:$0xff] %v10569_v5  ;;  %v10572_v6 = vld [vmem:[%s10397_s9 + $0x6c] sm:$0xf] }
  0x5d   : > { %v499_v31 = vrot.slane %v497_v21, 4  ;;  %v503_v32 = vshll.u32 %v10530_v8, 16  ;;  %v508_v35 = vshrl.u32 %v10535_v14, 16  ;;  %v490_v39 = vor.u32 %v489_v28, %v486_v20 }
  0x5e   : > { %8852 = vmatprep.mubr.msk.bf16.mxu0 %vm780_vm3, %v7794_v23  ;;  %v472_v10 = vsel %vm10436_vm2, %v467_v26, %v471_v60  ;;  %v482_v38 = vsel %vm10436_vm2, %v477_v27, %v481_v19  ;;  %v511_v41 = vshll.u32 %v10535_v14, 16  ;;  %v517_v53 = vshll.u32 %v10542_v34, 16  ;;  %v10577_v19 = vld [vmem:[%s10397_s9 + $0x70] sm:$0xf]  ;;  %v10581_v27 = vld [vmem:[%s10397_s9 + $0x74] sm:$0x1] }
  0x5f   : > { %v7795_v44 = vcombine.low %v472_v10, %v482_v38  ;;  %v500_v46 = vor.u32 %v499_v31, %v495_v29  ;;  %v505_v47 = vrot.slane %v503_v32, 5  ;;  %v510_v48 = vrot.slane %v508_v35, 4  ;;  %12455 = vst [vmem:[#allocation15_spill] sm:$0xff] %v10581_v27 }
  0x60   : > { %v491_v49 = vrot.slane %v490_v39, 4  ;;  %v513_v50 = vrot.slane %v511_v41, 5  ;;  %v521_v54 = vshrl.u32 %v10542_v34, 16  ;;  %v527_v56 = vshll.u32 %v10551_v40, 16 }
  0x61   : > { %v501_v55 = vrot.slane %v500_v46, 4  ;;  %v532_v59 = vshrl.u32 %v10555_v42, 16  ;;  %v535_v60 = vshll.u32 %v10555_v42, 16  ;;  %v519_v1 = vrot.slane %v517_v53, 5 }
  0x62   : > { %8853 = vmatmul.mubr.msk.bf16.gmra.mrb[8].mxu0 %vm780_vm3, %v7795_v44  ;;  %v496_v63 = vsel %vm10436_vm2, %v491_v49, %v495_v29  ;;  %v514_v0 = vor.u32 %v513_v50, %v510_v48  ;;  %v523_v4 = vrot.slane %v521_v54, 4  ;;  %v529_v12 = vrot.slane %v527_v56, 5  ;;  %v10591_v48 = vld [vmem:[%s10397_s9 + $0x78] sm:$0xf] }
  0x63   : > { %v506_v7 = vsel %vm10436_vm2, %v501_v55, %v505_v47  ;;  %v534_v13 = vrot.slane %v532_v59, 4  ;;  %v537_v16 = vrot.slane %v535_v60, 5  ;;  %v541_v26 = vshll.u32 %v10561_v58, 16  ;;  %v10598_v55 = vld [vmem:[%s10397_s9 + $0x7c] sm:$0xf] }
  0x64   : > { %v7796_v20 = vcombine.low %v496_v63, %v506_v7  ;;  %v515_v21 = vrot.slane %v514_v0, 4  ;;  %v524_v23 = vor.u32 %v523_v4, %v519_v1  ;;  %v545_v29 = vshrl.u32 %v10561_v58, 16  ;;  %v10604_v7 = vld [vmem:[%s10397_s9 + $0x80] sm:$0x1] }
  0x65   : > { %v538_v28 = vor.u32 %v537_v16, %v534_v13  ;;  %v551_v31 = vshll.u32 %v10569_v5, 16  ;;  %v556_v32 = vshrl.u32 %v10572_v6, 16  ;;  %v543_v38 = vrot.slane %v541_v26, 5  ;;  %12456 = vst [vmem:[#allocation16_spill] sm:$0xff] %v10604_v7 }
  0x66   : > { %8856 = vmatprep.mubr.msk.bf16.mxu0 %vm780_vm3, %v7796_v20  ;;  %v520_v35 = vsel %vm10436_vm2, %v515_v21, %v519_v1  ;;  %v525_v10 = vrot.slane %v524_v23, 4  ;;  %v559_v39 = vshll.u32 %v10572_v6, 16  ;;  %v547_v44 = vrot.slane %v545_v29, 4  ;;  %v10611_v23 = vld [vmem:[%s10397_s9 + $0x84] sm:$0xf] }
  0x67   : > { %v539_v41 = vrot.slane %v538_v28, 4  ;;  %v553_v46 = vrot.slane %v551_v31, 5  ;;  %v558_v47 = vrot.slane %v556_v32, 4  ;;  %v565_v53 = vshll.u32 %v10577_v19, 16  ;;  %v10615_v32 = vld [vmem:[%s10397_s9 + $0x88] sm:$0xf] }
  0x68   : > { %v530_v49 = vsel %vm10436_vm2, %v525_v10, %v529_v12  ;;  %v561_v50 = vrot.slane %v559_v39, 5  ;;  %v569_v54 = vshrl.u32 %v10577_v19, 16  ;;  %v548_v60 = vor.u32 %v547_v44, %v543_v38 }
  0x69   : > { %v7797_v56 = vcombine.low %v520_v35, %v530_v49  ;;  %v544_v59 = vsel %vm10436_vm2, %v539_v41, %v543_v38  ;;  %v575_v63 = vshll.u32 %v10581_v27, 16  ;;  %v567_v1 = vrot.slane %v565_v53, 5  ;;  %v10621_v41 = vld [vmem:[%s10397_s9 + $0x8c] sm:$0x1]  ;;  %v10626_v53 = vld [vmem:[%s10397_s9 + $0x90] sm:$0xf] }
  0x6a   : > { %v562_v0 = vor.u32 %v561_v50, %v558_v47  ;;  %v571_v4 = vrot.slane %v569_v54, 4  ;;  %v580_v12 = vshrl.u32 %v10591_v48, 16  ;;  %v549_v13 = vrot.slane %v548_v60, 4  ;;  %12457 = vst [vmem:[#allocation17_spill] sm:$0xff] %v10621_v41  ;;  %v10697_v27 = vld [vmem:[%s10397_s9 + $0xbc] sm:$0x1] }
  0x6b   : > { %8857 = vmatmul.mubr.msk.bf16.gmra.mrb[12].mxu0 %vm780_vm3, %v7797_v56  ;;  %v577_v16 = vrot.slane %v575_v63, 5  ;;  %v583_v20 = vshll.u32 %v10591_v48, 16  ;;  %v589_v21 = vshll.u32 %v10598_v55, 16  ;;  %v593_v31 = vshrl.u32 %v10598_v55, 16  ;;  %v10631_v63 = vld [vmem:[%s10397_s9 + $0x94] sm:$0xf] }
  0x6c   : > { %v563_v26 = vrot.slane %v562_v0, 4  ;;  %v572_v28 = vor.u32 %v571_v4, %v567_v1  ;;  %v582_v29 = vrot.slane %v580_v12, 4  ;;  %v554_v35 = vsel %vm10436_vm2, %v549_v13, %v553_v46 }
  0x6d   : > { %v585_v10 = vrot.slane %v583_v20, 5  ;;  %v591_v38 = vrot.slane %v589_v21, 5  ;;  %v599_v39 = vshll.u32 %v10604_v7, 16  ;;  %v7798_v44 = vcombine.low %v544_v59, %v554_v35  ;;  %v10691_v7 = vld [vmem:[%s10397_s9 + $0xb8] sm:$0xf] }
  0x6e   : > { %v568_v47 = vsel %vm10436_vm2, %v563_v26, %v567_v1  ;;  %v573_v49 = vrot.slane %v572_v28, 4  ;;  %v595_v50 = vrot.slane %v593_v31, 4  ;;  %v604_v60 = vshrl.u32 %v10611_v23, 16  ;;  %v10639_v26 = vld [vmem:[%s10397_s9 + $0x98] sm:$0x1] }
  0x6f   : > { %v586_v54 = vor.u32 %v585_v10, %v582_v29  ;;  %v601_v56 = vrot.slane %v599_v39, 5  ;;  %v607_v46 = vshll.u32 %v10611_v23, 16  ;;  %8860 = vmatprep.mubr.msk.bf16.mxu0 %vm780_vm3, %v7798_v44  ;;  %v613_v1 = vshll.u32 %v10615_v32, 16  ;;  %12458 = vst [vmem:[#allocation18_spill] sm:$0xff] %v10639_v26  ;;  %v10643_v10 = vld [vmem:[%s10397_s9 + $0x9c] sm:$0xf] }
  0x70   : > { %v578_v59 = vsel %vm10436_vm2, %v573_v49, %v577_v16  ;;  %v596_v0 = vor.u32 %v595_v50, %v591_v38  ;;  %v617_v4 = vshrl.u32 %v10615_v32, 16  ;;  %v606_v20 = vrot.slane %v604_v60, 4  ;;  %v10651_v49 = vld [vmem:[%s10397_s9 + $0xa0] sm:$0xf] }
  0x71   : > { %v7799_v12 = vcombine.low %v568_v47, %v578_v59  ;;  %v587_v13 = vrot.slane %v586_v54, 4  ;;  %v609_v21 = vrot.slane %v607_v46, 5  ;;  %v615_v29 = vrot.slane %v613_v1, 5 }
  0x72   : > { %v597_v28 = vrot.slane %v596_v0, 4  ;;  %v619_v31 = vrot.slane %v617_v4, 4  ;;  %v623_v35 = vshll.u32 %v10621_v41, 16  ;;  %v628_v44 = vshrl.u32 %v10626_v53, 16  ;;  %v10657_v4 = vld [vmem:[%s10397_s9 + $0xa4] sm:$0x1] }
  0x73   : > { %8861 = vmatmul.mubr.msk.bf16.gmra.mrb[16].mxu0 %vm780_vm3, %v7799_v12  ;;  %v592_v16 = vsel %vm10436_vm2, %v587_v13, %v591_v38  ;;  %v610_v39 = vor.u32 %v609_v21, %v606_v20  ;;  %v631_v47 = vshll.u32 %v10626_v53, 16  ;;  %v637_v46 = vshll.u32 %v10631_v63, 16  ;;  %12459 = vst [vmem:[#allocation19_spill] sm:$0xff] %v10657_v4 }
  0x74   : > { %v602_v50 = vsel %vm10436_vm2, %v597_v28, %v601_v56  ;;  %v620_v54 = vor.u32 %v619_v31, %v615_v29  ;;  %v625_v60 = vrot.slane %v623_v35, 5  ;;  %v630_v1 = vrot.slane %v628_v44, 4 }
  0x75   : > { %v7800_v59 = vcombine.low %v592_v16, %v602_v50  ;;  %v611_v0 = vrot.slane %v610_v39, 4  ;;  %v633_v38 = vrot.slane %v631_v47, 5  ;;  %v639_v13 = vrot.slane %v637_v46, 5  ;;  %v10670_v16 = vld [vmem:[%s10397_s9 + $0xac] sm:$0xf] }
  0x76   : > { %v621_v12 = vrot.slane %v620_v54, 4  ;;  %v641_v20 = vshrl.u32 %v10631_v63, 16  ;;  %v647_v21 = vshll.u32 %v10639_v26, 16  ;;  %v652_v31 = vshrl.u32 %v10643_v10, 16 }
  0x77   : > { %8864 = vmatprep.mubr.msk.bf16.mxu0 %vm780_vm3, %v7800_v59  ;;  %v616_v56 = vsel %vm10436_vm2, %v611_v0, %v615_v29  ;;  %v634_v28 = vor.u32 %v633_v38, %v630_v1  ;;  %v655_v35 = vshll.u32 %v10643_v10, 16  ;;  %v661_v50 = vshll.u32 %v10651_v49, 16  ;;  %v10676_v29 = vld [vmem:[%s10397_s9 + $0xb0] sm:$0x1] }
  0x78   : > { %v626_v39 = vsel %vm10436_vm2, %v621_v12, %v625_v60  ;;  %v643_v44 = vrot.slane %v641_v20, 4  ;;  %v649_v47 = vrot.slane %v647_v21, 5  ;;  %v654_v59 = vrot.slane %v652_v31, 4 }
  0x79   : > { %v7801_v54 = vcombine.low %v616_v56, %v626_v39  ;;  %v635_v46 = vrot.slane %v634_v28, 4  ;;  %v657_v26 = vrot.slane %v655_v35, 5  ;;  %v663_v1 = vrot.slane %v661_v50, 5  ;;  %v10686_v56 = vld [vmem:[%s10397_s9 + $0xb4] sm:$0xf] }
  0x7a   : > { %v644_v0 = vor.u32 %v643_v44, %v639_v13  ;;  %v665_v38 = vshrl.u32 %v10651_v49, 16  ;;  %v671_v41 = vshll.u32 %v10657_v4, 16  ;;  %v676_v20 = vshrl.u32 %v10662_v36, 16 }
  0x7b   : > { %8865 = vmatmul.mubr.msk.bf16.gmra.mrb[20].mxu0 %vm780_vm3, %v7801_v54  ;;  %v640_v60 = vsel %vm10436_vm2, %v635_v46, %v639_v13  ;;  %v658_v12 = vor.u32 %v657_v26, %v654_v59  ;;  %v679_v21 = vshll.u32 %v10662_v36, 16  ;;  %v685_v39 = vshll.u32 %v10670_v16, 16 }
  0x7c   : > { %v645_v28 = vrot.slane %v644_v0, 4  ;;  %v667_v31 = vrot.slane %v665_v38, 4  ;;  %v673_v35 = vrot.slane %v671_v41, 5  ;;  %v678_v50 = vrot.slane %v676_v20, 4 }
  0x7d   : > { %v659_v44 = vrot.slane %v658_v12, 4  ;;  %v681_v4 = vrot.slane %v679_v21, 5  ;;  %v689_v54 = vshrl.u32 %v10670_v16, 16  ;;  %v687_v46 = vrot.slane %v685_v39, 5 }
  0x7e   : > { %v650_v26 = vsel %vm10436_vm2, %v645_v28, %v649_v47  ;;  %v668_v13 = vor.u32 %v667_v31, %v663_v1  ;;  %v695_v59 = vshll.u32 %v10676_v29, 16  ;;  %v700_v5 = vshrl.u32 %v10686_v56, 16 }
  0x7f   : > { %v7802_v0 = vcombine.low %v640_v60, %v650_v26  ;;  %v664_v41 = vsel %vm10436_vm2, %v659_v44, %v663_v1  ;;  %v682_v38 = vor.u32 %v681_v4, %v678_v50  ;;  %v691_v12 = vrot.slane %v689_v54, 4 }
  0x80   : > { %v669_v20 = vrot.slane %v668_v13, 4  ;;  %v697_v21 = vrot.slane %v695_v59, 5  ;;  %v703_v40 = vshll.u32 %v10686_v56, 16  ;;  %v709_v31 = vshll.u32 %v10691_v7, 16 }
  0x81   : > { %8868 = vmatprep.mubr.msk.bf16.mxu0 %vm780_vm3, %v7802_v0  ;;  %v683_v47 = vrot.slane %v682_v38, 4  ;;  %v692_v28 = vor.u32 %v691_v12, %v687_v46  ;;  %v713_v39 = vshrl.u32 %v10691_v7, 16  ;;  %v702_v1 = vrot.slane %v700_v5, 4 }
  0x82   : > { %v674_v60 = vsel %vm10436_vm2, %v669_v20, %v673_v35  ;;  %v705_v4 = vrot.slane %v703_v40, 5  ;;  %v719_v44 = vshll.u32 %v10697_v27, 16  ;;  %v711_v13 = vrot.slane %v709_v31, 5  ;;  %v12467_v31 = vld [vmem:[#allocation16_spill] sm:$0xff] }
  0x83   : > { %v7803_v50 = vcombine.low %v664_v41, %v674_v60  ;;  %v688_v54 = vsel %vm10436_vm2, %v683_v47, %v687_v46  ;;  %v693_v26 = vrot.slane %v692_v28, 4  ;;  %v1348_v59 = vrot.slane %v10426_v18, 5  ;;  %v1286_v28 = vld [vmem:[%s10397_s9 + $0xc] sm:$0xe]  ;;  %v1298_v47 = vld [vmem:[%s10397_s9 + $0x9c] sm:$0xe] }
  0x84   : > { %v706_v0 = vor.u32 %v705_v4, %v702_v1  ;;  %v715_v38 = vrot.slane %v713_v39, 4  ;;  %v7824_v12 = vcombine.low %v10419_v15, %v10423_v17  ;;  %v721_v5 = vrot.slane %v719_v44, 5  ;;  %v1288_v1 = vld [vmem:[%s10397_s9 + $0x24] sm:$0xe]  ;;  %v1299_v46 = vld [vmem:[%s10397_s9 + $0xa8] sm:$0xe] }
  0x85   : > { %8869 = vmatmul.mubr.msk.bf16.gmra.mrb[24].mxu0 %vm780_vm3, %v7803_v50  ;;  %v698_v40 = vsel %vm10436_vm2, %v693_v26, %v697_v21  ;;  %v7826_v35 = vcombine.low %v10454_v43, %v10459_v52  ;;  %v10794_v50 = vld [vmem:[%s12420_s1 + $0x18] sm:$0xff]   ;;  %v1380_v60 = vrot.slane %v10522_v57, 5  ;;  %v1387_v39 = vrot.slane %v10542_v34, 5  ;;  %v12464_v15 = vld [vmem:[#allocation13_spill] sm:$0xff] }
  0x86   : > { %v7804_v41 = vcombine.low %v688_v54, %v698_v40  ;;  %v707_v18 = vrot.slane %v706_v0, 4  ;;  %v716_v20 = vor.u32 %v715_v38, %v711_v13  ;;  %v7857_v0 = vrot.slane %v1286_v28, 9  ;;  %v1289_v54 = vld [vmem:[%s10397_s9 + $0x30] sm:$0xe]  ;;  %v1290_v28 = vld [vmem:[%s10397_s9 + $0x3c] sm:$0xe] }
  0x87   : > { %v12462_v38 = vrot.slane %v10423_v17, 5  ;;  %v1390_v17 = vrot.slane %v12464_v15, 5  ;;  %v12465_v15 = vld [vmem:[#allocation14_spill] sm:$0xff] }
  0x88   : > { %8872 = vmatprep.mubr.msk.bf16.mxu0 %vm780_vm3, %v7804_v41  ;;  %v712_v4 = vsel %vm10436_vm2, %v707_v18, %v711_v13  ;;  %v717_v44 = vrot.slane %v716_v20, 4  ;;  %v7823_v41 = vcombine.low %v10403_v2, %v10406_v3  ;;  %v7859_v13 = vrot.slane %v1288_v1, 9  ;;  %v9985_v20 = vld [vmem:[#allocation4 + $0x50] sm:$0xff]  }
  0x89   : > { %v1347_v26 = vrot.slane %v12462_v38, 4 }
  0x8a   : > { %v722_v40 = vsel %vm10436_vm2, %v717_v44, %v721_v5  ;;  %v12463_v5 = vmov %v12462_v38  ;;  %v1291_v44 = vld [vmem:[%s10397_s9 + $0x48] sm:$0xe]  ;;  %v1362_v38 = vrot.slane %v10467_v61, 5  ;;  %v1369_v61 = vrot.slane %v10490_v22, 5 }
  0x8b   : > { %v7805_v18 = vcombine.low %v712_v4, %v722_v40  ;;  %v10764_v2 = vsel %vm10752_vm6, %v7857_v0, %v12463_v5  ;;  %v10768_v3 = vsel %vm10752_vm6, %v1347_v26, %v1348_v59  ;;  %v1359_v4 = vrot.slane %v10459_v52, 5  ;;  %v1292_v26 = vld [vmem:[%s10397_s9 + $0x54] sm:$0xe] }
  0x8c   : > { %v7860_v40 = vrot.slane %v1289_v54, 9  ;;  %v1366_v0 = vrot.slane %v10477_v9, 5  ;;  %v1293_v54 = vld [vmem:[%s10397_s9 + $0x60] sm:$0xe] }
  0x8d   : > { %8873 = vmatmul.mubr.msk.bf16.gmra.mrb[28].mxu0 %vm780_vm3, %v7805_v18  ;;  %v10780_v18 = vsel %vm10752_vm6, %v7859_v13, %v1359_v4  ;;  %v1361_v59 = vrot.slane %v1359_v4, 4  ;;  %v7861_v4 = vrot.slane %v1290_v28, 9 }
  0x8e   : > { %8878 = vmatprep.mubr.msk.bf16.mxu0 %vm780_vm3, %v7823_v41  ;;  %v7825_v41 = vcombine.low %v10432_v24, %v10443_v33  ;;  %v10787_v5 = vsel %vm10752_vm6, %v7860_v40, %v1366_v0  ;;  %v1368_v1 = vrot.slane %v1366_v0, 4  ;;  %v1373_v24 = vrot.slane %v10502_v37, 5  ;;  %v1297_v40 = vld [vmem:[%s10397_s9 + $0x90] sm:$0xe] }
  0x8f   : > { %v10798_v13 = vsel %vm10752_vm6, %v1361_v59, %v1362_v38  ;;  %v1376_v33 = vrot.slane %v10509_v45, 5  ;;  %v7862_v0 = vrot.slane %v1291_v44, 9  ;;  %v1383_v45 = vrot.slane %v10530_v8, 5  ;;  %v1294_v59 = vld [vmem:[%s10397_s9 + $0x6c] sm:$0xe] }
  0x90   : > { %v10806_v22 = vsel %vm10752_vm6, %v1368_v1, %v1369_v61  ;;  %v10813_v28 = vsel %vm10752_vm6, %v7861_v4, %v1373_v24  ;;  %v1375_v38 = vrot.slane %v1373_v24, 4  ;;  %v1382_v44 = vrot.slane %v1380_v60, 4  ;;  %v1295_v24 = vld [vmem:[%s10397_s9 + $0x78] sm:$0xe] }
  0x91   : > { %v10823_v1 = vsel %vm10752_vm6, %v7862_v0, %v1380_v60  ;;  %v7863_v61 = vrot.slane %v1292_v26, 9  ;;  %v1394_v4 = vrot.slane %v10561_v58, 5  ;;  %v1397_v60 = vrot.slane %v12465_v15, 5 }
  0x92   : > { %v10830_v8 = vsel %vm10752_vm6, %v1375_v38, %v1376_v33  ;;  %v1296_v33 = vld [vmem:[%s10397_s9 + $0x84] sm:$0xe]  ;;  %v1408_v15 = vrot.slane %v10598_v55, 5 }
  0x93   : > { %v10844_v26 = vsel %vm10752_vm6, %v7863_v61, %v1387_v39  ;;  %v1396_v38 = vrot.slane %v1394_v4, 4  ;;  %v12466_v61 = vld [vmem:[#allocation15_spill] sm:$0xff] }
  0x94   : > { %v1404_v21 = vrot.slane %v12466_v61, 5  ;;  %v1411_v61 = vrot.slane %v12467_v31, 5  ;;  %v12468_v31 = vld [vmem:[#allocation17_spill] sm:$0xff] }
  0x95   : > { %8879 = vmatmul.mubr.msk.bf16.vlgmr.msra.gmra.mrb[0].mxu0 %vm780_vm3, %v7824_v12  ;;  %v7864_v12 = vrot.slane %v1293_v54, 9 }
  0x96   : > { %8911 = vmatpush3.bf16.msra.mxu0 %v10482_v11  ;;  %8882 = vmatprep.mubr.msk.bf16.mxu0 %vm780_vm3, %v7825_v41  ;;  %v10840_v11 = vsel %vm10752_vm6, %v1382_v44, %v1383_v45  ;;  %v1389_v41 = vrot.slane %v1387_v39, 4  ;;  %v7865_v44 = vrot.slane %v1294_v59, 9  ;;  %v1401_v39 = vrot.slane %v10577_v19, 5 }
  0x97   : > { %8944 = vmatprep.subr.bf16.mxu0 %v10794_v50  ;;  %v10851_v0 = vsel %vm10752_vm6, %v7864_v12, %v1394_v4  ;;  %v10865_v12 = vsel %vm10752_vm6, %v1396_v38, %v1397_v60  ;;  %v7866_v4 = vrot.slane %v1295_v24, 9  ;;  %v1410_v60 = vrot.slane %v1408_v15, 4 }
  0x98   : > { %v10857_v45 = vsel %vm10752_vm6, %v1389_v41, %v1390_v17  ;;  %v10872_v59 = vsel %vm10752_vm6, %v7865_v44, %v1401_v39  ;;  %v1403_v41 = vrot.slane %v1401_v39, 4  ;;  %v7867_v24 = vrot.slane %v1296_v33, 9 }
  0x99   : > { %v10878_v54 = vsel %vm10752_vm6, %v7866_v4, %v1408_v15  ;;  %v1415_v38 = vrot.slane %v10615_v32, 5  ;;  %v1418_v39 = vrot.slane %v12468_v31, 5  ;;  %v7868_v17 = vrot.slane %v1297_v40, 9 }
  0x9a   : > { %v10888_v44 = vsel %vm10752_vm6, %v1403_v41, %v1404_v21  ;;  %v1422_v4 = vrot.slane %v10631_v63, 5  ;;  %v12469_v33 = vcombine.low %v10470_v62, %v10477_v9  ;;  %v10900_v43 = vsel %vm10752_vm6, %v1410_v60, %v1411_v61  ;;  %v1300_v21 = vld [vmem:[%s10397_s9 + $0xb4] sm:$0xe]  ;;  %v12470_v41 = vld [vmem:[#allocation18_spill] sm:$0xff] }
  0x9b   : > { %v10904_v52 = vsel %vm10752_vm6, %v7867_v24, %v1415_v38  ;;  %v1425_v31 = vrot.slane %v12470_v41, 5  ;;  %v7869_v60 = vrot.slane %v1298_v47, 9  ;;  %v1429_v24 = vrot.slane %v10651_v49, 5 }
  0x9c   : > { %v10911_v62 = vsel %vm10752_vm6, %v7868_v17, %v1422_v4  ;;  %v1424_v9 = vrot.slane %v1422_v4, 4  ;;  %v7870_v17 = vrot.slane %v1299_v46, 9  ;;  %v1436_v4 = vrot.slane %v10670_v16, 5 }
  0x9d   : > { %8883 = vmatmul.mubr.msk.bf16.gmra.mrb[4].mxu0 %vm780_vm3, %v7826_v35  ;;  %v1417_v35 = vrot.slane %v1415_v38, 4  ;;  %v10931_v47 = vsel %vm10752_vm6, %v7869_v60, %v1429_v24  ;;  %v1443_v46 = vrot.slane %v10691_v7, 5  ;;  %v1446_v41 = vrot.slane %v10697_v27, 5 }
  0x9e   : > { %8886 = vmatprep.mubr.msk.bf16.mxu0 %vm780_vm3, %v12469_v33  ;;  %v12471_v33 = vld [vmem:[#allocation19_spill] sm:$0xff]  ;;  %v10924_v40 = vsel %vm10752_vm6, %v1424_v9, %v1425_v31  ;;  %v1438_v15 = vrot.slane %v1436_v4, 4  ;;  %v7871_v9 = vrot.slane %v1300_v21, 9  ;;  %v12472_v60 = vcombine.low %v10496_v30, %v10502_v37 }
  0x9f   : > { %v10916_v61 = vsel %vm10752_vm6, %v1417_v35, %v1418_v39  ;;  %v1432_v38 = vrot.slane %v12471_v33, 5  ;;  %v1431_v39 = vrot.slane %v1429_v24, 4  ;;  %v1439_v35 = vrot.slane %v10676_v29, 5 }
  0xa0   : > { %v10936_v33 = vsel %vm10752_vm6, %v7870_v17, %v1436_v4  ;;  %v10956_v24 = vsel %vm10752_vm6, %v7871_v9, %v1443_v46  ;;  %v12473_v27 = vcombine.low %v10517_v51, %v10522_v57  ;;  %v12474_v17 = vcombine.low %v10535_v14, %v10542_v34  ;;  %v10127_v14 = vld [vmem:[%s10397_s9 + $0x4] sm:$0xf] }
  0xa1   : > { %v10941_v31 = vsel %vm10752_vm6, %v1431_v39, %v1432_v38  ;;  %v10952_v21 = vsel %vm10752_vm6, %v1438_v15, %v1439_v35  ;;  %v1445_v38 = vrot.slane %v1443_v46, 4  ;;  %v12475_v51 = vcombine.low %v10555_v42, %v10561_v58  ;;  %v10128_v39 = vld [vmem:[%s10397_s9 + $0x8] sm:$0x1] }
  0xa2   : > { %v7887_v29 = vcombine.low %v10931_v47, %v10941_v31  ;;  %v7888_v30 = vcombine.low %v10936_v33, %v10952_v21  ;;  %v12476_v57 = vcombine.low %v10572_v6, %v10577_v19  ;;  %v12477_v4 = vcombine.low %v10591_v48, %v10598_v55  ;;  %v7981_v47 = vld [vmem:[%s10397_s9 + $0x28] sm:$0xf]  ;;  %v9946_v31 = vld [vmem:[%s10397_s9 + $0xc] sm:$0xff]   ;;  %v7984_v21 = vld [vmem:[%s10397_s9 + $0x34] sm:$0xf] }
  0xa3   : > { %v10966_v37 = vsel %vm10752_vm6, %v1445_v38, %v1446_v41  ;;  %v1338_v34 = vrot.slane %v10127_v14, 5  ;;  %v1285_v41 = vld [vmem:[%s10397_s9] sm:$0xe]  ;;  %v1341_v35 = vrot.slane %v10128_v39, 5  ;;  %v12478_v42 = vcombine.low %v10611_v23, %v10615_v32  ;;  %v10129_v23 = vld [vmem:[%s10397_s9 + $0x1c] sm:$0xf] }
  0xa4   : > { %v7889_v15 = vcombine.low %v10956_v24, %v10966_v37  ;;  %v12479_v58 = vcombine.low %v10626_v53, %v10631_v63  ;;  %v7856_v6 = vrot.slane %v1285_v41, 9  ;;  %v12480_v48 = vcombine.low %v10643_v10, %v10651_v49  ;;  %v1287_v63 = vld [vmem:[%s10397_s9 + $0x18] sm:$0xe]  ;;  %v10130_v10 = vld [vmem:[%s10397_s9 + $0x20] sm:$0x1] }
  0xa5   : > { %8887 = vmatmul.mubr.msk.bf16.gmra.mrb[8].mxu0 %vm780_vm3, %v12472_v60  ;;  %v1340_v19 = vrot.slane %v1338_v34, 4  ;;  %v12481_v55 = vcombine.low %v10662_v36, %v10670_v16  ;;  %v1352_v32 = vrot.slane %v10129_v23, 5  ;;  %v7858_v60 = vrot.slane %v1287_v63, 9  ;;  %v7980_v14 = vld [vmem:[%s10397_s9 + $0x24] sm:$0xf]  ;;  %v9948_v24 = vld [vmem:[%s10397_s9 + $0x18] sm:$0xff]  }
  0xa6   : > { %8890 = vmatprep.mubr.msk.bf16.mxu0 %vm780_vm3, %v12473_v27  ;;  %v1339_v9 = vsel %vm10752_vm6, %v7856_v6, %v1338_v34  ;;  %v1355_v49 = vrot.slane %v10130_v10, 5  ;;  %v12482_v27 = vcombine.low %v10686_v56, %v10691_v7  ;;  %v12483_v7 = vcombine.low %v10764_v2, %v10768_v3  ;;  %v7979_v39 = vld [vmem:[%s10397_s9 + $0x20] sm:$0x1] }
  0xa7   : > { %v1342_v53 = vsel %vm10752_vm6, %v1340_v19, %v1341_v35  ;;  %v1354_v38 = vrot.slane %v1352_v32, 4  ;;  %v1353_v36 = vsel %vm10752_vm6, %v7858_v60, %v1352_v32  ;;  %v12484_v56 = vcombine.low %v10780_v18, %v10798_v13  ;;  %v7983_v19 = vld [vmem:[%s10397_s9 + $0x30] sm:$0xf] }
  0xa8   : > { %v7874_v46 = vcombine.low %v1339_v9, %v1342_v53  ;;  %v12486_v2 = vcombine.low %v10813_v28, %v10830_v8  ;;  %v12488_v3 = vcombine.low %v10844_v26, %v10857_v45  ;;  %v12489_v18 = vcombine.low %v10851_v0, %v10865_v12  ;;  %v7974_v28 = vld [vmem:[%s10397_s9 + $0xc] sm:$0xf]  ;;  %v7975_v8 = vld [vmem:[%s10397_s9 + $0x10] sm:$0xf] }
  0xa9   : > { %v1356_v16 = vsel %vm10752_vm6, %v1354_v38, %v1355_v49  ;;  %v12491_v13 = vcombine.low %v10878_v54, %v10900_v43  ;;  %v2158_v26 = vshrl.u32 %v7974_v28, 16  ;;  %v2161_v0 = vshll.u32 %v7974_v28, 16  ;;  %v7978_v43 = vld [vmem:[%s10397_s9 + $0x1c] sm:$0xf] }
  0xaa   : > { %v2167_v54 = vshll.u32 %v7975_v8, 16  ;;  %v2171_v45 = vshrl.u32 %v7975_v8, 16  ;;  %v2191_v41 = vshll.u32 %v7978_v43, 16  ;;  %v2195_v35 = vshrl.u32 %v7978_v43, 16  ;;  %v9951_v43 = vld [vmem:[%s10397_s9 + $0x3c] sm:$0xff]  }
  0xab   : > { %v2209_v6 = vshll.u32 %v7980_v14, 16  ;;  %v2219_v33 = vshrl.u32 %v7981_v47, 16  ;;  %v2230_v23 = vshrl.u32 %v7983_v19, 16  ;;  %v2233_v32 = vshll.u32 %v7983_v19, 16 }
  0xac   : > { %v11102_v53 = vrot.slane %v2191_v41, 5  ;;  %v2197_v63 = vrot.slane %v2195_v35, 4  ;;  %v9952_v35 = vld [vmem:[%s10397_s9 + $0x48] sm:$0xff]  }
  0xad   : > { %8891 = vmatmul.mubr.msk.bf16.gmra.mrb[12].mxu0 %vm780_vm3, %v12474_v17  ;;  %v7876_v17 = vcombine.low %v1353_v36, %v1356_v16  ;;  %v2211_v49 = vrot.slane %v2209_v6, 5  ;;  %v2239_v16 = vshll.u32 %v7984_v21, 16  ;;  %v9953_v6 = vld [vmem:[%s10397_s9 + $0x54] sm:$0xff]  }
  0xae   : > { %8894 = vmatprep.mubr.msk.bf16.mxu0 %vm780_vm3, %v12475_v51  ;;  %v11024_v51 = vld [vmem:[%s12420_s1 + $0x20] sm:$0xff]  }
  0xb5   : > { %8895 = vmatmul.mubr.msk.bf16.gmra.mrb[16].mxu0 %vm780_vm3, %v12476_v57  ;;  %v12485_v57 = vcombine.low %v10787_v5, %v10806_v22  ;;  %v12490_v5 = vcombine.low %v10872_v59, %v10888_v44  ;;  %v12492_v22 = vcombine.low %v10904_v52, %v10916_v61  ;;  %v2160_v44 = vrot.slane %v2158_v26, 4  ;;  %v7976_v52 = vld [vmem:[%s10397_s9 + $0x14] sm:$0x1] }
  0xb6   : > { %8898 = vmatprep.mubr.msk.bf16.mxu0 %vm780_vm3, %v12477_v4  ;;  %v2173_v61 = vrot.slane %v2171_v45, 4  ;;  %v9950_v45 = vld [vmem:[%s10397_s9 + $0x30] sm:$0xff]  }
  0xbd   : > { %8899 = vmatmul.mubr.msk.bf16.gmra.mrb[20].mxu0 %vm780_vm3, %v12478_v42 }
  0xbe   : > { %8902 = vmatprep.mubr.msk.bf16.mxu0 %vm780_vm3, %v12479_v58  ;;  %v2206_v58 = vshrl.u32 %v7980_v14, 16  ;;  %v11154_v14 = vld [vmem:[%s10397_s9 + $0x4c] sm:$0xf] }
  0xc0   : > { %v2208_v10 = vrot.slane %v2206_v58, 4 }
  0xc5   : > { %8903 = vmatmul.mubr.msk.bf16.gmra.mrb[24].mxu0 %vm780_vm3, %v12480_v48 }
  0xc6   : > { %8906 = vmatprep.mubr.msk.bf16.mxu0 %vm780_vm3, %v12481_v55  ;;  %v2215_v55 = vshll.u32 %v7981_v47, 16 }
  0xc8   : > { %v11111_v37 = vrot.slane %v2215_v55, 5 }
  0xcd   : > { %8907 = vmatmul.mubr.msk.bf16.gmra.mrb[28].mxu0 %vm780_vm3, %v12482_v27  ;;  %v7985_v27 = vld [vmem:[%s10397_s9 + $0x38] sm:$0x1] }
  0xce   : > { %8912 = vmatprep.mubr.msk.bf16.mxu0 %vm780_vm3, %v7874_v46  ;;  %v2201_v46 = vshll.u32 %v7979_v39, 16 }
  0xd0   : > { %v11125_v8 = vrot.slane %v2201_v46, 5 }
  0xd5   : > { %8913 = vmatmul.mubr.msk.bf16.vlgmr.msra.gmra.mrb[0].mxu0 %vm780_vm3, %v12483_v7  ;;  %v2232_v7 = vrot.slane %v2230_v23, 4  ;;  %v11183_v23 = vld [vmem:[%s10397_s9 + $0x64] sm:$0xf] }
  0xd6   : > { %8945 = vmatpush3.bf16.msra.mxu0 %v10794_v50  ;;  %8916 = vmatprep.mubr.msk.bf16.mxu0 %vm780_vm3, %v7876_v17  ;;  %v12487_v50 = vcombine.low %v10823_v1, %v10840_v11  ;;  %v12493_v1 = vcombine.low %v10911_v62, %v10924_v40  ;;  %v7977_v11 = vld [vmem:[%s10397_s9 + $0x18] sm:$0xf]  ;;  %v2163_v40 = vrot.slane %v2161_v0, 5  ;;  %v11082_v62 = vrot.slane %v2167_v54, 5  ;;  %v9949_v17 = vld [vmem:[%s10397_s9 + $0x24] sm:$0xff]  }
  0xd7   : > { %8978 = vmatprep.subr.bf16.mxu0 %v11024_v51  ;;  %v2182_v12 = vshrl.u32 %v7977_v11, 16  ;;  %v2185_v59 = vshll.u32 %v7977_v11, 16  ;;  %v11135_v54 = vrot.slane %v2239_v16, 5  ;;  %v9955_v16 = vld [vmem:[%s10397_s9 + $0x6c] sm:$0xff]  }
  0xd8   : > { %v2164_v42 = vor.u32 %v2163_v40, %v2160_v44  ;;  %v2174_v48 = vor.u32 %v2173_v61, %v11082_v62  ;;  %v11147_v61 = vld [vmem:[%s10397_s9 + $0x40] sm:$0xf] }
  0xd9   : > { %v2184_v4 = vrot.slane %v2182_v12, 4  ;;  %v2187_v34 = vrot.slane %v2185_v59, 5  ;;  %v2263_v47 = vshll.u32 %v11147_v61, 16 }
  0xda   : > { %v11100_v9 = vrot.slane %v2164_v42, 4  ;;  %v11105_v60 = vrot.slane %v2174_v48, 4  ;;  %v2267_v42 = vshrl.u32 %v11147_v61, 16 }
  0xdd   : > { %8917 = vmatmul.mubr.msk.bf16.gmra.mrb[4].mxu0 %vm780_vm3, %v12484_v56  ;;  %v2235_v56 = vrot.slane %v2233_v32, 5  ;;  %v11186_v32 = vld [vmem:[%s10397_s9 + $0x68] sm:$0x1] }
  0xde   : > { %8920 = vmatprep.mubr.msk.bf16.mxu0 %vm780_vm3, %v12485_v57  ;;  %v11117_v57 = vld [vmem:[%s12420_s1 + $0x28] sm:$0xff]  }
  0xdf   : > { %v2236_v28 = vor.u32 %v2235_v56, %v2232_v7  ;;  %v11199_v56 = vld [vmem:[%s10397_s9 + $0x44] sm:$0x1] }
  0xe5   : > { %8921 = vmatmul.mubr.msk.bf16.gmra.mrb[8].mxu0 %vm780_vm3, %v12486_v2  ;;  %v2188_v2 = vor.u32 %v2187_v34, %v2184_v4  ;;  %v11150_v4 = vld [vmem:[%s10397_s9 + $0x48] sm:$0xf]  ;;  %v11157_v34 = vld [vmem:[%s10397_s9 + $0x50] sm:$0x1] }
  0xe6   : > { %8924 = vmatprep.mubr.msk.bf16.mxu0 %vm780_vm3, %v12487_v50  ;;  %v2243_v50 = vshrl.u32 %v7984_v21, 16  ;;  %v2943_v39 = vrot.slane %v11157_v34, 5  ;;  %v2278_v19 = vshrl.u32 %v11150_v4, 16 }
  0xed   : > { %8925 = vmatmul.mubr.msk.bf16.gmra.mrb[12].mxu0 %vm780_vm3, %v12488_v3  ;;  %v2249_v3 = vshll.u32 %v7985_v27, 16  ;;  %v2957_v27 = vrot.slane %v11186_v32, 5 }
  0xee   : > { %8928 = vmatprep.mubr.msk.bf16.mxu0 %vm780_vm3, %v12489_v18  ;;  %v2198_v18 = vor.u32 %v2197_v63, %v11102_v53 }
  0xef   : > { %v11141_v59 = vrot.slane %v2249_v3, 5 }
  0xf0   : > { %v11129_v11 = vrot.slane %v2198_v18, 4  ;;  %v11213_v18 = vld [vmem:[%s10397_s9 + $0x7c] sm:$0xf] }
  0xf5   : > { %8929 = vmatmul.mubr.msk.bf16.gmra.mrb[16].mxu0 %vm780_vm3, %v12490_v5  ;;  %v2212_v5 = vor.u32 %v2211_v49, %v2208_v10  ;;  %v8064_v10 = vld [vmem:[%s10397_s9 + $0x60] sm:$0xe]  ;;  %v2954_v49 = vrot.slane %v11183_v23, 5 }
  0xf6   : > { %8932 = vmatprep.mubr.msk.bf16.mxu0 %vm780_vm3, %v12491_v13  ;;  %v7986_v13 = vld [vmem:[%s10397_s9 + $0x3c] sm:$0xf] }
  0xf7   : > { %v11131_v26 = vrot.slane %v2212_v5, 4  ;;  %v2254_v44 = vshrl.u32 %v7986_v13, 16  ;;  %v2257_v40 = vshll.u32 %v7986_v13, 16  ;;  %v2956_v7 = vrot.slane %v2954_v49, 4  ;;  %v11216_v5 = vld [vmem:[%s10397_s9 + $0x80] sm:$0x1] }
  0xf8   : > { %v2273_v13 = vshll.u32 %v11199_v56, 16 }
  0xf9   : > { %v11160_v41 = vrot.slane %v2254_v44, 4  ;;  %v2259_v46 = vrot.slane %v2257_v40, 5  ;;  %v9956_v44 = vld [vmem:[%s10397_s9 + $0x78] sm:$0xff]  }
  0xfd   : > { %8933 = vmatmul.mubr.msk.bf16.gmra.mrb[20].mxu0 %vm780_vm3, %v12492_v22 }
  0xfe   : > { %8936 = vmatprep.mubr.msk.bf16.mxu0 %vm780_vm3, %v12493_v1  ;;  %v11123_v1 = vrot.slane %v2188_v2, 4 }
 0x105   : > { %8937 = vmatmul.mubr.msk.bf16.gmra.mrb[24].mxu0 %vm780_vm3, %v7887_v29  ;;  %v2177_v29 = vshll.u32 %v7976_v52, 16  ;;  %v11144_v52 = vrot.slane %v2236_v28, 4  ;;  %v8066_v28 = vld [vmem:[%s10397_s9 + $0x78] sm:$0xe] }
 0x106   : > { %8940 = vmatprep.mubr.msk.bf16.mxu0 %vm780_vm3, %v7888_v30  ;;  %v7982_v30 = vld [vmem:[%s10397_s9 + $0x2c] sm:$0x1]  ;;  %v8082_v40 = vrot.slane %v8066_v28, 9  ;;  %v8072_v28 = vld [vmem:[%s10397_s9 + $0xc0] sm:$0xe] }
 0x107   : > { %v11107_v38 = vrot.slane %v2177_v29, 5  ;;  %v2225_v36 = vshll.u32 %v7982_v30, 16  ;;  %v2940_v29 = vrot.slane %v11154_v14, 5  ;;  %v8088_v3 = vrot.slane %v8072_v28, 9 }
 0x109   : > { %v11133_v0 = vrot.slane %v2225_v36, 5  ;;  %v2942_v48 = vrot.slane %v2940_v29, 4  ;;  %v8080_v36 = vrot.slane %v8064_v10, 9  ;;  %v9958_v10 = vld [vmem:[%s10397_s9 + $0x90] sm:$0xff]  }
 0x10b   : > { %v11177_v21 = vsel %vm10752_vm6, %v2942_v48, %v2943_v39  ;;  %v11203_v2 = vsel %vm10752_vm6, %v8080_v36, %v2954_v49  ;;  %v2291_v48 = vshrl.u32 %v11154_v14, 16 }
 0x10d   : > { %8941 = vmatmul.mubr.msk.bf16.gmra.mrb[28].mxu0 %vm780_vm3, %v7889_v15  ;;  %v2221_v15 = vrot.slane %v2219_v33, 4 }
 0x10e   : > { %8946 = vmatprep.mubr.msk.bf16.mxu0 %vm780_vm3, %v9946_v31  ;;  %v8062_v31 = vld [vmem:[%s10397_s9 + $0x48] sm:$0xe] }
 0x10f   : > { %v2222_v22 = vor.u32 %v2221_v15, %v11111_v37  ;;  %v8078_v58 = vrot.slane %v8062_v31, 9  ;;  %v11195_v15 = vrot.slane %v2263_v47, 5  ;;  %v9957_v47 = vld [vmem:[%s10397_s9 + $0x84] sm:$0xff]   ;;  %v2287_v31 = vshll.u32 %v11154_v14, 16 }
 0x111   : > { %v11139_v12 = vrot.slane %v2222_v22, 4  ;;  %v11172_v55 = vsel %vm10752_vm6, %v8078_v58, %v2940_v29  ;;  %v11220_v22 = vrot.slane %v2278_v19, 4  ;;  %v11242_v58 = vld [vmem:[%s10397_s9 + $0x94] sm:$0xf]  ;;  %v11248_v19 = vrot.slane %v2273_v13, 5 }
 0x115   : > { %8947 = vmatmul.mubr.msk.bf16.vlgmr.msra.gmra.mrb[0].mxu0 %vm780_vm3, %v9948_v24  ;;  %v9954_v24 = vld [vmem:[%s10397_s9 + $0x60] sm:$0xff]  }
 0x116   : > { %8979 = vmatpush3.bf16.msra.mxu0 %v11024_v51  ;;  %8950 = vmatprep.mubr.msk.bf16.mxu0 %vm780_vm3, %v9949_v17  ;;  %v2245_v51 = vrot.slane %v2243_v50, 4  ;;  %v2269_v17 = vrot.slane %v2267_v42, 4  ;;  %v11207_v50 = vsel %vm10752_vm6, %v2956_v7, %v2957_v27  ;;  %v2260_v42 = vor.u32 %v2259_v46, %v11160_v41 }
 0x117   : > { %9012 = vmatprep.subr.bf16.mxu0 %v11117_v57  ;;  %v2982_v41 = vrot.slane %v11242_v58, 5 }
 0x118   : > { %v2246_v33 = vor.u32 %v2245_v51, %v11135_v54  ;;  %v2971_v51 = vrot.slane %v11216_v5, 5  ;;  %v11255_v49 = vrot.slane %v2260_v42, 4  ;;  %v2270_v13 = vor.u32 %v2269_v17, %v11195_v15 }
 0x11a   : > { %v11189_v63 = vrot.slane %v2246_v33, 4  ;;  %v8068_v33 = vld [vmem:[%s10397_s9 + $0x90] sm:$0xe]  ;;  %v11286_v42 = vrot.slane %v2270_v13, 4  ;;  %v2180_v13 = vsel %vm10436_vm2, %v11105_v60, %v11107_v38  ;;  %v2194_v60 = vsel %vm10436_vm2, %v11123_v1, %v11102_v53 }
 0x11b   : > { %v8084_v27 = vrot.slane %v8068_v33, 9  ;;  %v2204_v38 = vsel %vm10436_vm2, %v11129_v11, %v11125_v8  ;;  %v2242_v1 = vsel %vm10436_vm2, %v11144_v52, %v11135_v54  ;;  %v11365_v8 = vld [vmem:[%s10397_s9 + $0x5c] sm:$0x1]  ;;  %v2335_v54 = vshll.u32 %v11183_v23, 16 }
 0x11c   : > { %v2339_v52 = vshrl.u32 %v11183_v23, 16  ;;  %v2276_v23 = vsel %vm10436_vm2, %v11286_v42, %v11248_v19 }
 0x11d   : > { %8951 = vmatmul.mubr.msk.bf16.gmra.mrb[4].mxu0 %vm780_vm3, %v9950_v45  ;;  %v2968_v45 = vrot.slane %v11213_v18, 5  ;;  %v11262_v7 = vsel %vm10752_vm6, %v8084_v27, %v2982_v41 }
 0x11e   : > { %8954 = vmatprep.mubr.msk.bf16.mxu0 %vm780_vm3, %v9951_v43  ;;  %v2281_v43 = vshll.u32 %v11150_v4, 16  ;;  %v2341_v19 = vrot.slane %v2339_v52, 4 }
 0x11f   : > { %v2970_v29 = vrot.slane %v2968_v45, 4  ;;  %v11231_v39 = vsel %vm10752_vm6, %v8082_v40, %v2968_v45  ;;  %v11273_v45 = vld [vmem:[%s10397_s9 + $0xac] sm:$0xf]  ;;  %v8070_v40 = vld [vmem:[%s10397_s9 + $0xa8] sm:$0xe] }
 0x120   : > { %v11258_v36 = vrot.slane %v2281_v43, 5  ;;  %v2996_v17 = vrot.slane %v11273_v45, 5  ;;  %v8086_v33 = vrot.slane %v8070_v40, 9  ;;  %v11310_v40 = vld [vmem:[%s10397_s9 + $0xc8] sm:$0x1] }
 0x121   : > { %v7995_v43 = vld [vmem:[%s10397_s9 + $0x60] sm:$0xf] }
 0x122   : > { %v11294_v27 = vsel %vm10752_vm6, %v8086_v33, %v2996_v17 }
 0x123   : > { %12494 = vst [vmem:[#allocation13_spill] sm:$0xff] %v11294_v27 }
 0x125   : > { %8955 = vmatmul.mubr.msk.bf16.gmra.mrb[8].mxu0 %vm780_vm3, %v9952_v35  ;;  %v11235_v35 = vsel %vm10752_vm6, %v2970_v29, %v2971_v51  ;;  %v11276_v51 = vld [vmem:[%s10397_s9 + $0xb0] sm:$0x1]  ;;  %v9960_v29 = vld [vmem:[%s10397_s9 + $0xa8] sm:$0xff]  }
 0x126   : > { %8958 = vmatprep.mubr.msk.bf16.mxu0 %vm780_vm3, %v9953_v6  ;;  %v11245_v6 = vld [vmem:[%s10397_s9 + $0x98] sm:$0x1] }
 0x127   : > { %v2985_v46 = vrot.slane %v11245_v6, 5 }
 0x12d   : > { %8959 = vmatmul.mubr.msk.bf16.gmra.mrb[12].mxu0 %vm780_vm3, %v9954_v24  ;;  %v9959_v24 = vld [vmem:[%s10397_s9 + $0x9c] sm:$0xff]  }
 0x12e   : > { %8962 = vmatprep.mubr.msk.bf16.mxu0 %vm780_vm3, %v9955_v16  ;;  %v2984_v16 = vrot.slane %v2982_v41, 4  ;;  %v9961_v41 = vld [vmem:[%s10397_s9 + $0xb4] sm:$0xff]  }
 0x130   : > { %v11266_v14 = vsel %vm10752_vm6, %v2984_v16, %v2985_v46  ;;  %v11289_v46 = vrot.slane %v2291_v48, 4  ;;  %v11307_v48 = vld [vmem:[%s10397_s9 + $0xc4] sm:$0xf] }
 0x131   : > { %v3010_v4 = vrot.slane %v11307_v48, 5 }
 0x133   : > { %v3012_v30 = vrot.slane %v3010_v4, 4 }
 0x135   : > { %8963 = vmatmul.mubr.msk.bf16.gmra.mrb[16].mxu0 %vm780_vm3, %v9956_v44  ;;  %v11279_v44 = vrot.slane %v2287_v31, 5  ;;  %v2998_v31 = vrot.slane %v2996_v17, 4 }
 0x136   : > { %8966 = vmatprep.mubr.msk.bf16.mxu0 %vm780_vm3, %v9957_v47  ;;  %v2999_v47 = vrot.slane %v11276_v51, 5 }
 0x138   : > { %v11301_v16 = vsel %vm10752_vm6, %v2998_v31, %v2999_v47  ;;  %v3013_v47 = vrot.slane %v11310_v40, 5  ;;  %v9962_v31 = vld [vmem:[%s10397_s9 + $0xc0] sm:$0xff]  }
 0x139   : > { %12495 = vst [vmem:[#allocation14_spill] sm:$0xff] %v11301_v16  ;;  %v11330_v16 = vsel %vm10752_vm6, %v8088_v3, %v3010_v4  ;;  %v2228_v3 = vsel %vm10436_vm2, %v11139_v12, %v11133_v0  ;;  %v2284_v0 = vor.u32 %v11258_v36, %v11220_v22  ;;  %v8025_v12 = vcombine.low %v2194_v60, %v2204_v38  ;;  %v8001_v38 = vld [vmem:[%s10397_s9 + $0x78] sm:$0xf] }
 0x13a   : > { %v2321_v36 = vshll.u32 %v11365_v8, 16 }
 0x13d   : > { %8967 = vmatmul.mubr.msk.bf16.gmra.mrb[20].mxu0 %vm780_vm3, %v9958_v10  ;;  %v7992_v10 = vld [vmem:[%s10397_s9 + $0x54] sm:$0xf] }
 0x13e   : > { %8970 = vmatprep.mubr.msk.bf16.mxu0 %vm780_vm3, %v9959_v24  ;;  %v11297_v24 = vld [vmem:[%s10397_s9 + $0x58] sm:$0xf]  ;;  %v2302_v17 = vshrl.u32 %v7992_v10, 16  ;;  %v2305_v33 = vshll.u32 %v7992_v10, 16 }
 0x13f   : > { %v2315_v10 = vshrl.u32 %v11297_v24, 16 }
 0x140   : > { %v2304_v4 = vrot.slane %v2302_v17, 4  ;;  %v2307_v53 = vrot.slane %v2305_v33, 5  ;;  %v2294_v33 = vor.u32 %v11289_v46, %v11279_v44 }
 0x141   : > { %v2317_v28 = vrot.slane %v2315_v10, 4 }
 0x142   : > { %v2308_v22 = vor.u32 %v2307_v53, %v2304_v4  ;;  %v2323_v53 = vrot.slane %v2321_v36, 5 }
 0x144   : > { %v2309_v4 = vrot.slane %v2308_v22, 4 }
 0x145   : > { %8971 = vmatmul.mubr.msk.bf16.gmra.mrb[24].mxu0 %vm780_vm3, %v9960_v29  ;;  %v2170_v29 = vsel %vm10436_vm2, %v11100_v9, %v11082_v62  ;;  %v11334_v62 = vsel %vm10752_vm6, %v3012_v30, %v3013_v47  ;;  %v2218_v30 = vsel %vm10436_vm2, %v11131_v26, %v11111_v37  ;;  %v2252_v37 = vsel %vm10436_vm2, %v11189_v63, %v11141_v59  ;;  %v7998_v59 = vld [vmem:[%s10397_s9 + $0x6c] sm:$0xf] }
 0x146   : > { %8974 = vmatprep.mubr.msk.bf16.mxu0 %vm780_vm3, %v9961_v41  ;;  %v2311_v41 = vshll.u32 %v11297_v24, 16  ;;  %v8024_v27 = vcombine.low %v2170_v29, %v2180_v13  ;;  %v8106_v9 = vcombine.low %v11330_v16, %v11334_v62  ;;  %v2326_v26 = vshrl.u32 %v7995_v43, 16  ;;  %v9969_v16 = vld [vmem:[%s10397_s9 + $0x3c] sm:$0xff]   ;;  %v9970_v62 = vld [vmem:[%s10397_s9 + $0x48] sm:$0xff]  }
 0x147   : > { %v8026_v13 = vcombine.low %v2218_v30, %v2228_v3  ;;  %v8027_v17 = vcombine.low %v2242_v1, %v2252_v37  ;;  %v2266_v63 = vsel %vm10436_vm2, %v11255_v49, %v11195_v15  ;;  %v2285_v47 = vrot.slane %v2284_v0, 4  ;;  %v11393_v15 = vld [vmem:[%s12420_s1 + $0x30] sm:$0xff]  }
 0x148   : > { %v11367_v11 = vrot.slane %v2311_v41, 5  ;;  %v2328_v41 = vrot.slane %v2326_v26, 4  ;;  %v2350_v10 = vshrl.u32 %v7998_v59, 16  ;;  %v2353_v60 = vshll.u32 %v7998_v59, 16  ;;  %v11410_v59 = vld [vmem:[%s10397_s9 + $0x74] sm:$0x1] }
 0x149   : > { %v11398_v30 = vrot.slane %v2335_v54, 5  ;;  %v2295_v3 = vrot.slane %v2294_v33, 4  ;;  %v2345_v1 = vshll.u32 %v11186_v32, 16  ;;  %v2374_v37 = vshrl.u32 %v8001_v38, 16 }
 0x14a   : > { %v2318_v49 = vor.u32 %v2317_v28, %v11367_v11  ;;  %v2377_v26 = vshll.u32 %v8001_v38, 16  ;;  %v2383_v0 = vshll.u32 %v11213_v18, 16  ;;  %v8028_v54 = vcombine.low %v2266_v63, %v2276_v23  ;;  %v8004_v63 = vld [vmem:[%s10397_s9 + $0x84] sm:$0xf] }
 0x14b   : > { %v2342_v52 = vor.u32 %v2341_v19, %v11398_v30  ;;  %v2290_v22 = vsel %vm10436_vm2, %v2285_v47, %v11279_v44  ;;  %v2314_v36 = vsel %vm10436_vm2, %v2309_v4, %v11367_v11  ;;  %v2376_v23 = vrot.slane %v2374_v37, 4 }
 0x14c   : > { %v2319_v28 = vrot.slane %v2318_v49, 4  ;;  %v11425_v49 = vrot.slane %v2383_v0, 5  ;;  %v2398_v19 = vshrl.u32 %v8004_v63, 16  ;;  %v2393_v37 = vshll.u32 %v11216_v5, 16 }
 0x14d   : > { %8975 = vmatmul.mubr.msk.bf16.gmra.mrb[28].mxu0 %vm780_vm3, %v9962_v31  ;;  %v12496_v31 = vshll.u32 %v11157_v34, 16  ;;  %v2343_v11 = vrot.slane %v2342_v52, 4 }
 0x14e   : > { %8980 = vmatprep.mubr.msk.bf16.mxu0 %vm780_vm3, %v8024_v27  ;;  %v2329_v27 = vshll.u32 %v7995_v43, 16  ;;  %v11382_v43 = vld [vmem:[%s10397_s9 + $0x70] sm:$0xf]  ;;  %v2324_v44 = vsel %vm10436_vm2, %v2319_v28, %v2323_v53 }
 0x14f   : > { %v2299_v29 = vrot.slane %v12496_v31, 5  ;;  %v2359_v34 = vshll.u32 %v11382_v43, 16  ;;  %v2363_v42 = vshrl.u32 %v11382_v43, 16  ;;  %v11422_v31 = vrot.slane %v2345_v1, 5 }
 0x150   : > { %v2331_v46 = vrot.slane %v2329_v27, 5 }
 0x151   : > { %v11412_v32 = vrot.slane %v2359_v34, 5  ;;  %v2365_v33 = vrot.slane %v2363_v42, 4  ;;  %v2401_v34 = vshll.u32 %v8004_v63, 16  ;;  %v11454_v63 = vld [vmem:[%s10397_s9 + $0xa0] sm:$0xf] }
 0x152   : > { %v2332_v27 = vor.u32 %v2331_v46, %v2328_v41  ;;  %v2379_v41 = vrot.slane %v2377_v26, 5  ;;  %v8030_v26 = vcombine.low %v2314_v36, %v2324_v44  ;;  %v2431_v44 = vshll.u32 %v11242_v58, 16 }
 0x153   : > { %v2366_v38 = vor.u32 %v2365_v33, %v11412_v32  ;;  %v2403_v52 = vrot.slane %v2401_v34, 5  ;;  %v8010_v33 = vld [vmem:[%s10397_s9 + $0x9c] sm:$0xf] }
 0x154   : > { %v2333_v47 = vrot.slane %v2332_v27, 4  ;;  %v2380_v53 = vor.u32 %v2379_v41, %v2376_v23  ;;  %v11445_v27 = vld [vmem:[%s10397_s9 + $0x8c] sm:$0x1]  ;;  %v2395_v41 = vrot.slane %v2393_v37, 5 }
 0x155   : > { %8981 = vmatmul.mubr.msk.bf16.vlgmr.msra.gmra.mrb[0].mxu0 %vm780_vm3, %v8025_v12  ;;  %v2387_v12 = vshrl.u32 %v11213_v18, 16  ;;  %v2300_v18 = vsel %vm10436_vm2, %v2295_v3, %v2299_v29 }
 0x156   : > { %9013 = vmatpush3.bf16.msra.mxu0 %v11117_v57  ;;  %8984 = vmatprep.mubr.msk.bf16.mxu0 %vm780_vm3, %v8026_v13  ;;  %v2352_v57 = vrot.slane %v2350_v10, 4  ;;  %v2355_v13 = vrot.slane %v2353_v60, 5  ;;  %v11428_v10 = vld [vmem:[%s10397_s9 + $0x88] sm:$0xf]  ;;  %v2369_v60 = vshll.u32 %v11410_v59, 16  ;;  %v8029_v4 = vcombine.low %v2290_v22, %v2300_v18 }
 0x157   : > { %9046 = vmatprep.subr.bf16.mxu0 %v11393_v15  ;;  %v2389_v46 = vrot.slane %v2387_v12, 4  ;;  %v2407_v42 = vshll.u32 %v11428_v10, 16  ;;  %v2411_v3 = vshrl.u32 %v11428_v10, 16  ;;  %v2338_v0 = vsel %vm10436_vm2, %v2333_v47, %v11398_v30 }
 0x158   : > { %v2356_v29 = vor.u32 %v2355_v13, %v2352_v57  ;;  %v2371_v28 = vrot.slane %v2369_v60, 5  ;;  %v2348_v57 = vsel %vm10436_vm2, %v2343_v11, %v11422_v31  ;;  %v2367_v13 = vrot.slane %v2366_v38, 4 }
 0x159   : > { %v2390_v1 = vor.u32 %v2389_v46, %v11425_v49  ;;  %v11451_v5 = vrot.slane %v2407_v42, 5  ;;  %v2413_v22 = vrot.slane %v2411_v3, 4  ;;  %v2381_v30 = vrot.slane %v2380_v53, 4 }
 0x15a   : > { %v2357_v12 = vrot.slane %v2356_v29, 4  ;;  %v2417_v46 = vshll.u32 %v11445_v27, 16  ;;  %v2435_v31 = vshrl.u32 %v11242_v58, 16  ;;  %v2446_v47 = vshrl.u32 %v8010_v33, 16 }
 0x15b   : > { %v2391_v23 = vrot.slane %v2390_v1, 4  ;;  %v2449_v29 = vshll.u32 %v8010_v33, 16  ;;  %v2372_v11 = vsel %vm10436_vm2, %v2367_v13, %v2371_v28  ;;  %v2455_v38 = vshll.u32 %v11454_v63, 16  ;;  %v11477_v13 = vld [vmem:[%s10397_s9 + $0xa4] sm:$0x1] }
 0x15c   : > { %v2362_v60 = vsel %vm10436_vm2, %v2357_v12, %v11412_v32  ;;  %v2414_v58 = vor.u32 %v2413_v22, %v11451_v5  ;;  %v2386_v32 = vsel %vm10436_vm2, %v2381_v30, %v11425_v49  ;;  %v2419_v53 = vrot.slane %v2417_v46, 5  ;;  %v8013_v33 = vld [vmem:[%s10397_s9 + $0xa8] sm:$0xf] }
 0x15d   : > { %8985 = vmatmul.mubr.msk.bf16.gmra.mrb[4].mxu0 %vm780_vm3, %v8027_v17  ;;  %v8007_v17 = vld [vmem:[%s10397_s9 + $0x90] sm:$0xf]  ;;  %v11474_v1 = vrot.slane %v2431_v44, 5  ;;  %v2437_v37 = vrot.slane %v2435_v31, 4  ;;  %v2451_v12 = vrot.slane %v2449_v29, 5  ;;  %v8032_v28 = vcombine.low %v2362_v60, %v2372_v11 }
 0x15e   : > { %8988 = vmatprep.mubr.msk.bf16.mxu0 %vm780_vm3, %v8028_v54  ;;  %v2400_v54 = vrot.slane %v2398_v19, 4  ;;  %v2422_v18 = vshrl.u32 %v8007_v17, 16  ;;  %v2425_v36 = vshll.u32 %v8007_v17, 16  ;;  %v2459_v19 = vshrl.u32 %v11454_v63, 16 }
 0x15f   : > { %v2448_v17 = vrot.slane %v2446_v47, 4  ;;  %v2415_v49 = vrot.slane %v2414_v58, 4  ;;  %v2465_v46 = vshll.u32 %v11477_v13, 16  ;;  %v2470_v44 = vshrl.u32 %v8013_v33, 16 }
 0x160   : > { %v2404_v34 = vor.u32 %v2403_v52, %v2400_v54  ;;  %v2424_v42 = vrot.slane %v2422_v18, 4  ;;  %v2427_v3 = vrot.slane %v2425_v36, 5  ;;  %v2457_v54 = vrot.slane %v2455_v38, 5 }
 0x161   : > { %v2461_v52 = vrot.slane %v2459_v19, 4  ;;  %v2441_v36 = vshll.u32 %v11245_v6, 16  ;;  %v2473_v47 = vshll.u32 %v8013_v33, 16  ;;  %v2479_v29 = vshll.u32 %v11273_v45, 16 }
 0x162   : > { %v2405_v22 = vrot.slane %v2404_v34, 4  ;;  %v2428_v18 = vor.u32 %v2427_v3, %v2424_v42  ;;  %v2483_v60 = vshrl.u32 %v11273_v45, 16  ;;  %v2420_v11 = vsel %vm10436_vm2, %v2415_v49, %v2419_v53  ;;  %v8019_v49 = vld [vmem:[%s10397_s9 + $0xc0] sm:$0xf] }
 0x163   : > { %v2462_v31 = vor.u32 %v2461_v52, %v2457_v54  ;;  %v2443_v19 = vrot.slane %v2441_v36, 5 }
 0x164   : > { %v2410_v6 = vsel %vm10436_vm2, %v2405_v22, %v11451_v5  ;;  %v2429_v38 = vrot.slane %v2428_v18, 4  ;;  %v2481_v5 = vrot.slane %v2479_v29, 5  ;;  %v2527_v29 = vshll.u32 %v11307_v48, 16 }
 0x165   : > { %8989 = vmatmul.mubr.msk.bf16.gmra.mrb[8].mxu0 %vm780_vm3, %v8029_v4  ;;  %v2396_v4 = vsel %vm10436_vm2, %v2391_v23, %v2395_v41  ;;  %v2438_v23 = vor.u32 %v2437_v37, %v11474_v1  ;;  %v2452_v41 = vor.u32 %v2451_v12, %v2448_v17  ;;  %v2472_v37 = vrot.slane %v2470_v44, 4 }
 0x166   : > { %8992 = vmatprep.mubr.msk.bf16.mxu0 %vm780_vm3, %v8030_v26  ;;  %v8031_v26 = vcombine.low %v2338_v0, %v2348_v57  ;;  %v8033_v30 = vcombine.low %v2386_v32, %v2396_v4  ;;  %v8016_v0 = vld [vmem:[%s10397_s9 + $0xb4] sm:$0xf]  ;;  %v11485_v57 = vld [vmem:[%s10397_s9 + $0xb8] sm:$0xf]  ;;  %v2467_v4 = vrot.slane %v2465_v46, 5  ;;  %v2463_v17 = vrot.slane %v2462_v31, 4 }
 0x167   : > { %v2494_v34 = vshrl.u32 %v8016_v0, 16  ;;  %v2497_v58 = vshll.u32 %v8016_v0, 16  ;;  %v2503_v42 = vshll.u32 %v11485_v57, 16  ;;  %v2507_v3 = vshrl.u32 %v11485_v57, 16 }
 0x168   : > { %v2439_v32 = vrot.slane %v2438_v23, 4  ;;  %v2453_v45 = vrot.slane %v2452_v41, 4  ;;  %v2475_v12 = vrot.slane %v2473_v47, 5  ;;  %v2434_v18 = vsel %vm10436_vm2, %v2429_v38, %v11474_v1  ;;  %v11506_v41 = vld [vmem:[%s10397_s9 + $0xbc] sm:$0x1] }
 0x169   : > { %v2496_v53 = vrot.slane %v2494_v34, 4  ;;  %v2499_v52 = vrot.slane %v2497_v58, 5  ;;  %v2505_v33 = vrot.slane %v2503_v42, 5  ;;  %v2509_v22 = vrot.slane %v2507_v3, 4 }
 0x16a   : > { %v2444_v36 = vsel %vm10436_vm2, %v2439_v32, %v2443_v19  ;;  %v2489_v23 = vshll.u32 %v11276_v51, 16  ;;  %v2458_v46 = vsel %vm10436_vm2, %v2453_v45, %v2457_v54  ;;  %v2468_v44 = vsel %vm10436_vm2, %v2463_v17, %v2467_v4 }
 0x16b   : > { %v2476_v0 = vor.u32 %v2475_v12, %v2472_v37  ;;  %v2518_v1 = vshrl.u32 %v8019_v49, 16  ;;  %v2521_v47 = vshll.u32 %v8019_v49, 16  ;;  %v2531_v51 = vshrl.u32 %v11307_v48, 16 }
 0x16c   : > { %v8036_v38 = vcombine.low %v2458_v46, %v2468_v44  ;;  %v2491_v34 = vrot.slane %v2489_v23, 5  ;;  %v2529_v3 = vrot.slane %v2527_v29, 5  ;;  %v10133_v29 = vld [vmem:[%s10397_s9 + $0x1c] sm:$0xf] }
 0x16d   : > { %8993 = vmatmul.mubr.msk.bf16.gmra.mrb[12].mxu0 %vm780_vm3, %v8031_v26  ;;  %v2485_v26 = vrot.slane %v2483_v60, 4  ;;  %v2500_v60 = vor.u32 %v2499_v52, %v2496_v53  ;;  %v2477_v54 = vrot.slane %v2476_v0, 4  ;;  %v2520_v58 = vrot.slane %v2518_v1, 4 }
 0x16e   : > { %8996 = vmatprep.mubr.msk.bf16.mxu0 %vm780_vm3, %v8032_v28  ;;  %v8034_v28 = vcombine.low %v2410_v6, %v2420_v11  ;;  %v2510_v6 = vor.u32 %v2509_v22, %v2505_v33  ;;  %v8035_v11 = vcombine.low %v2434_v18, %v2444_v36  ;;  %v2523_v42 = vrot.slane %v2521_v47, 5  ;;  %v10131_v22 = vld [vmem:[%s10397_s9 + $0x10] sm:$0xf] }
 0x16f   : > { %v2486_v31 = vor.u32 %v2485_v26, %v2481_v5  ;;  %v2533_v32 = vrot.slane %v2531_v51, 4  ;;  %v2501_v45 = vrot.slane %v2500_v60, 4  ;;  %v2482_v48 = vsel %vm10436_vm2, %v2477_v54, %v2481_v5  ;;  %v8057_v5 = vld [vmem:[%s10397_s9 + $0xc] sm:$0xe]  ;;  %v8059_v54 = vld [vmem:[%s10397_s9 + $0x24] sm:$0xe] }
 0x170   : > { %v2511_v4 = vrot.slane %v2510_v6, 4  ;;  %v2524_v12 = vor.u32 %v2523_v42, %v2520_v58  ;;  %v2905_v49 = vrot.slane %v10131_v22, 5  ;;  %v8073_v0 = vrot.slane %v8057_v5, 9  ;;  %v8060_v22 = vld [vmem:[%s10397_s9 + $0x30] sm:$0xe] }
 0x171   : > { %v2487_v19 = vrot.slane %v2486_v31, 4  ;;  %v2534_v26 = vor.u32 %v2533_v32, %v2529_v3  ;;  %v2506_v53 = vsel %vm10436_vm2, %v2501_v45, %v2505_v33  ;;  %v10132_v31 = vld [vmem:[%s10397_s9 + $0x14] sm:$0x1]  ;;  %v2912_v51 = vrot.slane %v10133_v29, 5  ;;  %v8061_v5 = vld [vmem:[%s10397_s9 + $0x3c] sm:$0xe] }
 0x172   : > { %v2525_v23 = vrot.slane %v2524_v12, 4  ;;  %v2908_v1 = vrot.slane %v10132_v31, 5  ;;  %v2906_v60 = vsel %vm10752_vm6, %v8073_v0, %v2905_v49  ;;  %v8075_v45 = vrot.slane %v8059_v54, 9 }
 0x173   : > { %v2492_v17 = vsel %vm10436_vm2, %v2487_v19, %v2491_v34  ;;  %v2535_v46 = vrot.slane %v2534_v26, 4  ;;  %v2914_v42 = vrot.slane %v2912_v51, 4  ;;  %v10137_v26 = vld [vmem:[%s10397_s9 + $0x34] sm:$0xf] }
 0x174   : > { %v8037_v18 = vcombine.low %v2482_v48, %v2492_v17  ;;  %v2530_v33 = vsel %vm10436_vm2, %v2525_v23, %v2529_v3  ;;  %v10135_v3 = vld [vmem:[%s10397_s9 + $0x20] sm:$0x1]  ;;  %v8076_v23 = vrot.slane %v8060_v22, 9  ;;  %v2992_v22 = vrot.slane %v11477_v13, 5 }
 0x175   : > { %8997 = vmatmul.mubr.msk.bf16.gmra.mrb[16].mxu0 %vm780_vm3, %v8033_v30  ;;  %v2513_v30 = vshll.u32 %v11506_v41, 16  ;;  %v2915_v32 = vrot.slane %v10135_v3, 5 }
 0x176   : > { %9000 = vmatprep.mubr.msk.bf16.mxu0 %vm780_vm3, %v8034_v28  ;;  %v2537_v28 = vshll.u32 %v11310_v40, 16  ;;  %v2907_v40 = vrot.slane %v2905_v49, 4  ;;  %v2933_v49 = vrot.slane %v11147_v61, 5 }
 0x177   : > { %v2515_v37 = vrot.slane %v2513_v30, 5  ;;  %v8058_v30 = vld [vmem:[%s10397_s9 + $0x18] sm:$0xe]  ;;  %v2916_v12 = vsel %vm10752_vm6, %v2914_v42, %v2915_v32  ;;  %v2964_v32 = vrot.slane %v11410_v59, 5 }
 0x178   : > { %v2539_v44 = vrot.slane %v2537_v28, 5  ;;  %v2909_v6 = vsel %vm10752_vm6, %v2907_v40, %v2908_v1  ;;  %v8074_v58 = vrot.slane %v8058_v30, 9  ;;  %v2926_v28 = vrot.slane %v10137_v26, 5 }
 0x179   : > { %v2516_v52 = vsel %vm10436_vm2, %v2511_v4, %v2515_v37  ;;  %v8091_v34 = vcombine.low %v2906_v60, %v2909_v6  ;;  %v10136_v37 = vld [vmem:[%s10397_s9 + $0x2c] sm:$0x1]  ;;  %v8077_v40 = vrot.slane %v8061_v5, 9  ;;  %v2935_v31 = vrot.slane %v2933_v49, 4  ;;  %v8071_v5 = vld [vmem:[%s10397_s9 + $0xb4] sm:$0xe] }
 0x17a   : > { %v8038_v36 = vcombine.low %v2506_v53, %v2516_v52  ;;  %v2540_v47 = vsel %vm10436_vm2, %v2535_v46, %v2539_v44  ;;  %v2922_v48 = vrot.slane %v10136_v37, 5  ;;  %v2913_v17 = vsel %vm10752_vm6, %v8074_v58, %v2912_v51  ;;  %v10138_v44 = vld [vmem:[%s10397_s9 + $0x38] sm:$0x1]  ;;  %v8067_v37 = vld [vmem:[%s10397_s9 + $0x84] sm:$0xe] }
 0x17b   : > { %v8039_v19 = vcombine.low %v2530_v33, %v2540_v47  ;;  %v2928_v46 = vrot.slane %v2926_v28, 4  ;;  %v2929_v0 = vrot.slane %v10138_v44, 5  ;;  %v2936_v1 = vrot.slane %v11199_v56, 5  ;;  %v11566_v33 = vld [vmem:[%s12420_s1 + $0x38] sm:$0xff]   ;;  %v12501_v44 = vld [vmem:[#allocation13_spill] sm:$0xff] }
 0x17c   : > { %v2927_v61 = vsel %vm10752_vm6, %v8076_v23, %v2926_v28  ;;  %v2934_v56 = vsel %vm10752_vm6, %v8077_v40, %v2933_v49  ;;  %v2947_v51 = vrot.slane %v11297_v24, 5  ;;  %v2989_v26 = vrot.slane %v11454_v63, 5  ;;  %v8069_v28 = vld [vmem:[%s10397_s9 + $0x9c] sm:$0xe] }
 0x17d   : > { %9001 = vmatmul.mubr.msk.bf16.gmra.mrb[20].mxu0 %vm780_vm3, %v8035_v11  ;;  %v10134_v11 = vld [vmem:[%s10397_s9 + $0x28] sm:$0xf]  ;;  %v2930_v47 = vsel %vm10752_vm6, %v2928_v46, %v2929_v0  ;;  %v2937_v29 = vsel %vm10752_vm6, %v2935_v31, %v2936_v1  ;;  %v3003_v49 = vrot.slane %v11485_v57, 5  ;;  %v11653_v31 = vld [vmem:[%s12420_s1 + $0x40] sm:$0xff]   ;;  %v11666_v1 = vld [vmem:[%s10397_s9 + $0x5c] sm:$0x1] }
 0x17e   : > { %9004 = vmatprep.mubr.msk.bf16.mxu0 %vm780_vm3, %v8036_v38  ;;  %v2919_v38 = vrot.slane %v10134_v11, 5  ;;  %v8094_v60 = vcombine.low %v2927_v61, %v2930_v47  ;;  %v8095_v6 = vcombine.low %v2934_v56, %v2937_v29  ;;  %v2949_v11 = vrot.slane %v2947_v51, 4  ;;  %v12502_v0 = vld [vmem:[#allocation14_spill] sm:$0xff]  ;;  %v8279_v61 = vld [vmem:[%s10397_s9 + $0x54] sm:$0xe] }
 0x17f   : > { %v12503_v40 = vcombine.low %v12501_v44, %v12502_v0  ;;  %v4510_v47 = vrot.slane %v11666_v1, 5  ;;  %v8295_v56 = vrot.slane %v8279_v61, 9  ;;  %v8197_v0 = vld [vmem:[%s10397_s9 + $0x30] sm:$0xf]  ;;  %v11755_v61 = vld [vmem:[%s10397_s9 + $0x34] sm:$0xf] }
 0x180   : > { %v2921_v4 = vrot.slane %v2919_v38, 4  ;;  %v2920_v53 = vsel %vm10752_vm6, %v8075_v45, %v2919_v38  ;;  %v2950_v38 = vrot.slane %v11365_v8, 5  ;;  %v12497_v8 = vcombine.low %v11172_v55, %v11177_v21 }
 0x181   : > { %v12498_v55 = vcombine.low %v11203_v2, %v11207_v50  ;;  %v12499_v2 = vcombine.low %v11231_v39, %v11235_v35  ;;  %v3006_v39 = vrot.slane %v11506_v41, 5  ;;  %v12500_v35 = vcombine.low %v11262_v7, %v11266_v14  ;;  %v9965_v7 = vld [vmem:[%s10397_s9 + $0x18] sm:$0xff]   ;;  %v9967_v14 = vld [vmem:[%s10397_s9 + $0x24] sm:$0xff]   ;;  %v9968_v41 = vld [vmem:[%s10397_s9 + $0x30] sm:$0xff]  }
 0x182   : > { %v2923_v52 = vsel %vm10752_vm6, %v2921_v4, %v2922_v48  ;;  %v2951_v24 = vsel %vm10752_vm6, %v2949_v11, %v2950_v38  ;;  %v2975_v4 = vrot.slane %v11428_v10, 5  ;;  %v11686_v11 = vld [vmem:[%s10397_s9 + $0x70] sm:$0xf]  ;;  %v11689_v38 = vld [vmem:[%s10397_s9 + $0x74] sm:$0x1] }
 0x184   : > { %v2977_v59 = vrot.slane %v2975_v4, 4 }
 0x185   : > { %9005 = vmatmul.mubr.msk.bf16.gmra.mrb[24].mxu0 %vm780_vm3, %v8037_v18  ;;  %v8092_v18 = vcombine.low %v2913_v17, %v2916_v12  ;;  %v8083_v17 = vrot.slane %v8067_v37, 9  ;;  %v2978_v12 = vrot.slane %v11445_v27, 5  ;;  %v2991_v27 = vrot.slane %v2989_v26, 4  ;;  %v11854_v37 = vld [vmem:[%s10397_s9 + $0xd0] sm:$0xf] }
 0x186   : > { %9008 = vmatprep.mubr.msk.bf16.mxu0 %vm780_vm3, %v8038_v36  ;;  %v8093_v36 = vcombine.low %v2920_v53, %v2923_v52  ;;  %v8085_v52 = vrot.slane %v8069_v28, 9  ;;  %v8283_v28 = vld [vmem:[%s10397_s9 + $0x84] sm:$0xe] }
 0x187   : > { %v2976_v21 = vsel %vm10752_vm6, %v8083_v17, %v2975_v4  ;;  %v2979_v10 = vsel %vm10752_vm6, %v2977_v59, %v2978_v12  ;;  %v2993_v63 = vsel %vm10752_vm6, %v2991_v27, %v2992_v22  ;;  %v8299_v27 = vrot.slane %v8283_v28, 9  ;;  %v9978_v28 = vld [vmem:[%s10397_s9 + $0xa8] sm:$0xff]  }
 0x188   : > { %v8101_v53 = vcombine.low %v2976_v21, %v2979_v10  ;;  %v2990_v50 = vsel %vm10752_vm6, %v8085_v52, %v2989_v26  ;;  %v11716_v10 = vld [vmem:[%s10397_s9 + $0x88] sm:$0xf]  ;;  %v11719_v26 = vld [vmem:[%s10397_s9 + $0x8c] sm:$0x1] }
 0x189   : > { %v8103_v13 = vcombine.low %v2990_v50, %v2993_v63  ;;  %v4538_v52 = vrot.slane %v11719_v26, 5  ;;  %v11728_v63 = vld [vmem:[%s10397_s9 + $0x28] sm:$0xf] }
 0x18a   : > { %v3762_v44 = vshrl.u32 %v11728_v63, 16 }
 0x18d   : > { %9009 = vmatmul.mubr.msk.bf16.gmra.mrb[28].mxu0 %vm780_vm3, %v8039_v19  ;;  %v2961_v19 = vrot.slane %v11382_v43, 5 }
 0x18e   : > { %9014 = vmatprep.mubr.msk.bf16.mxu0 %vm780_vm3, %v8091_v34  ;;  %v8065_v34 = vld [vmem:[%s10397_s9 + $0x6c] sm:$0xe] }
 0x18f   : > { %v8081_v42 = vrot.slane %v8065_v34, 9  ;;  %v2963_v3 = vrot.slane %v2961_v19, 4 }
 0x191   : > { %v2962_v45 = vsel %vm10752_vm6, %v8081_v42, %v2961_v19  ;;  %v2965_v43 = vsel %vm10752_vm6, %v2963_v3, %v2964_v32  ;;  %v4524_v19 = vrot.slane %v11689_v38, 5  ;;  %v9973_v42 = vld [vmem:[%s10397_s9 + $0x6c] sm:$0xff]   ;;  %v8191_v3 = vld [vmem:[%s10397_s9 + $0x18] sm:$0xf]  ;;  %v11698_v32 = vld [vmem:[%s10397_s9 + $0x1c] sm:$0xf] }
 0x192   : > { %v8099_v48 = vcombine.low %v2962_v45, %v2965_v43  ;;  %v9974_v45 = vld [vmem:[%s10397_s9 + $0x78] sm:$0xff]   ;;  %v8194_v43 = vld [vmem:[%s10397_s9 + $0x24] sm:$0xf]  ;;  %v3728_v17 = vshll.u32 %v8191_v3, 16  ;;  %v3734_v59 = vshll.u32 %v11698_v32, 16  ;;  %v3738_v12 = vshrl.u32 %v11698_v32, 16 }
 0x193   : > { %v3752_v21 = vshll.u32 %v8194_v43, 16 }
 0x194   : > { %v11725_v50 = vrot.slane %v3734_v59, 5 }
 0x195   : > { %9015 = vmatmul.mubr.msk.bf16.vlgmr.msra.gmra.mrb[0].mxu0 %vm780_vm3, %v8092_v18  ;;  %v8087_v18 = vrot.slane %v8071_v5, 9  ;;  %v9975_v5 = vld [vmem:[%s10397_s9 + $0x84] sm:$0xff]  }
 0x196   : > { %9047 = vmatpush3.bf16.msra.mxu0 %v11393_v15  ;;  %9018 = vmatprep.mubr.msk.bf16.mxu0 %vm780_vm3, %v8093_v36  ;;  %v8063_v15 = vld [vmem:[%s10397_s9 + $0x54] sm:$0xe]  ;;  %v3005_v36 = vrot.slane %v3003_v49, 4 }
 0x197   : > { %9080 = vmatprep.subr.bf16.mxu0 %v11566_v33  ;;  %v8079_v30 = vrot.slane %v8063_v15, 9  ;;  %v3004_v23 = vsel %vm10752_vm6, %v8087_v18, %v3003_v49  ;;  %v3740_v18 = vrot.slane %v3738_v12, 4 }
 0x198   : > { %v3007_v57 = vsel %vm10752_vm6, %v3005_v36, %v3006_v39  ;;  %v3754_v39 = vrot.slane %v3752_v21, 5 }
 0x199   : > { %v2948_v54 = vsel %vm10752_vm6, %v8079_v30, %v2947_v51  ;;  %v8105_v46 = vcombine.low %v3004_v23, %v3007_v57  ;;  %v9971_v51 = vld [vmem:[%s10397_s9 + $0x54] sm:$0xff]  }
 0x19a   : > { %v8097_v58 = vcombine.low %v2948_v54, %v2951_v24  ;;  %v8281_v54 = vld [vmem:[%s10397_s9 + $0x6c] sm:$0xe]  ;;  %v4521_v24 = vrot.slane %v11686_v11, 5  ;;  %v9976_v23 = vld [vmem:[%s10397_s9 + $0x90] sm:$0xff]  }
 0x19b   : > { %v8297_v34 = vrot.slane %v8281_v54, 9  ;;  %v11857_v30 = vld [vmem:[%s10397_s9 + $0xd4] sm:$0x1] }
 0x19d   : > { %9019 = vmatmul.mubr.msk.bf16.gmra.mrb[4].mxu0 %vm780_vm3, %v8094_v60  ;;  %v9972_v60 = vld [vmem:[%s10397_s9 + $0x60] sm:$0xff]  }
 0x19e   : > { %9022 = vmatprep.mubr.msk.bf16.mxu0 %vm780_vm3, %v8095_v6 }
 0x1a5   : > { %9023 = vmatmul.mubr.msk.bf16.gmra.mrb[8].mxu0 %vm780_vm3, %v12497_v8  ;;  %v11702_v8 = vsel %vm10752_vm6, %v8297_v34, %v4521_v24  ;;  %v8200_v34 = vld [vmem:[%s10397_s9 + $0x3c] sm:$0xf] }
 0x1a6   : > { %9026 = vmatprep.mubr.msk.bf16.mxu0 %vm780_vm3, %v8097_v58  ;;  %v4523_v58 = vrot.slane %v4521_v24, 4 }
 0x1a8   : > { %v11708_v4 = vsel %vm10752_vm6, %v4523_v58, %v4524_v19  ;;  %v3764_v19 = vrot.slane %v3762_v44, 4 }
 0x1ad   : > { %9027 = vmatmul.mubr.msk.bf16.gmra.mrb[12].mxu0 %vm780_vm3, %v12498_v55  ;;  %v3749_v55 = vshrl.u32 %v8194_v43, 16  ;;  %v11774_v43 = vld [vmem:[%s10397_s9 + $0x40] sm:$0xf] }
 0x1ae   : > { %9030 = vmatprep.mubr.msk.bf16.mxu0 %vm780_vm3, %v8099_v48  ;;  %v3725_v48 = vshrl.u32 %v8191_v3, 16  ;;  %v3782_v3 = vshll.u32 %v11755_v61, 16  ;;  %v3810_v44 = vshrl.u32 %v11774_v43, 16 }
 0x1af   : > { %v3751_v36 = vrot.slane %v3749_v55, 4 }
 0x1b0   : > { %v3727_v22 = vrot.slane %v3725_v48, 4 }
 0x1b5   : > { %9031 = vmatmul.mubr.msk.bf16.gmra.mrb[16].mxu0 %vm780_vm3, %v12499_v2  ;;  %v3730_v2 = vrot.slane %v3728_v17, 5  ;;  %v9977_v17 = vld [vmem:[%s10397_s9 + $0x9c] sm:$0xff]  }
 0x1b6   : > { %9034 = vmatprep.mubr.msk.bf16.mxu0 %vm780_vm3, %v8101_v53  ;;  %v4535_v53 = vrot.slane %v11716_v10, 5 }
 0x1b8   : > { %v4537_v49 = vrot.slane %v4535_v53, 4 }
 0x1ba   : > { %v11741_v57 = vsel %vm10752_vm6, %v4537_v49, %v4538_v52  ;;  %v3797_v49 = vshrl.u32 %v8200_v34, 16 }
 0x1bb   : > { %12504 = vst [vmem:[#allocation15_spill] sm:$0xff] %v11741_v57  ;;  %v11881_v57 = vld [vmem:[%s10397_s9 + $0x64] sm:$0xf] }
 0x1bd   : > { %9035 = vmatmul.mubr.msk.bf16.gmra.mrb[20].mxu0 %vm780_vm3, %v12500_v35  ;;  %v11736_v35 = vsel %vm10752_vm6, %v8299_v27, %v4535_v53 }
 0x1be   : > { %9038 = vmatprep.mubr.msk.bf16.mxu0 %vm780_vm3, %v8103_v13  ;;  %v11732_v13 = vld [vmem:[%s10397_s9 + $0x20] sm:$0x1] }
 0x1c5   : > { %9039 = vmatmul.mubr.msk.bf16.gmra.mrb[24].mxu0 %vm780_vm3, %v12503_v40  ;;  %v8206_v40 = vld [vmem:[%s10397_s9 + $0x54] sm:$0xf] }
 0x1c6   : > { %9042 = vmatprep.mubr.msk.bf16.mxu0 %vm780_vm3, %v8105_v46  ;;  %v3758_v46 = vshll.u32 %v11728_v63, 16 }
 0x1c8   : > { %v11767_v24 = vrot.slane %v3758_v46, 5 }
 0x1cd   : > { %9043 = vmatmul.mubr.msk.bf16.gmra.mrb[28].mxu0 %vm780_vm3, %v8106_v9  ;;  %v11663_v9 = vld [vmem:[%s10397_s9 + $0x58] sm:$0xf] }
 0x1ce   : > { %9048 = vmatprep.mubr.msk.bf16.mxu0 %vm780_vm3, %v9965_v7  ;;  %v3744_v7 = vshll.u32 %v11732_v13, 16 }
 0x1d0   : > { %v3746_v55 = vrot.slane %v3744_v7, 5  ;;  %v8203_v7 = vld [vmem:[%s10397_s9 + $0x48] sm:$0xf] }
 0x1d5   : > { %9049 = vmatmul.mubr.msk.bf16.vlgmr.msra.gmra.mrb[0].mxu0 %vm780_vm3, %v9967_v14  ;;  %v11750_v14 = vld [vmem:[%s10397_s9 + $0x2c] sm:$0x1] }
 0x1d6   : > { %9081 = vmatpush3.bf16.msra.mxu0 %v11566_v33  ;;  %9052 = vmatprep.mubr.msk.bf16.mxu0 %vm780_vm3, %v9968_v41  ;;  %v4507_v33 = vrot.slane %v11663_v9, 5  ;;  %v3731_v41 = vor.u32 %v3730_v2, %v3727_v22  ;;  %v11789_v2 = vld [vmem:[%s10397_s9 + $0x38] sm:$0x1]  ;;  %v4482_v25 = vrot.slane %v11750_v14, 5 }
 0x1d7   : > { %9114 = vmatprep.subr.bf16.mxu0 %v11653_v31 }
 0x1d8   : > { %v4509_v29 = vrot.slane %v4507_v33, 4  ;;  %v11675_v15 = vsel %vm10752_vm6, %v8295_v56, %v4507_v33  ;;  %v11758_v33 = vld [vmem:[%s10397_s9 + $0xa0] sm:$0xf]  ;;  %v3773_v56 = vshrl.u32 %v8197_v0, 16  ;;  %v3732_v59 = vrot.slane %v3731_v41, 4 }
 0x1d9   : > { %v11803_v41 = vld [vmem:[%s10397_s9 + $0xb8] sm:$0xf] }
 0x1da   : > { %v11680_v6 = vsel %vm10752_vm6, %v4509_v29, %v4510_v47  ;;  %v11761_v47 = vld [vmem:[%s10397_s9 + $0xa4] sm:$0x1]  ;;  %v3776_v29 = vshll.u32 %v8197_v0, 16  ;;  %v3775_v52 = vrot.slane %v3773_v56, 4  ;;  %v3765_v0 = vor.u32 %v3764_v19, %v11767_v24 }
 0x1db   : > { %v4552_v54 = vrot.slane %v11761_v47, 5  ;;  %v3792_v56 = vshll.u32 %v11789_v2, 16  ;;  %v3799_v19 = vrot.slane %v3797_v49, 4 }
 0x1dc   : > { %v3778_v27 = vrot.slane %v3776_v29, 5  ;;  %v8287_v29 = vld [vmem:[%s10397_s9 + $0xb4] sm:$0xe] }
 0x1dd   : > { %9053 = vmatmul.mubr.msk.bf16.gmra.mrb[4].mxu0 %vm780_vm3, %v9969_v16  ;;  %v3741_v16 = vor.u32 %v3740_v18, %v11725_v50  ;;  %v3806_v18 = vshll.u32 %v11774_v43, 16 }
 0x1de   : > { %9056 = vmatprep.mubr.msk.bf16.mxu0 %vm780_vm3, %v9970_v62  ;;  %v3755_v62 = vor.u32 %v3754_v39, %v3751_v36  ;;  %v11837_v36 = vrot.slane %v3792_v56, 5 }
 0x1df   : > { %v3742_v12 = vrot.slane %v3741_v16, 4  ;;  %v11806_v16 = vld [vmem:[%s10397_s9 + $0xbc] sm:$0x1] }
 0x1e0   : > { %v11782_v53 = vrot.slane %v3755_v62, 4  ;;  %v3779_v62 = vor.u32 %v3778_v27, %v3775_v52  ;;  %v9979_v52 = vld [vmem:[%s10397_s9 + $0xb4] sm:$0xff]   ;;  %v3737_v27 = vsel %vm10436_vm2, %v3732_v59, %v11725_v50 }
 0x1e1   : > { %v3747_v49 = vsel %vm10436_vm2, %v3742_v12, %v3746_v55 }
 0x1e5   : > { %9057 = vmatmul.mubr.msk.bf16.gmra.mrb[8].mxu0 %vm780_vm3, %v9971_v51  ;;  %v8285_v51 = vld [vmem:[%s10397_s9 + $0x9c] sm:$0xe] }
 0x1e6   : > { %9060 = vmatprep.mubr.msk.bf16.mxu0 %vm780_vm3, %v9972_v60  ;;  %v4549_v60 = vrot.slane %v11758_v33, 5  ;;  %v8301_v58 = vrot.slane %v8285_v51, 9  ;;  %v4563_v51 = vrot.slane %v11803_v41, 5 }
 0x1e8   : > { %v4551_v48 = vrot.slane %v4549_v60, 4  ;;  %v11779_v21 = vsel %vm10752_vm6, %v8301_v58, %v4549_v60  ;;  %v4566_v60 = vrot.slane %v11806_v16, 5  ;;  %v11816_v58 = vrot.slane %v3806_v18, 5 }
 0x1e9   : > { %12505 = vst [vmem:[#allocation16_spill] sm:$0xff] %v11779_v21  ;;  %v3854_v21 = vshll.u32 %v11663_v9, 16 }
 0x1ea   : > { %v11786_v22 = vsel %vm10752_vm6, %v4551_v48, %v4552_v54  ;;  %v11814_v54 = vld [vmem:[%s10397_s9 + $0x44] sm:$0x1]  ;;  %v11820_v48 = vld [vmem:[%s10397_s9 + $0x4c] sm:$0xf] }
 0x1eb   : > { %12506 = vst [vmem:[#allocation17_spill] sm:$0xff] %v11786_v22  ;;  %v3816_v59 = vshll.u32 %v11814_v54, 16  ;;  %v3830_v12 = vshll.u32 %v11820_v48, 16  ;;  %v3834_v55 = vshrl.u32 %v11820_v48, 16  ;;  %v9981_v22 = vld [vmem:[%s10397_s9 + $0xcc] sm:$0xff]  }
 0x1ed   : > { %9061 = vmatmul.mubr.msk.bf16.gmra.mrb[12].mxu0 %vm780_vm3, %v9973_v42  ;;  %v3768_v42 = vshll.u32 %v11750_v14, 16 }
 0x1ee   : > { %9064 = vmatprep.mubr.msk.bf16.mxu0 %vm780_vm3, %v9974_v45  ;;  %v3786_v45 = vshrl.u32 %v11755_v61, 16 }
 0x1ef   : > { %v11794_v39 = vrot.slane %v3768_v42, 5  ;;  %v8303_v42 = vrot.slane %v8287_v29, 9  ;;  %v9980_v29 = vld [vmem:[%s10397_s9 + $0xc0] sm:$0xff]  }
 0x1f0   : > { %v3788_v46 = vrot.slane %v3786_v45, 4  ;;  %v3812_v45 = vrot.slane %v3810_v44, 4  ;;  %v11835_v44 = vrot.slane %v3779_v62, 4 }
 0x1f1   : > { %v11830_v18 = vsel %vm10752_vm6, %v8303_v42, %v4563_v51 }
 0x1f2   : > { %12507 = vst [vmem:[#allocation18_spill] sm:$0xff] %v11830_v18  ;;  %v3813_v56 = vor.u32 %v3812_v45, %v11816_v58  ;;  %v8289_v45 = vld [vmem:[%s10397_s9 + $0xcc] sm:$0xe] }
 0x1f5   : > { %9065 = vmatmul.mubr.msk.bf16.gmra.mrb[16].mxu0 %vm780_vm3, %v9975_v5  ;;  %v3800_v5 = vshll.u32 %v8200_v34, 16 }
 0x1f6   : > { %9068 = vmatprep.mubr.msk.bf16.mxu0 %vm780_vm3, %v9976_v23  ;;  %v11796_v23 = vrot.slane %v3782_v3, 5 }
 0x1f7   : > { %v3802_v34 = vrot.slane %v3800_v5, 5  ;;  %v3824_v5 = vshll.u32 %v8203_v7, 16 }
 0x1f8   : > { %v3789_v3 = vor.u32 %v3788_v46, %v11796_v23  ;;  %v11833_v46 = vrot.slane %v3765_v0, 4  ;;  %v8305_v0 = vrot.slane %v8289_v45, 9 }
 0x1f9   : > { %v3803_v62 = vor.u32 %v3802_v34, %v3799_v19  ;;  %v3826_v42 = vrot.slane %v3824_v5, 5  ;;  %v3761_v19 = vsel %vm10436_vm2, %v11782_v53, %v11767_v24  ;;  %v3848_v5 = vshll.u32 %v8206_v40, 16 }
 0x1fa   : > { %v3771_v34 = vsel %vm10436_vm2, %v11833_v46, %v11794_v39  ;;  %v3814_v53 = vrot.slane %v3813_v56, 4 }
 0x1fb   : > { %v3804_v24 = vrot.slane %v3803_v62, 4 }
 0x1fd   : > { %9069 = vmatmul.mubr.msk.bf16.gmra.mrb[20].mxu0 %vm780_vm3, %v9977_v17  ;;  %v3821_v17 = vshrl.u32 %v8203_v7, 16  ;;  %v11849_v7 = vrot.slane %v3789_v3, 4  ;;  %v11869_v3 = vld [vmem:[%s10397_s9 + $0x50] sm:$0x1] }
 0x1fe   : > { %9072 = vmatprep.mubr.msk.bf16.mxu0 %vm780_vm3, %v9978_v28  ;;  %v4565_v28 = vrot.slane %v4563_v51, 4  ;;  %v3840_v46 = vshll.u32 %v11869_v3, 16 }
 0x1ff   : > { %v3823_v51 = vrot.slane %v3821_v17, 4  ;;  %v4577_v17 = vrot.slane %v11854_v37, 5 }
 0x200   : > { %v11842_v50 = vsel %vm10752_vm6, %v4565_v28, %v4566_v60  ;;  %v8241_v60 = vcombine.low %v3737_v27, %v3747_v49  ;;  %v3845_v28 = vshrl.u32 %v8206_v40, 16  ;;  %v11874_v27 = vrot.slane %v3830_v12, 5 }
 0x201   : > { %12508 = vst [vmem:[#allocation19_spill] sm:$0xff] %v11842_v50  ;;  %v3836_v49 = vrot.slane %v3834_v55, 4  ;;  %v3818_v50 = vrot.slane %v3816_v59, 5  ;;  %v4579_v18 = vrot.slane %v4577_v17, 4  ;;  %v3827_v39 = vor.u32 %v3826_v42, %v3823_v51 }
 0x202   : > { %v11885_v12 = vsel %vm10752_vm6, %v8305_v0, %v4577_v17  ;;  %v3858_v40 = vshrl.u32 %v11663_v9, 16  ;;  %v3847_v51 = vrot.slane %v3845_v28, 4  ;;  %v3850_v42 = vrot.slane %v3848_v5, 5  ;;  %v8212_v28 = vld [vmem:[%s10397_s9 + $0x6c] sm:$0xf] }
 0x203   : > { %12509 = vst [vmem:[#allocation13_spill] sm:$0xff] %v11885_v12  ;;  %v3837_v56 = vor.u32 %v3836_v49, %v11874_v27  ;;  %v3785_v0 = vsel %vm10436_vm2, %v11835_v44, %v11796_v23  ;;  %v3795_v9 = vsel %vm10436_vm2, %v11849_v7, %v11837_v36  ;;  %v3882_v17 = vshrl.u32 %v11881_v57, 16  ;;  %v11917_v12 = vld [vmem:[%s10397_s9 + $0x68] sm:$0x1] }
 0x204   : > { %v3819_v23 = vsel %vm10436_vm2, %v3814_v53, %v3818_v50  ;;  %v3828_v44 = vrot.slane %v3827_v39, 4  ;;  %v3842_v49 = vrot.slane %v3840_v46, 5  ;;  %v11913_v36 = vrot.slane %v3854_v21, 5 }
 0x205   : > { %9073 = vmatmul.mubr.msk.bf16.gmra.mrb[24].mxu0 %vm780_vm3, %v9979_v52  ;;  %v4580_v52 = vrot.slane %v11857_v30, 5  ;;  %v3860_v7 = vrot.slane %v3858_v40, 4  ;;  %v3838_v45 = vrot.slane %v3837_v56, 4  ;;  %v3884_v53 = vrot.slane %v3882_v17, 4 }
 0x206   : > { %9076 = vmatprep.mubr.msk.bf16.mxu0 %vm780_vm3, %v9980_v29  ;;  %v8209_v29 = vld [vmem:[%s10397_s9 + $0x60] sm:$0xf]  ;;  %v3896_v39 = vshll.u32 %v8212_v28, 16  ;;  %v3902_v46 = vshll.u32 %v11686_v11, 16  ;;  %v3906_v40 = vshrl.u32 %v11686_v11, 16 }
 0x207   : > { %v3869_v55 = vshrl.u32 %v8209_v29, 16  ;;  %v3872_v62 = vshll.u32 %v8209_v29, 16  ;;  %v11890_v59 = vsel %vm10752_vm6, %v4579_v18, %v4580_v52  ;;  %v3878_v18 = vshll.u32 %v11881_v57, 16 }
 0x208   : > { %12510 = vst [vmem:[#allocation14_spill] sm:$0xff] %v11890_v59  ;;  %v3809_v52 = vsel %vm10436_vm2, %v3804_v24, %v11816_v58  ;;  %v3851_v59 = vor.u32 %v3850_v42, %v3847_v51  ;;  %v3893_v58 = vshrl.u32 %v8212_v28, 16  ;;  %v8242_v24 = vcombine.low %v3761_v19, %v3771_v34  ;;  %v11930_v34 = vld [vmem:[%s10397_s9 + $0x7c] sm:$0xf] }
 0x209   : > { %v3871_v5 = vrot.slane %v3869_v55, 4  ;;  %v3874_v29 = vrot.slane %v3872_v62, 5  ;;  %v11919_v50 = vrot.slane %v3878_v18, 5  ;;  %v8244_v21 = vcombine.low %v3809_v52, %v3819_v23  ;;  %v8215_v55 = vld [vmem:[%s10397_s9 + $0x78] sm:$0xf] }
 0x20a   : > { %v3861_v62 = vor.u32 %v3860_v7, %v11913_v36  ;;  %v3888_v19 = vshll.u32 %v11917_v12, 16  ;;  %v3843_v51 = vsel %vm10436_vm2, %v3838_v45, %v3842_v49  ;;  %v3852_v42 = vrot.slane %v3851_v59, 4  ;;  %v8218_v52 = vld [vmem:[%s10397_s9 + $0x84] sm:$0xf] }
 0x20b   : > { %v3875_v56 = vor.u32 %v3874_v29, %v3871_v5  ;;  %v3885_v11 = vor.u32 %v3884_v53, %v11919_v50  ;;  %v3898_v18 = vrot.slane %v3896_v39, 5  ;;  %v3917_v17 = vshrl.u32 %v8215_v55, 16 }
 0x20c   : > { %v3920_v28 = vshll.u32 %v8215_v55, 16  ;;  %v3908_v23 = vrot.slane %v3906_v40, 4  ;;  %v3930_v7 = vshrl.u32 %v11930_v34, 16  ;;  %v3862_v59 = vrot.slane %v3861_v62, 4  ;;  %v11948_v55 = vld [vmem:[%s10397_s9 + $0x80] sm:$0x1] }
 0x20d   : > { %9077 = vmatmul.mubr.msk.bf16.gmra.mrb[28].mxu0 %vm780_vm3, %v9981_v22  ;;  %v3864_v22 = vshll.u32 %v11666_v1, 16  ;;  %v3833_v1 = vsel %vm10436_vm2, %v3828_v44, %v11874_v27  ;;  %v11937_v27 = vrot.slane %v3902_v46, 5  ;;  %v3926_v44 = vshll.u32 %v11930_v34, 16 }
 0x20e   : > { %9082 = vmatprep.mubr.msk.bf16.mxu0 %vm780_vm3, %v8241_v60  ;;  %v8243_v60 = vcombine.low %v3785_v0, %v3795_v9  ;;  %v3895_v9 = vrot.slane %v3893_v58, 4  ;;  %v3876_v45 = vrot.slane %v3875_v56, 4  ;;  %v3890_v49 = vrot.slane %v3888_v19, 5 }
 0x20f   : > { %v3866_v0 = vrot.slane %v3864_v22, 5  ;;  %v3912_v5 = vshll.u32 %v11689_v38, 16  ;;  %v3941_v29 = vshrl.u32 %v8218_v52, 16  ;;  %v3944_v22 = vshll.u32 %v8218_v52, 16 }
 0x210   : > { %v3950_v58 = vshll.u32 %v11716_v10, 16  ;;  %v3886_v53 = vrot.slane %v3885_v11, 4  ;;  %v3899_v39 = vor.u32 %v3898_v18, %v3895_v9  ;;  %v3919_v46 = vrot.slane %v3917_v17, 4 }
 0x211   : > { %v8245_v40 = vcombine.low %v3833_v1, %v3843_v51  ;;  %v11950_v62 = vrot.slane %v3926_v44, 5  ;;  %v3932_v38 = vrot.slane %v3930_v7, 4  ;;  %v3857_v56 = vsel %vm10436_vm2, %v3852_v42, %v11913_v36  ;;  %v8221_v1 = vld [vmem:[%s10397_s9 + $0x90] sm:$0xf] }
 0x212   : > { %v3881_v19 = vsel %vm10436_vm2, %v3876_v45, %v11919_v50  ;;  %v11960_v9 = vrot.slane %v3912_v5, 5  ;;  %v3943_v51 = vrot.slane %v3941_v29, 4  ;;  %v3946_v11 = vrot.slane %v3944_v22, 5 }
 0x213   : > { %v11963_v18 = vrot.slane %v3950_v58, 5  ;;  %v3891_v36 = vsel %vm10436_vm2, %v3886_v53, %v3890_v49  ;;  %v3900_v42 = vrot.slane %v3899_v39, 4  ;;  %v3936_v52 = vshll.u32 %v11948_v55, 16 }
 0x214   : > { %v3965_v44 = vshrl.u32 %v8221_v1, 16  ;;  %v3968_v7 = vshll.u32 %v8221_v1, 16  ;;  %v3947_v5 = vor.u32 %v3946_v11, %v3943_v51  ;;  %v3960_v22 = vshll.u32 %v11719_v26, 16  ;;  %v11992_v51 = vld [vmem:[%s10397_s9 + $0xac] sm:$0xf] }
 0x215   : > { %9083 = vmatmul.mubr.msk.bf16.vlgmr.msra.gmra.mrb[0].mxu0 %vm780_vm3, %v8242_v24  ;;  %v3954_v24 = vshrl.u32 %v11716_v10, 16  ;;  %v3867_v10 = vsel %vm10436_vm2, %v3862_v59, %v3866_v0  ;;  %v8247_v58 = vcombine.low %v3881_v19, %v3891_v36  ;;  %v3938_v39 = vrot.slane %v3936_v52, 5 }
 0x216   : > { %9115 = vmatpush3.bf16.msra.mxu0 %v11653_v31  ;;  %9086 = vmatprep.mubr.msk.bf16.mxu0 %vm780_vm3, %v8243_v60  ;;  %v3922_v31 = vrot.slane %v3920_v28, 5  ;;  %v3909_v60 = vor.u32 %v3908_v23, %v11937_v27  ;;  %v11966_v28 = vld [vmem:[%s10397_s9 + $0x94] sm:$0xf]  ;;  %v3933_v23 = vor.u32 %v3932_v38, %v11950_v62  ;;  %v8246_v49 = vcombine.low %v3857_v56, %v3867_v10  ;;  %v8227_v56 = vld [vmem:[%s10397_s9 + $0xa8] sm:$0xf] }
 0x217   : > { %v3956_v17 = vrot.slane %v3954_v24, 4  ;;  %v3974_v59 = vshll.u32 %v11966_v28, 16  ;;  %v3978_v45 = vshrl.u32 %v11966_v28, 16  ;;  %v3905_v24 = vsel %vm10436_vm2, %v3900_v42, %v11937_v27 }
 0x218   : > { %v3923_v0 = vor.u32 %v3922_v31, %v3919_v46  ;;  %v3910_v50 = vrot.slane %v3909_v60, 4  ;;  %v11983_v46 = vld [vmem:[%s10397_s9 + $0x98] sm:$0x1]  ;;  %v3967_v60 = vrot.slane %v3965_v44, 4  ;;  %v3970_v38 = vrot.slane %v3968_v7, 5 }
 0x219   : > { %v3957_v29 = vor.u32 %v3956_v17, %v11963_v18  ;;  %v11989_v26 = vrot.slane %v3974_v59, 5  ;;  %v3980_v10 = vrot.slane %v3978_v45, 4  ;;  %v3948_v27 = vrot.slane %v3947_v5, 4 }
 0x21a   : > { %v3924_v53 = vrot.slane %v3923_v0, 4  ;;  %v3915_v31 = vsel %vm10436_vm2, %v3910_v50, %v11960_v9  ;;  %v3962_v17 = vrot.slane %v3960_v22, 5  ;;  %v3984_v36 = vshll.u32 %v11983_v46, 16 }
 0x21b   : > { %v3958_v11 = vrot.slane %v3957_v29, 4  ;;  %v3998_v42 = vshll.u32 %v11758_v33, 16  ;;  %v4002_v9 = vshrl.u32 %v11758_v33, 16  ;;  %v4013_v0 = vshrl.u32 %v8227_v56, 16 }
 0x21c   : > { %v4016_v52 = vshll.u32 %v8227_v56, 16  ;;  %v3929_v50 = vsel %vm10436_vm2, %v3924_v53, %v11950_v62  ;;  %v4022_v44 = vshll.u32 %v11992_v51, 16  ;;  %v4026_v7 = vshrl.u32 %v11992_v51, 16 }
 0x21d   : > { %9087 = vmatmul.mubr.msk.bf16.gmra.mrb[4].mxu0 %vm780_vm3, %v8244_v21  ;;  %v8224_v21 = vld [vmem:[%s10397_s9 + $0x9c] sm:$0xf]  ;;  %v3971_v59 = vor.u32 %v3970_v38, %v3967_v60  ;;  %v3981_v33 = vor.u32 %v3980_v10, %v11989_v26  ;;  %v3953_v62 = vsel %vm10436_vm2, %v3948_v27, %v11963_v18  ;;  %v3963_v5 = vsel %vm10436_vm2, %v3958_v11, %v3962_v17  ;;  %v12015_v60 = vld [vmem:[%s10397_s9 + $0xb0] sm:$0x1]  ;;  %v8230_v10 = vld [vmem:[%s10397_s9 + $0xb4] sm:$0xf] }
 0x21e   : > { %9090 = vmatprep.mubr.msk.bf16.mxu0 %vm780_vm3, %v8245_v40  ;;  %v3934_v40 = vrot.slane %v3933_v23, 4  ;;  %v3989_v19 = vshrl.u32 %v8224_v21, 16  ;;  %v3992_v1 = vshll.u32 %v8224_v21, 16  ;;  %v3986_v29 = vrot.slane %v3984_v36, 5 }
 0x21f   : > { %v12012_v22 = vrot.slane %v3998_v42, 5  ;;  %v4004_v21 = vrot.slane %v4002_v9, 4  ;;  %v4015_v53 = vrot.slane %v4013_v0, 4  ;;  %v4024_v38 = vrot.slane %v4022_v44, 5 }
 0x220   : > { %v3939_v23 = vsel %vm10436_vm2, %v3934_v40, %v3938_v39  ;;  %v3991_v45 = vrot.slane %v3989_v19, 4  ;;  %v4018_v39 = vrot.slane %v4016_v52, 5  ;;  %v4028_v56 = vrot.slane %v4026_v7, 4 }
 0x221   : > { %v8249_v40 = vcombine.low %v3929_v50, %v3939_v23  ;;  %v3972_v19 = vrot.slane %v3971_v59, 4  ;;  %v3982_v18 = vrot.slane %v3981_v33, 4  ;;  %v4008_v27 = vshll.u32 %v11761_v47, 16 }
 0x222   : > { %v8250_v11 = vcombine.low %v3953_v62, %v3963_v5  ;;  %v4005_v17 = vor.u32 %v4004_v21, %v12012_v22  ;;  %v4019_v36 = vor.u32 %v4018_v39, %v4015_v53  ;;  %v4032_v42 = vshll.u32 %v12015_v60, 16 }
 0x223   : > { %v4037_v9 = vshrl.u32 %v8230_v10, 16  ;;  %v4029_v0 = vor.u32 %v4028_v56, %v4024_v38  ;;  %v4040_v52 = vshll.u32 %v8230_v10, 16  ;;  %v4046_v50 = vshll.u32 %v11803_v41, 16 }
 0x224   : > { %v4050_v23 = vshrl.u32 %v11803_v41, 16  ;;  %v3977_v47 = vsel %vm10436_vm2, %v3972_v19, %v11989_v26  ;;  %v3987_v44 = vsel %vm10436_vm2, %v3982_v18, %v3986_v29  ;;  %v4010_v59 = vrot.slane %v4008_v27, 5 }
 0x225   : > { %9091 = vmatmul.mubr.msk.bf16.gmra.mrb[8].mxu0 %vm780_vm3, %v8246_v49  ;;  %v3994_v49 = vrot.slane %v3992_v1, 5  ;;  %v4006_v5 = vrot.slane %v4005_v17, 4  ;;  %v4020_v41 = vrot.slane %v4019_v36, 4  ;;  %v4034_v21 = vrot.slane %v4032_v42, 5  ;;  %v12044_v42 = vld [vmem:[%s10397_s9 + $0xc8] sm:$0x1] }
 0x226   : > { %9094 = vmatprep.mubr.msk.bf16.mxu0 %vm780_vm3, %v8247_v58  ;;  %v8248_v58 = vcombine.low %v3905_v24, %v3915_v31  ;;  %v8233_v24 = vld [vmem:[%s10397_s9 + $0xc0] sm:$0xf]  ;;  %v12023_v31 = vld [vmem:[%s10397_s9 + $0xc4] sm:$0xf]  ;;  %v4039_v53 = vrot.slane %v4037_v9, 4  ;;  %v4030_v39 = vrot.slane %v4029_v0, 4  ;;  %v8251_v56 = vcombine.low %v3977_v47, %v3987_v44 }
 0x227   : > { %v3995_v1 = vor.u32 %v3994_v49, %v3991_v45  ;;  %v4061_v33 = vshrl.u32 %v8233_v24, 16  ;;  %v4064_v45 = vshll.u32 %v8233_v24, 16  ;;  %v4070_v49 = vshll.u32 %v12023_v31, 16 }
 0x228   : > { %v4074_v62 = vshrl.u32 %v12023_v31, 16  ;;  %v4048_v26 = vrot.slane %v4046_v50, 5  ;;  %v4011_v17 = vsel %vm10436_vm2, %v4006_v5, %v4010_v59  ;;  %v4056_v36 = vshll.u32 %v11806_v16, 16 }
 0x229   : > { %v3996_v7 = vrot.slane %v3995_v1, 4  ;;  %v4063_v29 = vrot.slane %v4061_v33, 4  ;;  %v4066_v10 = vrot.slane %v4064_v45, 5  ;;  %v4072_v19 = vrot.slane %v4070_v49, 5  ;;  %v8236_v1 = vld [vmem:[%s10397_s9 + $0xcc] sm:$0xf] }
 0x22a   : > { %v4076_v18 = vrot.slane %v4074_v62, 4  ;;  %v4025_v9 = vsel %vm10436_vm2, %v4020_v41, %v4024_v38  ;;  %v4035_v24 = vsel %vm10436_vm2, %v4030_v39, %v4034_v21  ;;  %v4088_v50 = vshll.u32 %v8236_v1, 16 }
 0x22b   : > { %v4001_v27 = vsel %vm10436_vm2, %v3996_v7, %v12012_v22  ;;  %v4085_v22 = vshrl.u32 %v8236_v1, 16  ;;  %v4098_v16 = vshrl.u32 %v11854_v37, 16  ;;  %v4067_v47 = vor.u32 %v4066_v10, %v4063_v29 }
 0x22c   : > { %v4077_v44 = vor.u32 %v4076_v18, %v4072_v19  ;;  %v8252_v7 = vcombine.low %v4001_v27, %v4011_v17  ;;  %v8253_v59 = vcombine.low %v4025_v9, %v4035_v24  ;;  %v4058_v45 = vrot.slane %v4056_v36, 5  ;;  %v8274_v27 = vld [vmem:[%s10397_s9 + $0x18] sm:$0xe] }
 0x22d   : > { %9095 = vmatmul.mubr.msk.bf16.gmra.mrb[12].mxu0 %vm780_vm3, %v8248_v58  ;;  %v4042_v58 = vrot.slane %v4040_v52, 5  ;;  %v4087_v49 = vrot.slane %v4085_v22, 4  ;;  %v4090_v62 = vrot.slane %v4088_v50, 5  ;;  %v4100_v41 = vrot.slane %v4098_v16, 4  ;;  %v8275_v16 = vld [vmem:[%s10397_s9 + $0x24] sm:$0xe] }
 0x22e   : > { %9098 = vmatprep.mubr.msk.bf16.mxu0 %vm780_vm3, %v8249_v40  ;;  %v4052_v40 = vrot.slane %v4050_v23, 4  ;;  %v4094_v23 = vshll.u32 %v11854_v37, 16  ;;  %v4068_v21 = vrot.slane %v4067_v47, 4  ;;  %v4104_v29 = vshll.u32 %v11857_v30, 16  ;;  %v8276_v47 = vld [vmem:[%s10397_s9 + $0x30] sm:$0xe] }
 0x22f   : > { %v4043_v0 = vor.u32 %v4042_v58, %v4039_v53  ;;  %v4078_v53 = vrot.slane %v4077_v44, 4  ;;  %v4472_v1 = vrot.slane %v11698_v32, 5  ;;  %v4475_v30 = vrot.slane %v11732_v13, 5 }
 0x230   : > { %v4053_v52 = vor.u32 %v4052_v40, %v4048_v26  ;;  %v4096_v5 = vrot.slane %v4094_v23, 5  ;;  %v4091_v40 = vor.u32 %v4090_v62, %v4087_v49  ;;  %v4073_v10 = vsel %vm10436_vm2, %v4068_v21, %v4072_v19 }
 0x231   : > { %v4044_v38 = vrot.slane %v4043_v0, 4  ;;  %v4106_v24 = vrot.slane %v4104_v29, 5  ;;  %v8290_v0 = vrot.slane %v8274_v27, 9  ;;  %v4479_v22 = vrot.slane %v11728_v63, 5 }
 0x232   : > { %v4054_v33 = vrot.slane %v4053_v52, 4  ;;  %v4092_v36 = vrot.slane %v4091_v40, 4  ;;  %v4474_v52 = vrot.slane %v4472_v1, 4  ;;  %v4486_v13 = vrot.slane %v11755_v61, 5 }
 0x233   : > { %v4049_v37 = vsel %vm10436_vm2, %v4044_v38, %v4048_v26  ;;  %v4473_v50 = vsel %vm10752_vm6, %v8290_v0, %v4472_v1  ;;  %v8292_v38 = vrot.slane %v8276_v47, 9  ;;  %v4493_v49 = vrot.slane %v11774_v43, 5  ;;  %v8282_v0 = vld [vmem:[%s10397_s9 + $0x78] sm:$0xe] }
 0x234   : > { %v4059_v58 = vsel %vm10436_vm2, %v4054_v33, %v4058_v45  ;;  %v4097_v19 = vsel %vm10436_vm2, %v4092_v36, %v4096_v5  ;;  %v4476_v23 = vsel %vm10752_vm6, %v4474_v52, %v4475_v30  ;;  %v4488_v63 = vrot.slane %v4486_v13, 4 }
 0x235   : > { %9099 = vmatmul.mubr.msk.bf16.gmra.mrb[16].mxu0 %vm780_vm3, %v8250_v11  ;;  %v4080_v11 = vshll.u32 %v12044_v42, 16  ;;  %v8254_v26 = vcombine.low %v4049_v37, %v4059_v58  ;;  %v4489_v33 = vrot.slane %v11789_v2, 5  ;;  %v4487_v62 = vsel %vm10752_vm6, %v8292_v38, %v4486_v13 }
 0x236   : > { %9102 = vmatprep.mubr.msk.bf16.mxu0 %vm780_vm3, %v8251_v56  ;;  %v4101_v56 = vor.u32 %v4100_v41, %v4096_v5  ;;  %v8277_v5 = vld [vmem:[%s10397_s9 + $0x3c] sm:$0xe]  ;;  %v4500_v2 = vrot.slane %v11820_v48, 5  ;;  %v8278_v41 = vld [vmem:[%s10397_s9 + $0x48] sm:$0xe]  ;;  %v4495_v37 = vrot.slane %v4493_v49, 4 }
 0x237   : > { %v4082_v39 = vrot.slane %v4080_v11, 5  ;;  %v8308_v11 = vcombine.low %v4473_v50, %v4476_v23  ;;  %v4490_v14 = vsel %vm10752_vm6, %v4488_v63, %v4489_v33  ;;  %v4496_v58 = vrot.slane %v11814_v54, 5  ;;  %v8284_v23 = vld [vmem:[%s10397_s9 + $0x90] sm:$0xe]  ;;  %v8288_v33 = vld [vmem:[%s10397_s9 + $0xc0] sm:$0xe] }
 0x238   : > { %v4102_v9 = vrot.slane %v4101_v56, 4  ;;  %v8294_v40 = vrot.slane %v8278_v41, 9  ;;  %v4502_v56 = vrot.slane %v4500_v2, 4  ;;  %v4503_v43 = vrot.slane %v11869_v3, 5  ;;  %v8280_v3 = vld [vmem:[%s10397_s9 + $0x60] sm:$0xe] }
 0x239   : > { %v4083_v18 = vsel %vm10436_vm2, %v4078_v53, %v4082_v39  ;;  %v8310_v53 = vcombine.low %v4487_v62, %v4490_v14  ;;  %v8293_v39 = vrot.slane %v8277_v5, 9  ;;  %v4497_v48 = vsel %vm10752_vm6, %v4495_v37, %v4496_v58  ;;  %v12515_v62 = vld [vmem:[#allocation16_spill] sm:$0xff]  ;;  %v12518_v41 = vld [vmem:[#allocation18_spill] sm:$0xff]  ;;  %v9983_v58 = vld [vmem:[#allocation4 + $0x40] sm:$0xff]  }
 0x23a   : > { %v8255_v17 = vcombine.low %v4073_v10, %v4083_v18  ;;  %v4107_v32 = vsel %vm10436_vm2, %v4102_v9, %v4106_v24  ;;  %v4501_v10 = vsel %vm10752_vm6, %v8294_v40, %v4500_v2  ;;  %v4504_v54 = vsel %vm10752_vm6, %v4502_v56, %v4503_v43  ;;  %9148 = vmatprep.subr.bf16.mxu1 %v9983_v58  ;;  %v9984_v40 = vld [vmem:[#allocation4 + $0x48] sm:$0xff]   ;;  %v9986_v56 = vld [vmem:[#allocation4 + $0x58] sm:$0xff]   ;;  %v9987_v43 = vld [vmem:[#allocation4 + $0x60] sm:$0xff]  }
 0x23b   : > { %v8256_v44 = vcombine.low %v4097_v19, %v4107_v32  ;;  %v4494_v29 = vsel %vm10752_vm6, %v8293_v39, %v4493_v49  ;;  %v4514_v18 = vrot.slane %v11881_v57, 5  ;;  %v8312_v27 = vcombine.low %v4501_v10, %v4504_v54  ;;  %v12522_v39 = vld [vmem:[#allocation14_spill] sm:$0xff]  ;;  %9149 = vmatpush3.bf16.msra.mxu1 %v9983_v58  ;;  %v9990_v10 = vld [vmem:[#allocation4 + $0x78] sm:$0xff]   ;;  %v12177_v54 = vld [vmem:[#allocation4] sm:$0xff]  }
 0x23c   : > { %v8311_v1 = vcombine.low %v4494_v29, %v4497_v48  ;;  %v4517_v36 = vrot.slane %v11917_v12, 5  ;;  %v4528_v57 = vrot.slane %v11930_v34, 5  ;;  %v8298_v30 = vrot.slane %v8282_v0, 9  ;;  %9150 = vmatprep.subr.bf16.mxu1 %v9984_v40  ;;  %v9988_v29 = vld [vmem:[#allocation4 + $0x68] sm:$0xff]   ;;  %v9989_v48 = vld [vmem:[#allocation4 + $0x70] sm:$0xff]  }
 0x23d   : > { %9103 = vmatmul.mubr.msk.bf16.gmra.mrb[20].mxu0 %vm780_vm3, %v8252_v7  ;;  %v8291_v7 = vrot.slane %v8275_v16, 9  ;;  %v4531_v32 = vrot.slane %v11948_v55, 5  ;;  %v12511_v12 = vcombine.low %v11675_v15, %v11680_v6  ;;  %v4542_v50 = vrot.slane %v11966_v28, 5  ;;  %v9992_v58 = vld [vmem:[#allocation4 + $0x8] sm:$0xff]  }
 0x23e   : > { %9106 = vmatprep.mubr.msk.bf16.mxu0 %vm780_vm3, %v8253_v59  ;;  %v4481_v59 = vrot.slane %v4479_v22, 4  ;;  %v4530_v19 = vrot.slane %v4528_v57, 4  ;;  %v8300_v13 = vrot.slane %v8284_v23, 9  ;;  %v4545_v47 = vrot.slane %v11983_v46, 5 }
 0x23f   : > { %v4480_v61 = vsel %vm10752_vm6, %v8291_v7, %v4479_v22  ;;  %v4529_v22 = vsel %vm10752_vm6, %v8298_v30, %v4528_v57  ;;  %v4544_v55 = vrot.slane %v4542_v50, 4  ;;  %v12512_v15 = vcombine.low %v11702_v8, %v11708_v4  ;;  %v12513_v8 = vld [vmem:[#allocation15_spill] sm:$0xff]  ;;  %9151 = vmatpush3.bf16.msra.mxu1 %v9984_v40 }
 0x240   : > { %v4483_v45 = vsel %vm10752_vm6, %v4481_v59, %v4482_v25  ;;  %v4532_v34 = vsel %vm10752_vm6, %v4530_v19, %v4531_v32  ;;  %v4543_v6 = vsel %vm10752_vm6, %v8300_v13, %v4542_v50  ;;  %v4559_v25 = vrot.slane %v12015_v60, 5  ;;  %9152 = vmatprep.subr.bf16.mxu1 %v9985_v20 }
 0x241   : > { %v8309_v21 = vcombine.low %v4480_v61, %v4483_v45  ;;  %v8316_v16 = vcombine.low %v4529_v22, %v4532_v34  ;;  %v4546_v28 = vsel %vm10752_vm6, %v4544_v55, %v4545_v47  ;;  %v12514_v4 = vcombine.low %v11736_v35, %v12513_v8  ;;  %v12516_v35 = vld [vmem:[#allocation17_spill] sm:$0xff] }
 0x242   : > { %v8318_v7 = vcombine.low %v4543_v6, %v4546_v28  ;;  %v8304_v45 = vrot.slane %v8288_v33, 9  ;;  %v4573_v60 = vrot.slane %v12044_v42, 5  ;;  %v12517_v14 = vcombine.low %v12515_v62, %v12516_v35  ;;  %v12521_v42 = vld [vmem:[#allocation13_spill] sm:$0xff] }
 0x243   : > { %v12523_v37 = vcombine.low %v12521_v42, %v12522_v39  ;;  %9153 = vmatpush3.bf16.msra.mxu1 %v9985_v20  ;;  %v5022_v47 = vld [vmem:[#allocation2 + $0x8] ss:$2 sm:$0xff] }
 0x244   : > { %9154 = vmatprep.subr.bf16.mxu1 %v9986_v56 }
 0x245   : > { %9107 = vmatmul.mubr.msk.bf16.gmra.mrb[24].mxu0 %vm780_vm3, %v8254_v26  ;;  %v8296_v26 = vrot.slane %v8280_v3, 9 }
 0x246   : > { %9110 = vmatprep.mubr.msk.bf16.mxu0 %vm780_vm3, %v8255_v17  ;;  %v4516_v17 = vrot.slane %v4514_v18, 4 }
 0x247   : > { %v4515_v9 = vsel %vm10752_vm6, %v8296_v26, %v4514_v18  ;;  %9155 = vmatpush3.bf16.msra.mxu1 %v9986_v56  ;;  %v12183_v18 = vld [vmem:[%s12422_s3] ss:$0 sm:$0xff] }
 0x248   : > { %v4518_v24 = vsel %vm10752_vm6, %v4516_v17, %v4517_v36  ;;  %9156 = vmatprep.subr.bf16.mxu1 %v9987_v43 }
 0x249   : > { %v8314_v52 = vcombine.low %v4515_v9, %v4518_v24 }
 0x24b   : > { %9157 = vmatpush3.bf16.msra.mxu1 %v9987_v43 }
 0x24c   : > { %9158 = vmatprep.subr.bf16.mxu1 %v9988_v29 }
 0x24d   : > { %9111 = vmatmul.mubr.msk.bf16.gmra.mrb[28].mxu0 %vm780_vm3, %v8256_v44  ;;  %v4556_v44 = vrot.slane %v11992_v51, 5  ;;  %v4570_v51 = vrot.slane %v12023_v31, 5 }
 0x24e   : > { %9116 = vmatprep.mubr.msk.bf16.mxu0 %vm780_vm3, %v8308_v11  ;;  %v8286_v11 = vld [vmem:[%s10397_s9 + $0xa8] sm:$0xe]  ;;  %s10174_s9 = scalar_lea.vmem %s10173_s12, 2048 }
 0x24f   : > { %v8302_v59 = vrot.slane %v8286_v11, 9  ;;  %v4558_v46 = vrot.slane %v4556_v44, 4  ;;  %v4572_v49 = vrot.slane %v4570_v51, 4  ;;  %v4571_v5 = vsel %vm10752_vm6, %v8304_v45, %v4570_v51  ;;  %9159 = vmatpush3.bf16.msra.mxu1 %v9988_v29  ;;  %p10176_p3 = scmp.lt.s32.totalorder %s10174_s9, %s10168_s10 }
 0x250   : > { %9160 = vmatprep.subr.bf16.mxu1 %v9989_v48 }
 0x251   : > { %v4557_v38 = vsel %vm10752_vm6, %v8302_v59, %v4556_v44  ;;  %v4560_v63 = vsel %vm10752_vm6, %v4558_v46, %v4559_v25  ;;  %v4574_v2 = vsel %vm10752_vm6, %v4572_v49, %v4573_v60  ;;  %p10177_p4 = por %p10176_p3, %p10175_p2 }
 0x252   : > { %v8320_v61 = vcombine.low %v4557_v38, %v4560_v63  ;;  %v8322_v31 = vcombine.low %v4571_v5, %v4574_v2 }
 0x253   : > { %9161 = vmatpush3.bf16.msra.mxu1 %v9989_v48  ;;  %p10178_p7 = pnand %p10177_p4, %p10171_p12 }
 0x254   : > { %9162 = vmatprep.subr.bf16.mxu1 %v9990_v10 }
 0x255   : > { %9117 = vmatmul.mubr.msk.bf16.vlgmr.msra.gmra.mrb[0].mxu0 %vm780_vm3, %v8309_v21  ;;  %v12519_v21 = vld [vmem:[#allocation19_spill] sm:$0xff] }
 0x256   : > { %9120 = vmatprep.mubr.msk.bf16.mxu0 %vm780_vm3, %v8310_v53  ;;  %v12520_v53 = vcombine.low %v12518_v41, %v12519_v21 }
 0x257   : > { %9163 = vmatpush3.bf16.msra.mxu1 %v9990_v10 }
 0x258   : > { %9172 = vmatprep.subr.bf16.mxu1 %v12177_v54 }
 0x25d   : > { %9121 = vmatmul.mubr.msk.bf16.gmra.mrb[4].mxu0 %vm780_vm3, %v8311_v1 }
 0x25e   : > { %9124 = vmatprep.mubr.msk.bf16.mxu0 %vm780_vm3, %v8312_v27 }
 0x265   : > { %9125 = vmatmul.mubr.msk.bf16.gmra.mrb[8].mxu0 %vm780_vm3, %v12511_v12 }
 0x266   : > { %9128 = vmatprep.mubr.msk.bf16.mxu0 %vm780_vm3, %v8314_v52 }
 0x26d   : > { %9129 = vmatmul.mubr.msk.bf16.gmra.mrb[12].mxu0 %vm780_vm3, %v12512_v15 }
 0x26e   : > { %9132 = vmatprep.mubr.msk.bf16.mxu0 %vm780_vm3, %v8316_v16 }
 0x275   : > { %9133 = vmatmul.mubr.msk.bf16.gmra.mrb[16].mxu0 %vm780_vm3, %v12514_v4 }
 0x276   : > { %9136 = vmatprep.mubr.msk.bf16.mxu0 %vm780_vm3, %v8318_v7 }
 0x27d   : > { %9137 = vmatmul.mubr.msk.bf16.gmra.mrb[20].mxu0 %vm780_vm3, %v12517_v14 }
 0x27e   : > { %9140 = vmatprep.mubr.msk.bf16.mxu0 %vm780_vm3, %v8320_v61 }
 0x285   : > { %9141 = vmatmul.mubr.msk.bf16.gmra.mrb[24].mxu0 %vm780_vm3, %v12520_v53 }
 0x286   : > { %9144 = vmatprep.mubr.msk.bf16.mxu0 %vm780_vm3, %v8322_v31 }
 0x28d   : > { %9145 = vmatmul.mubr.msk.bf16.gmra.mrb[28].mxu0 %vm780_vm3, %v12523_v37 }
 0x328   : > { %v9118_v3 = vpop.f32.mrb[0].mxu0 }
 0x329   : > { %v4888_v1 = vadd.f32 %v9118_v3, %v12183_v18  ;;  %v4721_v27 = vpop.f32.mrb[1].mxu0 }
 0x32a   : > { %v4886_v26 = vadd.f32 %v12183_v18, %v4721_v27  ;;  %v9119_v17 = vpop.f32.mrb[2].mxu0 }
 0x32b   : > { %v4920_v36 = vmax.f32 %v4888_v1, 0.0  ;;  %v4889_v9 = vadd.f32 %v9119_v17, %v12183_v18  ;;  %v4724_v24 = vpop.f32.mrb[3].mxu0  ;;  %v9993_v1 = vld [vmem:[#allocation4 + $0x10] sm:$0xff]  }
 0x32c   : > { %v4918_v57 = vmax.f32 %v4886_v26, 0.0  ;;  %v4887_v0 = vadd.f32 %v12183_v18, %v4724_v24 }
 0x32d   : > { %4953 = vst [vmem:[#allocation2 + $0x48] sm:$0xff] %v4920_v36  ;;  %v4921_v52 = vmax.f32 %v4889_v9, 0.0  ;;  %v9994_v9 = vld [vmem:[#allocation4 + $0x18] sm:$0xff]  }
 0x32e   : > { %4951 = vst [vmem:[#allocation2 + $0x28] sm:$0xff] %v4918_v57  ;;  %v4919_v30 = vmax.f32 %v4887_v0, 0.0 }
 0x32f   : > { %4954 = vst [vmem:[#allocation2 + $0x50] sm:$0xff] %v4921_v52 }
 0x330   : > { %4952 = vst [vmem:[#allocation2 + $0x30] sm:$0xff] %v4919_v30  ;;  %v9122_v19 = vpop.f32.mrb[4].mxu0 }
 0x331   : > { %v4892_v32 = vadd.f32 %v9122_v19, %v12183_v18  ;;  %v4737_v12 = vpop.f32.mrb[5].mxu0 }
 0x332   : > { %v4890_v22 = vadd.f32 %v12183_v18, %v4737_v12  ;;  %v9123_v34 = vpop.f32.mrb[6].mxu0  ;;  %v9995_v12 = vld [vmem:[#allocation4 + $0x20] sm:$0xff]  }
 0x333   : > { %v4924_v50 = vmax.f32 %v4892_v32, 0.0  ;;  %v4893_v23 = vadd.f32 %v9123_v34, %v12183_v18  ;;  %v4740_v16 = vpop.f32.mrb[7].mxu0 }
 0x334   : > { %v4922_v13 = vmax.f32 %v4890_v22, 0.0  ;;  %v4891_v55 = vadd.f32 %v12183_v18, %v4740_v16 }
 0x335   : > { %4957 = vst [vmem:[#allocation2 + $0x88] sm:$0xff] %v4924_v50  ;;  %v4925_v15 = vmax.f32 %v4893_v23, 0.0 }
 0x336   : > { %4955 = vst [vmem:[#allocation2 + $0x68] sm:$0xff] %v4922_v13  ;;  %v4923_v6 = vmax.f32 %v4891_v55, 0.0  ;;  %v5024_v28 = vld [vmem:[#allocation2 + $0x48] ss:$2 sm:$0xff] }
 0x337   : > { %4958 = vst [vmem:[#allocation2 + $0x90] sm:$0xff] %v4925_v15  ;;  %v5037_v44 = vpack.c.bf16 %v5024_v28, %v5022_v47  ;;  %v9996_v47 = vld [vmem:[#allocation4 + $0x28] sm:$0xff]  }
 0x338   : > { %4956 = vst [vmem:[#allocation2 + $0x70] sm:$0xff] %v4923_v6  ;;  %v9126_v11 = vpop.f32.mrb[8].mxu0 }
 0x339   : > { %v4896_v7 = vadd.f32 %v9126_v11, %v12183_v18  ;;  %v4753_v59 = vpop.f32.mrb[9].mxu0  ;;  %9164 = vmatprep.mubr.bf16.mxu1 %v5037_v44 }
 0x33a   : > { %v4894_v46 = vadd.f32 %v12183_v18, %v4753_v59  ;;  %v9127_v25 = vpop.f32.mrb[10].mxu0 }
 0x33b   : > { %v4928_v8 = vmax.f32 %v4896_v7, 0.0  ;;  %v4897_v4 = vadd.f32 %v9127_v25, %v12183_v18  ;;  %v4756_v38 = vpop.f32.mrb[11].mxu0  ;;  %v9997_v25 = vld [vmem:[#allocation4 + $0x30] sm:$0xff]  }
 0x33c   : > { %v4926_v63 = vmax.f32 %v4894_v46, 0.0  ;;  %v4895_v51 = vadd.f32 %v12183_v18, %v4756_v38 }
 0x33d   : > { %4961 = vst [vmem:[#allocation2 + $0xc8] sm:$0xff] %v4928_v8  ;;  %v4929_v33 = vmax.f32 %v4897_v4, 0.0 }
 0x33e   : > { %4959 = vst [vmem:[#allocation2 + $0xa8] sm:$0xff] %v4926_v63  ;;  %v4927_v61 = vmax.f32 %v4895_v51, 0.0  ;;  %v5026_v42 = vld [vmem:[#allocation2 + $0x88] ss:$2 sm:$0xff] }
 0x33f   : > { %4962 = vst [vmem:[#allocation2 + $0xd0] sm:$0xff] %v4929_v33  ;;  %v9998_v51 = vld [vmem:[#allocation4 + $0x38] sm:$0xff]  }
 0x340   : > { %4960 = vst [vmem:[#allocation2 + $0xb0] sm:$0xff] %v4927_v61  ;;  %v9130_v45 = vpop.f32.mrb[12].mxu0 }
 0x341   : > { %v4900_v49 = vadd.f32 %v9130_v45, %v12183_v18  ;;  %v4769_v60 = vpop.f32.mrb[13].mxu0 }
 0x342   : > { %v4898_v62 = vadd.f32 %v12183_v18, %v4769_v60  ;;  %v9131_v35 = vpop.f32.mrb[14].mxu0 }
 0x343   : > { %v4932_v14 = vmax.f32 %v4900_v49, 0.0  ;;  %v4901_v5 = vadd.f32 %v9131_v35, %v12183_v18  ;;  %v4772_v2 = vpop.f32.mrb[15].mxu0 }
 0x344   : > { %v4930_v31 = vmax.f32 %v4898_v62, 0.0  ;;  %v4899_v41 = vadd.f32 %v12183_v18, %v4772_v2 }
 0x345   : > { %4965 = vst [vmem:[#allocation2 + $0x108] sm:$0xff] %v4932_v14  ;;  %v4933_v21 = vmax.f32 %v4901_v5, 0.0  ;;  %v9999_v5 = vld [vmem:[#allocation4 + $0x80] sm:$0xff]  }
 0x346   : > { %4963 = vst [vmem:[#allocation2 + $0xe8] sm:$0xff] %v4930_v31  ;;  %v4931_v53 = vmax.f32 %v4899_v41, 0.0  ;;  %v5028_v39 = vld [vmem:[#allocation2 + $0xc8] ss:$2 sm:$0xff] }
 0x347   : > { %4966 = vst [vmem:[#allocation2 + $0x110] sm:$0xff] %v4933_v21  ;;  %v5038_v37 = vpack.c.bf16 %v5028_v39, %v5026_v42  ;;  %v4986_v21 = vld [vmem:[#allocation2 + $0x7] ss:$2 sm:$0xff] }
 0x348   : > { %4964 = vst [vmem:[#allocation2 + $0xf0] sm:$0xff] %v4931_v53  ;;  %v9134_v40 = vpop.f32.mrb[16].mxu0  ;;  %v4988_v53 = vld [vmem:[#allocation2 + $0x47] ss:$2 sm:$0xff] }
 0x349   : > { %v4904_v20 = vadd.f32 %v9134_v40, %v12183_v18  ;;  %v4785_v56 = vpop.f32.mrb[17].mxu0  ;;  %9165 = vmatmul.mubr.bf16.vlgmr.msra.gmra.mrb[0].mxu1 %v5038_v37  ;;  %v5001_v40 = vpack.c.bf16 %v4988_v53, %v4986_v21  ;;  %v10021_v21 = vld [vmem:[#allocation4 + $0x130] sm:$0xff]   ;;  %v10022_v53 = vld [vmem:[#allocation4 + $0x138] sm:$0xff]  }
 0x34a   : > { %v4902_v43 = vadd.f32 %v12183_v18, %v4785_v56  ;;  %v9135_v29 = vpop.f32.mrb[18].mxu0  ;;  %9173 = vmatpush3.bf16.msra.mxu1 %v12177_v54 }
 0x34b   : > { %v4936_v48 = vmax.f32 %v4904_v20, 0.0  ;;  %v4905_v10 = vadd.f32 %v9135_v29, %v12183_v18  ;;  %v4788_v3 = vpop.f32.mrb[19].mxu0  ;;  %9174 = vmatprep.subr.bf16.mxu1 %v9992_v58  ;;  %v4992_v20 = vld [vmem:[#allocation2 + $0xc7] ss:$2 sm:$0xff] }
 0x34c   : > { %v4934_v27 = vmax.f32 %v4902_v43, 0.0  ;;  %v4903_v26 = vadd.f32 %v12183_v18, %v4788_v3  ;;  %v4990_v43 = vld [vmem:[#allocation2 + $0x87] ss:$2 sm:$0xff] }
 0x34d   : > { %4969 = vst [vmem:[#allocation2 + $0x148] sm:$0xff] %v4936_v48  ;;  %v4937_v17 = vmax.f32 %v4905_v10, 0.0  ;;  %v10000_v48 = vld [vmem:[#allocation4 + $0x88] sm:$0xff]   ;;  %v10001_v3 = vld [vmem:[#allocation4 + $0x90] sm:$0xff]  }
 0x34e   : > { %4967 = vst [vmem:[#allocation2 + $0x128] sm:$0xff] %v4934_v27  ;;  %v4935_v36 = vmax.f32 %v4903_v26, 0.0  ;;  %9175 = vmatpush3.bf16.msra.mxu1 %v9992_v58  ;;  %v5030_v16 = vld [vmem:[#allocation2 + $0x108] ss:$2 sm:$0xff]  ;;  %v4994_v29 = vld [vmem:[#allocation2 + $0x107] ss:$2 sm:$0xff] }
 0x34f   : > { %4970 = vst [vmem:[#allocation2 + $0x150] sm:$0xff] %v4937_v17  ;;  %9176 = vmatprep.subr.bf16.mxu1 %v9993_v1  ;;  %v5285_v27 = vld [vmem:[#allocation2 + $0x9] ss:$2 sm:$0xff] }
 0x350   : > { %4968 = vst [vmem:[#allocation2 + $0x130] sm:$0xff] %v4935_v36  ;;  %v9138_v24 = vpop.f32.mrb[20].mxu0  ;;  %v5287_v26 = vld [vmem:[#allocation2 + $0x49] ss:$2 sm:$0xff] }
 0x351   : > { %v4908_v54 = vadd.f32 %v9138_v24, %v12183_v18  ;;  %v4801_v57 = vpop.f32.mrb[21].mxu0  ;;  %v5300_v24 = vpack.c.bf16 %v5287_v26, %v5285_v27  ;;  %v10026_v27 = vld [vmem:[#allocation4 + $0x158] sm:$0xff]  }
 0x352   : > { %v4906_v0 = vadd.f32 %v12183_v18, %v4801_v57  ;;  %v9139_v52 = vpop.f32.mrb[22].mxu0  ;;  %9177 = vmatpush3.bf16.msra.mxu1 %v9993_v1  ;;  %v10004_v57 = vld [vmem:[#allocation4 + $0xa8] sm:$0xff]  }
 0x353   : > { %v4940_v30 = vmax.f32 %v4908_v54, 0.0  ;;  %v4909_v19 = vadd.f32 %v9139_v52, %v12183_v18  ;;  %v4804_v32 = vpop.f32.mrb[23].mxu0  ;;  %9178 = vmatprep.subr.bf16.mxu1 %v9994_v9  ;;  %v10003_v54 = vld [vmem:[#allocation4 + $0xa0] sm:$0xff]   ;;  %v10006_v52 = vld [vmem:[#allocation4 + $0xb8] sm:$0xff]  }
 0x354   : > { %v4938_v22 = vmax.f32 %v4906_v0, 0.0  ;;  %v4907_v34 = vadd.f32 %v12183_v18, %v4804_v32  ;;  %v10005_v0 = vld [vmem:[#allocation4 + $0xb0] sm:$0xff]  }
 0x355   : > { %4973 = vst [vmem:[#allocation2 + $0x188] sm:$0xff] %v4940_v30  ;;  %v4941_v50 = vmax.f32 %v4909_v19, 0.0  ;;  %v10007_v30 = vld [vmem:[#allocation4 + $0xc0] sm:$0xff]  }
 0x356   : > { %4971 = vst [vmem:[#allocation2 + $0x168] sm:$0xff] %v4938_v22  ;;  %v4939_v23 = vmax.f32 %v4907_v34, 0.0  ;;  %v5032_v13 = vld [vmem:[#allocation2 + $0x148] ss:$2 sm:$0xff]  ;;  %9179 = vmatpush3.bf16.msra.mxu1 %v9994_v9  ;;  %v4996_v56 = vld [vmem:[#allocation2 + $0x147] ss:$2 sm:$0xff] }
 0x357   : > { %4974 = vst [vmem:[#allocation2 + $0x190] sm:$0xff] %v4941_v50  ;;  %v5039_v55 = vpack.c.bf16 %v5032_v13, %v5030_v16  ;;  %9180 = vmatprep.subr.bf16.mxu1 %v9995_v12  ;;  %v5003_v10 = vpack.c.bf16 %v4996_v56, %v4994_v29  ;;  %v10002_v9 = vld [vmem:[#allocation4 + $0x98] sm:$0xff]   ;;  %v10008_v50 = vld [vmem:[#allocation4 + $0xc8] sm:$0xff]   ;;  %v10009_v16 = vld [vmem:[#allocation4 + $0xd0] sm:$0xff]  }
 0x358   : > { %4972 = vst [vmem:[#allocation2 + $0x170] sm:$0xff] %v4939_v23  ;;  %v9142_v15 = vpop.f32.mrb[24].mxu0  ;;  %v5291_v19 = vld [vmem:[#allocation2 + $0xc9] ss:$2 sm:$0xff]  ;;  %v10024_v56 = vld [vmem:[#allocation4 + $0x148] sm:$0xff]  }
 0x359   : > { %v4912_v6 = vadd.f32 %v9142_v15, %v12183_v18  ;;  %v4817_v28 = vpop.f32.mrb[25].mxu0  ;;  %9168 = vmatprep.mubr.bf16.mxu1 %v5039_v55  ;;  %v5295_v32 = vld [vmem:[#allocation2 + $0x149] ss:$2 sm:$0xff] }
 0x35a   : > { %v4910_v44 = vadd.f32 %v12183_v18, %v4817_v28  ;;  %v9143_v11 = vpop.f32.mrb[26].mxu0  ;;  %9181 = vmatpush3.bf16.msra.mxu1 %v9995_v12  ;;  %v5289_v12 = vld [vmem:[#allocation2 + $0x89] ss:$2 sm:$0xff] }
 0x35b   : > { %v4944_v7 = vmax.f32 %v4912_v6, 0.0  ;;  %v4913_v59 = vadd.f32 %v9143_v11, %v12183_v18  ;;  %v4820_v46 = vpop.f32.mrb[27].mxu0  ;;  %9182 = vmatprep.subr.bf16.mxu1 %v9996_v47  ;;  %v5301_v22 = vpack.c.bf16 %v5291_v19, %v5289_v12  ;;  %v5293_v34 = vld [vmem:[#allocation2 + $0x109] ss:$2 sm:$0xff] }
 0x35c   : > { %v4942_v8 = vmax.f32 %v4910_v44, 0.0  ;;  %v4911_v4 = vadd.f32 %v12183_v18, %v4820_v46  ;;  %v5302_v23 = vpack.c.bf16 %v5295_v32, %v5293_v34  ;;  %v5445_v55 = vld [vmem:[#allocation2 + $0x67] ss:$2 sm:$0xff]  ;;  %v10032_v32 = vld [vmem:[#allocation4 + $0x188] sm:$0xff]  }
 0x35d   : > { %4977 = vst [vmem:[#allocation2 + $0x1c8] sm:$0xff] %v4944_v7  ;;  %v4945_v38 = vmax.f32 %v4913_v59, 0.0  ;;  %v5443_v6 = vld [vmem:[#allocation2 + $0x27] ss:$2 sm:$0xff]  ;;  %v10012_v7 = vld [vmem:[#allocation4 + $0xe8] sm:$0xff]  }
 0x35e   : > { %4975 = vst [vmem:[#allocation2 + $0x1a8] sm:$0xff] %v4942_v8  ;;  %v4943_v63 = vmax.f32 %v4911_v4, 0.0  ;;  %9183 = vmatpush3.bf16.msra.mxu1 %v9996_v47  ;;  %v5034_v39 = vld [vmem:[#allocation2 + $0x188] ss:$2 sm:$0xff]  ;;  %v4998_v17 = vld [vmem:[#allocation2 + $0x187] ss:$2 sm:$0xff]  ;;  %v5458_v44 = vpack.c.bf16 %v5445_v55, %v5443_v6 }
 0x35f   : > { %4978 = vst [vmem:[#allocation2 + $0x1d0] sm:$0xff] %v4945_v38  ;;  %9184 = vmatprep.subr.bf16.mxu1 %v9997_v25  ;;  %v5297_v47 = vld [vmem:[#allocation2 + $0x189] ss:$2 sm:$0xff]  ;;  %v10013_v59 = vld [vmem:[#allocation4 + $0xf0] sm:$0xff]   ;;  %v10036_v6 = vld [vmem:[#allocation4 + $0x1a8] sm:$0xff]  }
 0x360   : > { %4976 = vst [vmem:[#allocation2 + $0x1b0] sm:$0xff] %v4943_v63  ;;  %v9146_v33 = vpop.f32.mrb[28].mxu0  ;;  %v10010_v28 = vld [vmem:[#allocation4 + $0xd8] sm:$0xff]   ;;  %v10011_v11 = vld [vmem:[#allocation4 + $0xe0] sm:$0xff]  }
 0x361   : > { %v4916_v61 = vadd.f32 %v9146_v33, %v12183_v18  ;;  %v4833_v45 = vpop.f32.mrb[29].mxu0  ;;  %v10014_v46 = vld [vmem:[#allocation4 + $0xf8] sm:$0xff]   ;;  %v10016_v33 = vld [vmem:[#allocation4 + $0x108] sm:$0xff]  }
 0x362   : > { %v4914_v49 = vadd.f32 %v12183_v18, %v4833_v45  ;;  %v9147_v60 = vpop.f32.mrb[30].mxu0  ;;  %9185 = vmatpush3.bf16.msra.mxu1 %v9997_v25  ;;  %v10015_v25 = vld [vmem:[#allocation4 + $0x100] sm:$0xff]   ;;  %v10017_v45 = vld [vmem:[#allocation4 + $0x110] sm:$0xff]   ;;  %v10034_v55 = vld [vmem:[#allocation4 + $0x198] sm:$0xff]  }
 0x363   : > { %v4948_v62 = vmax.f32 %v4916_v61, 0.0  ;;  %v4917_v35 = vadd.f32 %v9147_v60, %v12183_v18  ;;  %v4836_v14 = vpop.f32.mrb[31].mxu0  ;;  %9186 = vmatprep.subr.bf16.mxu1 %v9998_v51  ;;  %v5449_v8 = vld [vmem:[#allocation2 + $0xe7] ss:$2 sm:$0xff]  ;;  %v5603_v60 = vld [vmem:[#allocation2 + $0x68] ss:$2 sm:$0xff] }
 0x364   : > { %v4946_v2 = vmax.f32 %v4914_v49, 0.0  ;;  %v4915_v31 = vadd.f32 %v12183_v18, %v4836_v14  ;;  %v5002_v18 = vpack.c.bf16 %v4992_v20, %v4990_v43  ;;  %v5453_v4 = vld [vmem:[#allocation2 + $0x167] ss:$2 sm:$0xff]  ;;  %v5601_v14 = vld [vmem:[#allocation2 + $0x28] ss:$2 sm:$0xff] }
 0x365   : > { %4981 = vst [vmem:[#allocation2 + $0x208] sm:$0xff] %v4948_v62  ;;  %v4949_v41 = vmax.f32 %v4917_v35, 0.0  ;;  %v5447_v38 = vld [vmem:[#allocation2 + $0xa7] ss:$2 sm:$0xff]  ;;  %v5609_v20 = vld [vmem:[#allocation2 + $0x128] ss:$2 sm:$0xff] }
 0x366   : > { %4979 = vst [vmem:[#allocation2 + $0x1e8] sm:$0xff] %v4946_v2  ;;  %v4947_v42 = vmax.f32 %v4915_v31, 0.0  ;;  %v5036_v37 = vld [vmem:[#allocation2 + $0x1c8] ss:$2 sm:$0xff]  ;;  %9187 = vmatpush3.bf16.msra.mxu1 %v9998_v51  ;;  %v5000_v1 = vld [vmem:[#allocation2 + $0x1c7] ss:$2 sm:$0xff]  ;;  %v5459_v63 = vpack.c.bf16 %v5449_v8, %v5447_v38  ;;  %v5616_v2 = vpack.c.bf16 %v5603_v60, %v5601_v14 }
 0x367   : > { %4982 = vst [vmem:[#allocation2 + $0x210] sm:$0xff] %v4949_v41  ;;  %v5040_v58 = vpack.c.bf16 %v5036_v37, %v5034_v39  ;;  %9196 = vmatprep.subr.bf16.mxu1 %v9999_v5  ;;  %v5004_v36 = vpack.c.bf16 %v5000_v1, %v4998_v17  ;;  %v5299_v13 = vld [vmem:[#allocation2 + $0x1c9] ss:$2 sm:$0xff]  ;;  %v10020_v41 = vld [vmem:[#allocation4 + $0x128] sm:$0xff]   ;;  %v5607_v39 = vld [vmem:[#allocation2 + $0xe8] ss:$2 sm:$0xff] }
 0x368   : > { %4980 = vst [vmem:[#allocation2 + $0x1f0] sm:$0xff] %v4947_v42  ;;  %v5303_v15 = vpack.c.bf16 %v5299_v13, %v5297_v47  ;;  %v5451_v51 = vld [vmem:[#allocation2 + $0x127] ss:$2 sm:$0xff]  ;;  %v5611_v37 = vld [vmem:[#allocation2 + $0x168] ss:$2 sm:$0xff]  ;;  %v10044_v14 = vld [vmem:[#allocation4 + $0x1e8] sm:$0xff]  }
 0x369   : > { %9169 = vmatmul.mubr.bf16.gmra.mrb[4].mxu1 %v5040_v58  ;;  %v5460_v61 = vpack.c.bf16 %v5453_v4, %v5451_v51  ;;  %v5455_v62 = vld [vmem:[#allocation2 + $0x1a7] ss:$2 sm:$0xff]  ;;  %v5605_v58 = vld [vmem:[#allocation2 + $0xa8] ss:$2 sm:$0xff]  ;;  %v5618_v43 = vpack.c.bf16 %v5611_v37, %v5609_v20  ;;  %v10040_v4 = vld [vmem:[#allocation4 + $0x1c8] sm:$0xff]  }
 0x36a   : > { %9188 = vmatprep.mubr.bf16.mxu1 %v5001_v40  ;;  %v10019_v31 = vld [vmem:[#allocation4 + $0x120] sm:$0xff]   ;;  %v5617_v40 = vpack.c.bf16 %v5607_v39, %v5605_v58  ;;  %v10042_v60 = vld [vmem:[#allocation4 + $0x1d8] sm:$0xff]   ;;  %v10048_v37 = vld [vmem:[#allocation4 + $0x208] sm:$0xff]  }
 0x36b   : > { %v10023_v42 = vld [vmem:[#allocation4 + $0x140] sm:$0xff]  }
 0x36c   : > { %v5759_v1 = vld [vmem:[#allocation2 + $0x29] ss:$2 sm:$0xff]  ;;  %v6084_v39 = vld [vmem:[#allocation2 + $0x148] ss:$2 sm:$0xff] }
 0x36d   : > { %v10027_v17 = vld [vmem:[#allocation4 + $0x160] sm:$0xff]  }
 0x36e   : > { %v5767_v19 = vld [vmem:[#allocation2 + $0x129] ss:$2 sm:$0xff]  ;;  %v6090_v20 = vld [vmem:[#allocation2 + $0x208] ss:$2 sm:$0xff] }
 0x36f   : > { %v5457_v49 = vld [vmem:[#allocation2 + $0x1e7] ss:$2 sm:$0xff]  ;;  %v5615_v29 = vld [vmem:[#allocation2 + $0x1e8] ss:$2 sm:$0xff] }
 0x370   : > { %v5461_v35 = vpack.c.bf16 %v5457_v49, %v5455_v62  ;;  %v5773_v34 = vld [vmem:[#allocation2 + $0x1e9] ss:$2 sm:$0xff]  ;;  %v6076_v49 = vld [vmem:[#allocation2 + $0x48] ss:$2 sm:$0xff] }
 0x371   : > { %9189 = vmatmul.mubr.bf16.vlgmr.msra.gmra.mrb[0].mxu1 %v5002_v18  ;;  %v10025_v18 = vld [vmem:[#allocation4 + $0x150] sm:$0xff]  }
 0x372   : > { %9197 = vmatpush3.bf16.msra.mxu1 %v9999_v5  ;;  %9192 = vmatprep.mubr.bf16.mxu1 %v5003_v10  ;;  %v10018_v5 = vld [vmem:[#allocation4 + $0x118] sm:$0xff]  }
 0x373   : > { %9198 = vmatprep.subr.bf16.mxu1 %v10000_v48  ;;  %v5613_v10 = vld [vmem:[#allocation2 + $0x1a8] ss:$2 sm:$0xff]  ;;  %v5918_v13 = vld [vmem:[#allocation2 + $0x47] ss:$2 sm:$0xff] }
 0x374   : > { %v5926_v8 = vld [vmem:[#allocation2 + $0x147] ss:$2 sm:$0xff] }
 0x375   : > { %v5932_v51 = vld [vmem:[#allocation2 + $0x207] ss:$2 sm:$0xff] }
 0x376   : > { %9199 = vmatpush3.bf16.msra.mxu1 %v10000_v48  ;;  %v5761_v48 = vld [vmem:[#allocation2 + $0x69] ss:$2 sm:$0xff] }
 0x377   : > { %9200 = vmatprep.subr.bf16.mxu1 %v10001_v3  ;;  %v5774_v26 = vpack.c.bf16 %v5761_v48, %v5759_v1  ;;  %v10050_v48 = vld [vmem:[#allocation4 + $0x218] sm:$0xff]   ;;  %v10052_v1 = vld [vmem:[#allocation4 + $0x228] sm:$0xff]  }
 0x379   : > { %9193 = vmatmul.mubr.bf16.gmra.mrb[4].mxu1 %v5004_v36  ;;  %v10028_v36 = vld [vmem:[#allocation4 + $0x168] sm:$0xff]  }
 0x37a   : > { %9201 = vmatpush3.bf16.msra.mxu1 %v10001_v3  ;;  %9212 = vmatprep.mubr.bf16.mxu1 %v5300_v24  ;;  %v5619_v3 = vpack.c.bf16 %v5615_v29, %v5613_v10  ;;  %v10030_v24 = vld [vmem:[#allocation4 + $0x178] sm:$0xff]  }
 0x37b   : > { %9202 = vmatprep.subr.bf16.mxu1 %v10002_v9  ;;  %v6234_v29 = vld [vmem:[#allocation2 + $0x49] ss:$2 sm:$0xff] }
 0x37e   : > { %9203 = vmatpush3.bf16.msra.mxu1 %v10002_v9  ;;  %v10029_v9 = vld [vmem:[#allocation4 + $0x170] sm:$0xff]  }
 0x37f   : > { %9204 = vmatprep.subr.bf16.mxu1 %v10003_v54 }
 0x382   : > { %9205 = vmatpush3.bf16.msra.mxu1 %v10003_v54  ;;  %v10031_v54 = vld [vmem:[#allocation4 + $0x180] sm:$0xff]  }
 0x383   : > { %9206 = vmatprep.subr.bf16.mxu1 %v10004_v57 }
 0x386   : > { %9207 = vmatpush3.bf16.msra.mxu1 %v10004_v57  ;;  %v5765_v57 = vld [vmem:[#allocation2 + $0xe9] ss:$2 sm:$0xff] }
 0x387   : > { %9208 = vmatprep.subr.bf16.mxu1 %v10005_v0 }
 0x38a   : > { %9209 = vmatpush3.bf16.msra.mxu1 %v10005_v0  ;;  %v5769_v0 = vld [vmem:[#allocation2 + $0x169] ss:$2 sm:$0xff] }
 0x38b   : > { %9210 = vmatprep.subr.bf16.mxu1 %v10006_v52  ;;  %v5776_v12 = vpack.c.bf16 %v5769_v0, %v5767_v19  ;;  %v12218_v0 = vld [vmem:[#allocation2 + $0x18] sm:$0xff]  ;;  %v6246_v19 = vld [vmem:[#allocation2 + $0x1c9] ss:$2 sm:$0xff] }
 0x38e   : > { %9211 = vmatpush3.bf16.msra.mxu1 %v10006_v52  ;;  %v5763_v52 = vld [vmem:[#allocation2 + $0xa9] ss:$2 sm:$0xff] }
 0x38f   : > { %9220 = vmatprep.subr.bf16.mxu1 %v10007_v30 }
 0x391   : > { %9213 = vmatmul.mubr.bf16.vlgmr.msra.gmra.mrb[0].mxu1 %v5301_v22  ;;  %v10033_v22 = vld [vmem:[#allocation4 + $0x190] sm:$0xff]  }
 0x392   : > { %9216 = vmatprep.mubr.bf16.mxu1 %v5302_v23  ;;  %9221 = vmatpush3.bf16.msra.mxu1 %v10007_v30  ;;  %v5775_v30 = vpack.c.bf16 %v5765_v57, %v5763_v52  ;;  %v5771_v23 = vld [vmem:[#allocation2 + $0x1a9] ss:$2 sm:$0xff] }
 0x393   : > { %9222 = vmatprep.subr.bf16.mxu1 %v10008_v50  ;;  %v6242_v57 = vld [vmem:[#allocation2 + $0x149] ss:$2 sm:$0xff] }
 0x396   : > { %9223 = vmatpush3.bf16.msra.mxu1 %v10008_v50  ;;  %v5920_v50 = vld [vmem:[#allocation2 + $0x87] ss:$2 sm:$0xff] }
 0x397   : > { %9224 = vmatprep.subr.bf16.mxu1 %v10009_v16  ;;  %v5933_v47 = vpack.c.bf16 %v5920_v50, %v5918_v13  ;;  %v10059_v50 = vld [vmem:[#allocation4 + $0x2a0] sm:$0xff]   ;;  %v10062_v13 = vld [vmem:[#allocation4 + $0x2b8] sm:$0xff]  }
 0x399   : > { %9217 = vmatmul.mubr.bf16.gmra.mrb[4].mxu1 %v5303_v15  ;;  %v10035_v15 = vld [vmem:[#allocation4 + $0x1a0] sm:$0xff]  }
 0x39a   : > { %9225 = vmatpush3.bf16.msra.mxu1 %v10009_v16  ;;  %9236 = vmatprep.mubr.bf16.mxu1 %v5458_v44  ;;  %v5777_v16 = vpack.c.bf16 %v5773_v34, %v5771_v23  ;;  %v10038_v44 = vld [vmem:[#allocation4 + $0x1b8] sm:$0xff]   ;;  %v10060_v23 = vld [vmem:[#allocation4 + $0x2a8] sm:$0xff]  }
 0x39b   : > { %9226 = vmatprep.subr.bf16.mxu1 %v10010_v28  ;;  %v10058_v34 = vld [vmem:[#allocation4 + $0x298] sm:$0xff]  }
 0x39e   : > { %9227 = vmatpush3.bf16.msra.mxu1 %v10010_v28  ;;  %v10037_v28 = vld [vmem:[#allocation4 + $0x1b0] sm:$0xff]  }
 0x39f   : > { %9228 = vmatprep.subr.bf16.mxu1 %v10011_v11 }
 0x3a2   : > { %9229 = vmatpush3.bf16.msra.mxu1 %v10011_v11  ;;  %v10039_v11 = vld [vmem:[#allocation4 + $0x1c0] sm:$0xff]  }
 0x3a3   : > { %9230 = vmatprep.subr.bf16.mxu1 %v10012_v7 }
 0x3a6   : > { %9231 = vmatpush3.bf16.msra.mxu1 %v10012_v7  ;;  %v5924_v7 = vld [vmem:[#allocation2 + $0x107] ss:$2 sm:$0xff] }
 0x3a7   : > { %9232 = vmatprep.subr.bf16.mxu1 %v10013_v59 }
 0x3aa   : > { %9233 = vmatpush3.bf16.msra.mxu1 %v10013_v59  ;;  %v5928_v59 = vld [vmem:[#allocation2 + $0x187] ss:$2 sm:$0xff] }
 0x3ab   : > { %9234 = vmatprep.subr.bf16.mxu1 %v10014_v46  ;;  %v5935_v38 = vpack.c.bf16 %v5928_v59, %v5926_v8 }
 0x3ae   : > { %9235 = vmatpush3.bf16.msra.mxu1 %v10014_v46  ;;  %v5922_v46 = vld [vmem:[#allocation2 + $0xc7] ss:$2 sm:$0xff] }
 0x3af   : > { %9244 = vmatprep.subr.bf16.mxu1 %v10015_v25 }
 0x3b1   : > { %9237 = vmatmul.mubr.bf16.vlgmr.msra.gmra.mrb[0].mxu1 %v5459_v63  ;;  %v10041_v63 = vld [vmem:[#allocation4 + $0x1d0] sm:$0xff]  }
 0x3b2   : > { %9240 = vmatprep.mubr.bf16.mxu1 %v5460_v61  ;;  %9245 = vmatpush3.bf16.msra.mxu1 %v10015_v25  ;;  %v5934_v25 = vpack.c.bf16 %v5924_v7, %v5922_v46  ;;  %v5930_v61 = vld [vmem:[#allocation2 + $0x1c7] ss:$2 sm:$0xff] }
 0x3b3   : > { %9246 = vmatprep.subr.bf16.mxu1 %v10016_v33 }
 0x3b6   : > { %9247 = vmatpush3.bf16.msra.mxu1 %v10016_v33  ;;  %v6078_v33 = vld [vmem:[#allocation2 + $0x88] ss:$2 sm:$0xff] }
 0x3b7   : > { %9248 = vmatprep.subr.bf16.mxu1 %v10017_v45  ;;  %v6091_v62 = vpack.c.bf16 %v6078_v33, %v6076_v49 }
 0x3b9   : > { %9241 = vmatmul.mubr.bf16.gmra.mrb[4].mxu1 %v5461_v35  ;;  %v10043_v35 = vld [vmem:[#allocation4 + $0x1e0] sm:$0xff]  }
 0x3ba   : > { %9249 = vmatpush3.bf16.msra.mxu1 %v10017_v45  ;;  %9260 = vmatprep.mubr.bf16.mxu1 %v5616_v2  ;;  %v5936_v45 = vpack.c.bf16 %v5932_v51, %v5930_v61  ;;  %v10046_v2 = vld [vmem:[#allocation4 + $0x1f8] sm:$0xff]  }
 0x3bb   : > { %9250 = vmatprep.subr.bf16.mxu1 %v10018_v5 }
 0x3be   : > { %9251 = vmatpush3.bf16.msra.mxu1 %v10018_v5  ;;  %v10045_v5 = vld [vmem:[#allocation4 + $0x1f0] sm:$0xff]  }
 0x3bf   : > { %9252 = vmatprep.subr.bf16.mxu1 %v10019_v31 }
 0x3c2   : > { %9253 = vmatpush3.bf16.msra.mxu1 %v10019_v31  ;;  %v10047_v31 = vld [vmem:[#allocation4 + $0x200] sm:$0xff]  }
 0x3c3   : > { %9254 = vmatprep.subr.bf16.mxu1 %v10020_v41 }
 0x3c6   : > { %9255 = vmatpush3.bf16.msra.mxu1 %v10020_v41  ;;  %v6082_v41 = vld [vmem:[#allocation2 + $0x108] ss:$2 sm:$0xff] }
 0x3c7   : > { %9256 = vmatprep.subr.bf16.mxu1 %v10021_v21 }
 0x3ca   : > { %9257 = vmatpush3.bf16.msra.mxu1 %v10021_v21  ;;  %v6086_v21 = vld [vmem:[#allocation2 + $0x188] ss:$2 sm:$0xff] }
 0x3cb   : > { %9258 = vmatprep.subr.bf16.mxu1 %v10022_v53  ;;  %v6093_v58 = vpack.c.bf16 %v6086_v21, %v6084_v39  ;;  %v10063_v39 = vld [vmem:[#allocation4 + $0x240] sm:$0xff]  }
 0x3ce   : > { %9259 = vmatpush3.bf16.msra.mxu1 %v10022_v53  ;;  %v6080_v53 = vld [vmem:[#allocation2 + $0xc8] ss:$2 sm:$0xff] }
 0x3cf   : > { %9268 = vmatprep.subr.bf16.mxu1 %v10023_v42 }
 0x3d1   : > { %9261 = vmatmul.mubr.bf16.vlgmr.msra.gmra.mrb[0].mxu1 %v5617_v40  ;;  %v10049_v40 = vld [vmem:[#allocation4 + $0x210] sm:$0xff]  }
 0x3d2   : > { %9264 = vmatprep.mubr.bf16.mxu1 %v5618_v43  ;;  %9269 = vmatpush3.bf16.msra.mxu1 %v10023_v42  ;;  %v6092_v42 = vpack.c.bf16 %v6082_v41, %v6080_v53  ;;  %v6088_v43 = vld [vmem:[#allocation2 + $0x1c8] ss:$2 sm:$0xff] }
 0x3d3   : > { %9270 = vmatprep.subr.bf16.mxu1 %v10024_v56 }
 0x3d6   : > { %9271 = vmatpush3.bf16.msra.mxu1 %v10024_v56  ;;  %v6236_v56 = vld [vmem:[#allocation2 + $0x89] ss:$2 sm:$0xff] }
 0x3d7   : > { %9272 = vmatprep.subr.bf16.mxu1 %v10025_v18  ;;  %v6249_v10 = vpack.c.bf16 %v6236_v56, %v6234_v29  ;;  %v10067_v56 = vld [vmem:[#allocation4 + $0x260] sm:$0xff]  }
 0x3d9   : > { %9265 = vmatmul.mubr.bf16.gmra.mrb[4].mxu1 %v5619_v3  ;;  %v10051_v3 = vld [vmem:[#allocation4 + $0x220] sm:$0xff]  }
 0x3da   : > { %9273 = vmatpush3.bf16.msra.mxu1 %v10025_v18  ;;  %9284 = vmatprep.mubr.bf16.mxu1 %v5774_v26  ;;  %v6094_v18 = vpack.c.bf16 %v6090_v20, %v6088_v43  ;;  %v10054_v26 = vld [vmem:[#allocation4 + $0x238] sm:$0xff]   ;;  %v10068_v43 = vld [vmem:[#allocation4 + $0x268] sm:$0xff]  }
 0x3db   : > { %9274 = vmatprep.subr.bf16.mxu1 %v10026_v27  ;;  %v10066_v20 = vld [vmem:[#allocation4 + $0x258] sm:$0xff]  }
 0x3de   : > { %9275 = vmatpush3.bf16.msra.mxu1 %v10026_v27  ;;  %v10053_v27 = vld [vmem:[#allocation4 + $0x230] sm:$0xff]  }
 0x3df   : > { %9276 = vmatprep.subr.bf16.mxu1 %v10027_v17 }
 0x3e2   : > { %9277 = vmatpush3.bf16.msra.mxu1 %v10027_v17  ;;  %v6240_v17 = vld [vmem:[#allocation2 + $0x109] ss:$2 sm:$0xff] }
 0x3e3   : > { %9278 = vmatprep.subr.bf16.mxu1 %v10028_v36 }
 0x3e6   : > { %9279 = vmatpush3.bf16.msra.mxu1 %v10028_v36  ;;  %v6244_v36 = vld [vmem:[#allocation2 + $0x189] ss:$2 sm:$0xff] }
 0x3e7   : > { %9280 = vmatprep.subr.bf16.mxu1 %v10029_v9  ;;  %v6251_v52 = vpack.c.bf16 %v6244_v36, %v6242_v57  ;;  %v10075_v57 = vld [vmem:[#allocation4 + $0x2e0] sm:$0xff]  }
 0x3ea   : > { %9281 = vmatpush3.bf16.msra.mxu1 %v10029_v9  ;;  %v6238_v9 = vld [vmem:[#allocation2 + $0xc9] ss:$2 sm:$0xff] }
 0x3eb   : > { %9282 = vmatprep.subr.bf16.mxu1 %v10030_v24 }
 0x3ee   : > { %9283 = vmatpush3.bf16.msra.mxu1 %v10030_v24  ;;  %v10055_v24 = vld [vmem:[#allocation4 + $0x280] sm:$0xff]  }
 0x3ef   : > { %9292 = vmatprep.subr.bf16.mxu1 %v10031_v54 }
 0x3f1   : > { %9285 = vmatmul.mubr.bf16.vlgmr.msra.gmra.mrb[0].mxu1 %v5775_v30  ;;  %v6248_v30 = vld [vmem:[#allocation2 + $0x209] ss:$2 sm:$0xff] }
 0x3f2   : > { %9288 = vmatprep.mubr.bf16.mxu1 %v5776_v12  ;;  %9293 = vmatpush3.bf16.msra.mxu1 %v10031_v54  ;;  %v6250_v54 = vpack.c.bf16 %v6240_v17, %v6238_v9  ;;  %v10056_v12 = vld [vmem:[#allocation4 + $0x288] sm:$0xff]   ;;  %v10071_v17 = vld [vmem:[#allocation4 + $0x2c0] sm:$0xff]  }
 0x3f3   : > { %9294 = vmatprep.subr.bf16.mxu1 %v10032_v32  ;;  %v10072_v9 = vld [vmem:[#allocation4 + $0x2c8] sm:$0xff]  }
 0x3f6   : > { %9295 = vmatpush3.bf16.msra.mxu1 %v10032_v32  ;;  %v6252_v32 = vpack.c.bf16 %v6248_v30, %v6246_v19  ;;  %v10077_v30 = vld [vmem:[#allocation4 + $0x2f0] sm:$0xff]  }
 0x3f7   : > { %9296 = vmatprep.subr.bf16.mxu1 %v10033_v22 }
 0x3f9   : > { %9289 = vmatmul.mubr.bf16.gmra.mrb[4].mxu1 %v5777_v16  ;;  %v10061_v16 = vld [vmem:[#allocation4 + $0x2b0] sm:$0xff]  }
 0x3fa   : > { %9297 = vmatpush3.bf16.msra.mxu1 %v10033_v22  ;;  %9308 = vmatprep.mubr.bf16.mxu1 %v5933_v47  ;;  %v10057_v22 = vld [vmem:[#allocation4 + $0x290] sm:$0xff]  }
 0x3fb   : > { %9298 = vmatprep.subr.bf16.mxu1 %v10034_v55 }
 0x3fe   : > { %9299 = vmatpush3.bf16.msra.mxu1 %v10034_v55  ;;  %v8415_v55 = vld [vmem:[%s12422_s3 + $0x1] ss:$0 sm:$0xff] }
 0x3ff   : > { %9300 = vmatprep.subr.bf16.mxu1 %v10035_v15 }
 0x402   : > { %9301 = vmatpush3.bf16.msra.mxu1 %v10035_v15 }
 0x403   : > { %9302 = vmatprep.subr.bf16.mxu1 %v10036_v6 }
 0x406   : > { %9303 = vmatpush3.bf16.msra.mxu1 %v10036_v6 }
 0x407   : > { %9304 = vmatprep.subr.bf16.mxu1 %v10037_v28 }
 0x40a   : > { %9305 = vmatpush3.bf16.msra.mxu1 %v10037_v28 }
 0x40b   : > { %9306 = vmatprep.subr.bf16.mxu1 %v10038_v44 }
 0x40e   : > { %9307 = vmatpush3.bf16.msra.mxu1 %v10038_v44 }
 0x40f   : > { %9316 = vmatprep.subr.bf16.mxu1 %v10039_v11 }
 0x411   : > { %9309 = vmatmul.mubr.bf16.vlgmr.msra.gmra.mrb[0].mxu1 %v5934_v25 }
 0x412   : > { %9312 = vmatprep.mubr.bf16.mxu1 %v5935_v38  ;;  %9317 = vmatpush3.bf16.msra.mxu1 %v10039_v11 }
 0x413   : > { %9318 = vmatprep.subr.bf16.mxu1 %v10040_v4 }
 0x416   : > { %9319 = vmatpush3.bf16.msra.mxu1 %v10040_v4 }
 0x417   : > { %9320 = vmatprep.subr.bf16.mxu1 %v10041_v63 }
 0x419   : > { %9313 = vmatmul.mubr.bf16.gmra.mrb[4].mxu1 %v5936_v45 }
 0x41a   : > { %9321 = vmatpush3.bf16.msra.mxu1 %v10041_v63  ;;  %9332 = vmatprep.mubr.bf16.mxu1 %v6091_v62 }
 0x41b   : > { %9322 = vmatprep.subr.bf16.mxu1 %v10042_v60 }
 0x41e   : > { %9323 = vmatpush3.bf16.msra.mxu1 %v10042_v60 }
 0x41f   : > { %9324 = vmatprep.subr.bf16.mxu1 %v10043_v35 }
 0x422   : > { %9325 = vmatpush3.bf16.msra.mxu1 %v10043_v35 }
 0x423   : > { %9326 = vmatprep.subr.bf16.mxu1 %v10044_v14 }
 0x426   : > { %9327 = vmatpush3.bf16.msra.mxu1 %v10044_v14 }
 0x427   : > { %9328 = vmatprep.subr.bf16.mxu1 %v10045_v5 }
 0x42a   : > { %9329 = vmatpush3.bf16.msra.mxu1 %v10045_v5 }
 0x42b   : > { %9330 = vmatprep.subr.bf16.mxu1 %v10046_v2 }
 0x42e   : > { %9331 = vmatpush3.bf16.msra.mxu1 %v10046_v2  ;;  %v6467_v2 = vld [vmem:[#allocation3 + $0x8] ss:$2 sm:$0xf] }
 0x42f   : > { %9340 = vmatprep.subr.bf16.mxu1 %v10047_v31 }
 0x431   : > { %9333 = vmatmul.mubr.bf16.vlgmr.msra.gmra.mrb[0].mxu1 %v6092_v42 }
 0x432   : > { %9336 = vmatprep.mubr.bf16.mxu1 %v6093_v58  ;;  %9341 = vmatpush3.bf16.msra.mxu1 %v10047_v31  ;;  %v10064_v58 = vld [vmem:[#allocation4 + $0x248] sm:$0xff]  }
 0x433   : > { %9342 = vmatprep.subr.bf16.mxu1 %v10048_v37 }
 0x436   : > { %9343 = vmatpush3.bf16.msra.mxu1 %v10048_v37 }
 0x437   : > { %9344 = vmatprep.subr.bf16.mxu1 %v10049_v40 }
 0x439   : > { %9337 = vmatmul.mubr.bf16.gmra.mrb[4].mxu1 %v6094_v18  ;;  %v10069_v18 = vld [vmem:[#allocation4 + $0x270] sm:$0xff]  }
 0x43a   : > { %9345 = vmatpush3.bf16.msra.mxu1 %v10049_v40  ;;  %9356 = vmatprep.mubr.bf16.mxu1 %v6249_v10  ;;  %v10065_v40 = vld [vmem:[#allocation4 + $0x250] sm:$0xff]  }
 0x43b   : > { %9346 = vmatprep.subr.bf16.mxu1 %v10050_v48  ;;  %v6433_v10 = vld [vmem:[#allocation3 + $0x7] ss:$2 sm:$0xf] }
 0x43e   : > { %9347 = vmatpush3.bf16.msra.mxu1 %v10050_v48  ;;  %v10070_v48 = vld [vmem:[#allocation4 + $0x278] sm:$0xff]  }
 0x43f   : > { %9348 = vmatprep.subr.bf16.mxu1 %v10051_v3 }
 0x442   : > { %9349 = vmatpush3.bf16.msra.mxu1 %v10051_v3 }
 0x443   : > { %9350 = vmatprep.subr.bf16.mxu1 %v10052_v1 }
 0x446   : > { %9351 = vmatpush3.bf16.msra.mxu1 %v10052_v1 }
 0x447   : > { %9352 = vmatprep.subr.bf16.mxu1 %v10053_v27 }
 0x44a   : > { %9353 = vmatpush3.bf16.msra.mxu1 %v10053_v27 }
 0x44b   : > { %9354 = vmatprep.subr.bf16.mxu1 %v10054_v26 }
 0x44e   : > { %9355 = vmatpush3.bf16.msra.mxu1 %v10054_v26 }
 0x44f   : > { %9364 = vmatprep.subr.bf16.mxu1 %v12218_v0 }
 0x451   : > { %9357 = vmatmul.mubr.bf16.vlgmr.msra.gmra.mrb[0].mxu1 %v6250_v54  ;;  %v10074_v54 = vld [vmem:[#allocation4 + $0x2d8] sm:$0xff]  }
 0x452   : > { %9360 = vmatprep.mubr.bf16.mxu1 %v6251_v52  ;;  %9365 = vmatpush3.bf16.msra.mxu1 %v10055_v24  ;;  %v10073_v24 = vld [vmem:[#allocation4 + $0x2d0] sm:$0xff]   ;;  %v10076_v52 = vld [vmem:[#allocation4 + $0x2e8] sm:$0xff]  }
 0x453   : > { %9366 = vmatprep.subr.bf16.mxu1 %v12218_v0 }
 0x456   : > { %9367 = vmatpush3.bf16.msra.mxu1 %v10056_v12  ;;  %v6679_v12 = vld [vmem:[#allocation3 + $0x9] ss:$2 sm:$0xf] }
 0x457   : > { %9368 = vmatprep.subr.bf16.mxu1 %v12218_v0 }
 0x459   : > { %9361 = vmatmul.mubr.bf16.gmra.mrb[4].mxu1 %v6252_v32  ;;  %v10078_v32 = vld [vmem:[#allocation4 + $0x2f8] sm:$0xff]  }
 0x45a   : > { %9369 = vmatpush3.bf16.msra.mxu1 %v10057_v22  ;;  %9380 = vmatprep.mubr.msk.bf16.mxu1 %vm10272_vm7, %v12218_v0 }
 0x45b   : > { %9370 = vmatprep.subr.bf16.mxu1 %v12218_v0 }
 0x45e   : > { %9371 = vmatpush3.bf16.msra.mxu1 %v10058_v34 }
 0x45f   : > { %9372 = vmatprep.subr.bf16.mxu1 %v12218_v0 }
 0x462   : > { %9373 = vmatpush3.bf16.msra.mxu1 %v10059_v50 }
 0x463   : > { %9374 = vmatprep.subr.bf16.mxu1 %v12218_v0 }
 0x466   : > { %9375 = vmatpush3.bf16.msra.mxu1 %v10060_v23 }
 0x467   : > { %9376 = vmatprep.subr.bf16.mxu1 %v12218_v0 }
 0x46a   : > { %9377 = vmatpush3.bf16.msra.mxu1 %v10061_v16  ;;  %v10079_v16 = vld [vmem:[#allocation4 + $0x300] sm:$0xff]  }
 0x46b   : > { %9378 = vmatprep.subr.bf16.mxu1 %v12218_v0 }
 0x46e   : > { %9379 = vmatpush3.bf16.msra.mxu1 %v10062_v13 }
 0x46f   : > { %9384 = vmatprep.subr.bf16.mxu1 %v12218_v0 }
 0x524   : > { %v9358_v47 = vpop.f32.mrb[0].mxu1 }
 0x525   : > { %v6399_v15 = vadd.f32 %v9358_v47, %v8415_v55  ;;  %v6352_v6 = vpop.f32.mrb[1].mxu1  ;;  %v10081_v47 = vld [vmem:[#allocation4 + $0x310] sm:$0xff]  }
 0x526   : > { %v6397_v28 = vadd.f32 %v8415_v55, %v6352_v6  ;;  %v9359_v44 = vpop.f32.mrb[2].mxu1  ;;  %v10083_v6 = vld [vmem:[#allocation4 + $0x320] sm:$0xff]  }
 0x527   : > { %v6407_v11 = vmax.f32 %v6399_v15, 0.0  ;;  %v6400_v7 = vadd.f32 %v9359_v44, %v8415_v55  ;;  %v6355_v59 = vpop.f32.mrb[3].mxu1  ;;  %v10082_v15 = vld [vmem:[#allocation4 + $0x318] sm:$0xff]   ;;  %v10085_v44 = vld [vmem:[#allocation4 + $0x330] sm:$0xff]  }
 0x528   : > { %v6405_v46 = vmax.f32 %v6397_v28, 0.0  ;;  %v6398_v25 = vadd.f32 %v8415_v55, %v6355_v59  ;;  %v10084_v28 = vld [vmem:[#allocation4 + $0x328] sm:$0xff]   ;;  %v10086_v59 = vld [vmem:[#allocation4 + $0x338] sm:$0xff]  }
 0x529   : > { %6415 = vst [vmem:[%s12238_s23 + $0x10] sm:$0xff] %v6407_v11  ;;  %6424 = vst [vmem:[#allocation3 + $0x50] sm:$0xff] %v6407_v11  ;;  %v6408_v8 = vmax.f32 %v6400_v7, 0.0 }
 0x52a   : > { %6413 = vst [vmem:[%s12238_s23] sm:$0xff] %v6405_v46  ;;  %6422 = vst [vmem:[#allocation3 + $0x20] sm:$0xff] %v6405_v46  ;;  %v6406_v4 = vmax.f32 %v6398_v25, 0.0 }
 0x52b   : > { %6416 = vst [vmem:[%s12238_s23 + $0x18] sm:$0xff] %v6408_v8  ;;  %6425 = vst [vmem:[#allocation3 + $0x68] sm:$0xff] %v6408_v8 }
 0x52c   : > { %6414 = vst [vmem:[%s12238_s23 + $0x8] sm:$0xff] %v6406_v4  ;;  %6423 = vst [vmem:[#allocation3 + $0x38] sm:$0xff] %v6406_v4  ;;  %v9362_v38 = vpop.f32.mrb[4].mxu1 }
 0x52d   : > { %v6403_v63 = vadd.f32 %v9362_v38, %v8415_v55  ;;  %v6368_v51 = vpop.f32.mrb[5].mxu1  ;;  %v10087_v38 = vld [vmem:[#allocation4 + $0x340] sm:$0xff]  }
 0x52e   : > { %v6401_v33 = vadd.f32 %v8415_v55, %v6368_v51  ;;  %v9363_v61 = vpop.f32.mrb[6].mxu1  ;;  %v10088_v51 = vld [vmem:[#allocation4 + $0x348] sm:$0xff]  }
 0x52f   : > { %v6411_v45 = vmax.f32 %v6403_v63, 0.0  ;;  %v6404_v49 = vadd.f32 %v9363_v61, %v8415_v55  ;;  %v6371_v60 = vpop.f32.mrb[7].mxu1  ;;  %v10090_v61 = vld [vmem:[#allocation4 + $0x358] sm:$0xff]  }
 0x530   : > { %v6409_v62 = vmax.f32 %v6401_v33, 0.0  ;;  %v6402_v35 = vadd.f32 %v8415_v55, %v6371_v60  ;;  %v10080_v55 = vld [vmem:[#allocation4 + $0x308] sm:$0xff]   ;;  %v6806_v25 = vld [vmem:[#allocation3 + $0x4f] ss:$2 sm:$0xf]  ;;  %v10089_v33 = vld [vmem:[#allocation4 + $0x350] sm:$0xff]  }
 0x531   : > { %6419 = vst [vmem:[%s12238_s23 + $0x30] sm:$0xff] %v6411_v45  ;;  %6428 = vst [vmem:[#allocation3 + $0xb0] sm:$0xff] %v6411_v45  ;;  %v6412_v14 = vmax.f32 %v6404_v49, 0.0  ;;  %v6804_v46 = vld [vmem:[#allocation3 + $0x1f] ss:$2 sm:$0xf] }
 0x532   : > { %6417 = vst [vmem:[%s12238_s23 + $0x20] sm:$0xff] %v6409_v62  ;;  %6426 = vst [vmem:[#allocation3 + $0x80] sm:$0xff] %v6409_v62  ;;  %v6410_v5 = vmax.f32 %v6402_v35, 0.0  ;;  %v6471_v41 = vld [vmem:[#allocation3 + $0x68] ss:$2 sm:$0xf]  ;;  %v6815_v4 = vcombine.low %v6804_v46, %v6806_v25 }
 0x533   : > { %6420 = vst [vmem:[%s12238_s23 + $0x38] sm:$0xff] %v6412_v14  ;;  %6429 = vst [vmem:[#allocation3 + $0xc8] sm:$0xff] %v6412_v14  ;;  %v6469_v31 = vld [vmem:[#allocation3 + $0x38] ss:$2 sm:$0xf]  ;;  %v10091_v45 = vld [vmem:[#allocation4 + $0x360] sm:$0xff]  }
 0x534   : > { %6418 = vst [vmem:[%s12238_s23 + $0x28] sm:$0xff] %v6410_v5  ;;  %6427 = vst [vmem:[#allocation3 + $0x98] sm:$0xff] %v6410_v5  ;;  %v6478_v53 = vcombine.low %v6467_v2, %v6469_v31  ;;  %v6435_v3 = vld [vmem:[#allocation3 + $0x37] ss:$2 sm:$0xf]  ;;  %v10093_v60 = vld [vmem:[#allocation4 + $0x370] sm:$0xff]  }
 0x535   : > { %v6437_v1 = vld [vmem:[#allocation3 + $0x67] ss:$2 sm:$0xf]  ;;  %v6444_v26 = vcombine.low %v6433_v10, %v6435_v3  ;;  %v6681_v22 = vld [vmem:[#allocation3 + $0x39] ss:$2 sm:$0xf] }
 0x536   : > { %v6683_v34 = vld [vmem:[#allocation3 + $0x69] ss:$2 sm:$0xf]  ;;  %v6690_v23 = vcombine.low %v6679_v12, %v6681_v22  ;;  %v10092_v49 = vld [vmem:[#allocation4 + $0x368] sm:$0xff]  }
 0x537   : > { %v6929_v14 = vld [vmem:[#allocation3 + $0x20] ss:$2 sm:$0xf]  ;;  %v10094_v5 = vld [vmem:[#allocation4 + $0x378] sm:$0xff]  }
 0x538   : > { %v6810_v7 = vld [vmem:[#allocation3 + $0xaf] ss:$2 sm:$0xf]  ;;  %v6935_v35 = vld [vmem:[#allocation3 + $0xb0] ss:$2 sm:$0xf] }
 0x539   : > { %v6808_v11 = vld [vmem:[#allocation3 + $0x7f] ss:$2 sm:$0xf]  ;;  %v6933_v62 = vld [vmem:[#allocation3 + $0x80] ss:$2 sm:$0xf] }
 0x53a   : > { %v6816_v8 = vcombine.low %v6808_v11, %v6810_v7  ;;  %v6931_v2 = vld [vmem:[#allocation3 + $0x50] ss:$2 sm:$0xf]  ;;  %v6941_v31 = vcombine.low %v6933_v62, %v6935_v35  ;;  %v7305_v46 = vld [vmem:[#allocation3 + $0x38] ss:$2 sm:$0xf] }
 0x53b   : > { %v6473_v21 = vld [vmem:[#allocation3 + $0x98] ss:$2 sm:$0xf]  ;;  %v6439_v29 = vld [vmem:[#allocation3 + $0x97] ss:$2 sm:$0xf] }
 0x53c   : > { %v6479_v42 = vcombine.low %v6471_v41, %v6473_v21  ;;  %v6445_v27 = vcombine.low %v6437_v1, %v6439_v29  ;;  %v6685_v19 = vld [vmem:[#allocation3 + $0x99] ss:$2 sm:$0xf]  ;;  %v6819_v63 = vpack.c.bf16 %v6816_v8, %v6815_v4  ;;  %v6940_v41 = vcombine.low %v6929_v14, %v6931_v2  ;;  %v10095_v21 = vld [vmem:[#allocation4 + $0x380] sm:$0xff]   ;;  %v10102_v29 = vld [vmem:[#allocation4 + $0x3b8] sm:$0xff]  }
 0x53d   : > { %v6691_v50 = vcombine.low %v6683_v34, %v6685_v19  ;;  %v10103_v1 = vld [vmem:[#allocation4 + $0x3c0] sm:$0xff]   ;;  %v10110_v19 = vld [vmem:[#allocation4 + $0x3f8] sm:$0xff]   ;;  %v7309_v7 = vld [vmem:[#allocation3 + $0x98] ss:$2 sm:$0xf] }
 0x53e   : > { %v6482_v37 = vpack.c.bf16 %v6479_v42, %v6478_v53  ;;  %v6448_v36 = vpack.c.bf16 %v6445_v27, %v6444_v26  ;;  %v6944_v53 = vpack.c.bf16 %v6941_v31, %v6940_v41  ;;  %v10096_v42 = vld [vmem:[#allocation4 + $0x388] sm:$0xff]   ;;  %v10111_v34 = vld [vmem:[#allocation4 + $0x400] sm:$0xff]   ;;  %v10118_v25 = vld [vmem:[#allocation4 + $0x438] sm:$0xff]  }
 0x53f   : > { %v6694_v13 = vpack.c.bf16 %v6691_v50, %v6690_v23  ;;  %v10104_v26 = vld [vmem:[#allocation4 + $0x3c8] sm:$0xff]   ;;  %v7307_v8 = vld [vmem:[#allocation3 + $0x68] ss:$2 sm:$0xf]  ;;  %v10125_v2 = vld [vmem:[#allocation4 + $0x470] sm:$0xff]  }
 0x540   : > { %9381 = vmatmul.mubr.bf16.vlgmr.msra.gmra.mrb[8].mxu1 %v6482_v37  ;;  %v10098_v37 = vld [vmem:[#allocation4 + $0x398] sm:$0xff]   ;;  %v10112_v23 = vld [vmem:[#allocation4 + $0x408] sm:$0xff]  }
 0x541   : > { %9385 = vmatpush3.bf16.msra.mxu1 %v10063_v39  ;;  %9400 = vmatprep.mubr.msk.bf16.mxu1 %vm10272_vm7, %v12218_v0  ;;  %v10097_v39 = vld [vmem:[#allocation4 + $0x390] sm:$0xff]  }
 0x542   : > { %9386 = vmatprep.subr.bf16.mxu1 %v12218_v0 }
 0x545   : > { %9387 = vmatpush3.bf16.msra.mxu1 %v10064_v58  ;;  %v10099_v58 = vld [vmem:[#allocation4 + $0x3a0] sm:$0xff]  }
 0x546   : > { %9388 = vmatprep.subr.bf16.mxu1 %v12218_v0 }
 0x549   : > { %9389 = vmatpush3.bf16.msra.mxu1 %v10065_v40  ;;  %v10100_v40 = vld [vmem:[#allocation4 + $0x3a8] sm:$0xff]  }
 0x54a   : > { %9390 = vmatprep.subr.bf16.mxu1 %v12218_v0 }
 0x54d   : > { %9391 = vmatpush3.bf16.msra.mxu1 %v10066_v20  ;;  %v10101_v20 = vld [vmem:[#allocation4 + $0x3b0] sm:$0xff]  }
 0x54e   : > { %9392 = vmatprep.subr.bf16.mxu1 %v12218_v0 }
 0x551   : > { %9393 = vmatpush3.bf16.msra.mxu1 %v10067_v56  ;;  %v7058_v56 = vld [vmem:[#allocation3 + $0x81] ss:$2 sm:$0xf] }
 0x552   : > { %9394 = vmatprep.subr.bf16.mxu1 %v12218_v0 }
 0x555   : > { %9395 = vmatpush3.bf16.msra.mxu1 %v10068_v43  ;;  %v7060_v43 = vld [vmem:[#allocation3 + $0xb1] ss:$2 sm:$0xf] }
 0x556   : > { %9396 = vmatprep.subr.bf16.mxu1 %v12218_v0  ;;  %v7066_v10 = vcombine.low %v7058_v56, %v7060_v43 }
 0x559   : > { %9397 = vmatpush3.bf16.msra.mxu1 %v10069_v18  ;;  %v7054_v18 = vld [vmem:[#allocation3 + $0x21] ss:$2 sm:$0xf] }
 0x55a   : > { %9398 = vmatprep.subr.bf16.mxu1 %v12218_v0 }
 0x55d   : > { %9399 = vmatpush3.bf16.msra.mxu1 %v10070_v48  ;;  %v7056_v48 = vld [vmem:[#allocation3 + $0x51] ss:$2 sm:$0xf] }
 0x55e   : > { %9404 = vmatprep.subr.bf16.mxu1 %v12218_v0  ;;  %v7065_v3 = vcombine.low %v7054_v18, %v7056_v48 }
 0x560   : > { %9401 = vmatmul.mubr.bf16.vlgmr.msra.gmra.mrb[12].mxu1 %v6448_v36  ;;  %v7069_v27 = vpack.c.bf16 %v7066_v10, %v7065_v3  ;;  %v10106_v36 = vld [vmem:[#allocation4 + $0x3d8] sm:$0xff]  }
 0x561   : > { %9405 = vmatpush3.bf16.msra.mxu1 %v10071_v17  ;;  %9420 = vmatprep.mubr.msk.bf16.mxu1 %vm10272_vm7, %v12218_v0  ;;  %v10105_v17 = vld [vmem:[#allocation4 + $0x3d0] sm:$0xff]  }
 0x562   : > { %9406 = vmatprep.subr.bf16.mxu1 %v12218_v0 }
 0x565   : > { %9407 = vmatpush3.bf16.msra.mxu1 %v10072_v9  ;;  %v10107_v9 = vld [vmem:[#allocation4 + $0x3e0] sm:$0xff]  }
 0x566   : > { %9408 = vmatprep.subr.bf16.mxu1 %v12218_v0 }
 0x569   : > { %9409 = vmatpush3.bf16.msra.mxu1 %v10073_v24  ;;  %v10108_v24 = vld [vmem:[#allocation4 + $0x3e8] sm:$0xff]  }
 0x56a   : > { %9410 = vmatprep.subr.bf16.mxu1 %v12218_v0 }
 0x56d   : > { %9411 = vmatpush3.bf16.msra.mxu1 %v10074_v54  ;;  %v10109_v54 = vld [vmem:[#allocation4 + $0x3f0] sm:$0xff]  }
 0x56e   : > { %9412 = vmatprep.subr.bf16.mxu1 %v12218_v0 }
 0x571   : > { %9413 = vmatpush3.bf16.msra.mxu1 %v10075_v57  ;;  %v7184_v57 = vld [vmem:[#allocation3 + $0x97] ss:$2 sm:$0xf] }
 0x572   : > { %9414 = vmatprep.subr.bf16.mxu1 %v12218_v0 }
 0x575   : > { %9415 = vmatpush3.bf16.msra.mxu1 %v10076_v52  ;;  %v7186_v52 = vld [vmem:[#allocation3 + $0xc7] ss:$2 sm:$0xf] }
 0x576   : > { %9416 = vmatprep.subr.bf16.mxu1 %v12218_v0  ;;  %v7192_v12 = vcombine.low %v7184_v57, %v7186_v52 }
 0x579   : > { %9417 = vmatpush3.bf16.msra.mxu1 %v10077_v30  ;;  %v7180_v30 = vld [vmem:[#allocation3 + $0x37] ss:$2 sm:$0xf] }
 0x57a   : > { %9418 = vmatprep.subr.bf16.mxu1 %v12218_v0 }
 0x57d   : > { %9419 = vmatpush3.bf16.msra.mxu1 %v10078_v32  ;;  %v7182_v32 = vld [vmem:[#allocation3 + $0x67] ss:$2 sm:$0xf] }
 0x57e   : > { %9424 = vmatprep.subr.bf16.mxu1 %v12218_v0  ;;  %v7191_v22 = vcombine.low %v7180_v30, %v7182_v32 }
 0x580   : > { %9421 = vmatmul.mubr.bf16.vlgmr.msra.gmra.mrb[16].mxu1 %v6694_v13  ;;  %v7195_v50 = vpack.c.bf16 %v7192_v12, %v7191_v22  ;;  %v10114_v13 = vld [vmem:[#allocation4 + $0x418] sm:$0xff]  }
 0x581   : > { %9425 = vmatpush3.bf16.msra.mxu1 %v10079_v16  ;;  %9440 = vmatprep.mubr.msk.bf16.mxu1 %vm10272_vm7, %v12218_v0  ;;  %v10113_v16 = vld [vmem:[#allocation4 + $0x410] sm:$0xff]  }
 0x582   : > { %9426 = vmatprep.subr.bf16.mxu1 %v12218_v0 }
 0x585   : > { %9427 = vmatpush3.bf16.msra.mxu1 %v10080_v55  ;;  %v10115_v55 = vld [vmem:[#allocation4 + $0x420] sm:$0xff]  }
 0x586   : > { %9428 = vmatprep.subr.bf16.mxu1 %v12218_v0 }
 0x589   : > { %9429 = vmatpush3.bf16.msra.mxu1 %v10081_v47  ;;  %v10116_v47 = vld [vmem:[#allocation4 + $0x428] sm:$0xff]  }
 0x58a   : > { %9430 = vmatprep.subr.bf16.mxu1 %v12218_v0 }
 0x58d   : > { %9431 = vmatpush3.bf16.msra.mxu1 %v10082_v15 }
 0x58e   : > { %9432 = vmatprep.subr.bf16.mxu1 %v12218_v0 }
 0x591   : > { %9433 = vmatpush3.bf16.msra.mxu1 %v10083_v6 }
 0x592   : > { %9434 = vmatprep.subr.bf16.mxu1 %v12218_v0 }
 0x595   : > { %9435 = vmatpush3.bf16.msra.mxu1 %v10084_v28 }
 0x596   : > { %9436 = vmatprep.subr.bf16.mxu1 %v12218_v0 }
 0x599   : > { %9437 = vmatpush3.bf16.msra.mxu1 %v10085_v44  ;;  %v10117_v44 = vld [vmem:[#allocation4 + $0x430] sm:$0xff]  }
 0x59a   : > { %9438 = vmatprep.subr.bf16.mxu1 %v12218_v0 }
 0x59d   : > { %9439 = vmatpush3.bf16.msra.mxu1 %v10086_v59  ;;  %v7311_v59 = vld [vmem:[#allocation3 + $0xc8] ss:$2 sm:$0xf] }
 0x59e   : > { %9444 = vmatprep.subr.bf16.mxu1 %v12218_v0  ;;  %v7317_v4 = vcombine.low %v7309_v7, %v7311_v59 }
 0x5a0   : > { %9441 = vmatmul.mubr.bf16.vlgmr.msra.gmra.mrb[20].mxu1 %v6819_v63  ;;  %v10119_v63 = vld [vmem:[#allocation4 + $0x440] sm:$0xff]  }
 0x5a1   : > { %9445 = vmatpush3.bf16.msra.mxu1 %v10087_v38  ;;  %9460 = vmatprep.mubr.msk.bf16.mxu1 %vm10272_vm7, %v12218_v0  ;;  %v7316_v38 = vcombine.low %v7305_v46, %v7307_v8 }
 0x5a2   : > { %9446 = vmatprep.subr.bf16.mxu1 %v12218_v0 }
 0x5a5   : > { %9447 = vmatpush3.bf16.msra.mxu1 %v10088_v51  ;;  %v7320_v51 = vpack.c.bf16 %v7317_v4, %v7316_v38 }
 0x5a6   : > { %9448 = vmatprep.subr.bf16.mxu1 %v12218_v0 }
 0x5a9   : > { %9449 = vmatpush3.bf16.msra.mxu1 %v10089_v33  ;;  %v10120_v33 = vld [vmem:[#allocation4 + $0x448] sm:$0xff]  }
 0x5aa   : > { %9450 = vmatprep.subr.bf16.mxu1 %v12218_v0 }
 0x5ad   : > { %9451 = vmatpush3.bf16.msra.mxu1 %v10090_v61  ;;  %v10121_v61 = vld [vmem:[#allocation4 + $0x450] sm:$0xff]  }
 0x5ae   : > { %9452 = vmatprep.subr.bf16.mxu1 %v12218_v0 }
 0x5b1   : > { %9453 = vmatpush3.bf16.msra.mxu1 %v10091_v45  ;;  %v10122_v45 = vld [vmem:[#allocation4 + $0x458] sm:$0xff]  }
 0x5b2   : > { %9454 = vmatprep.subr.bf16.mxu1 %v12218_v0 }
 0x5b5   : > { %9455 = vmatpush3.bf16.msra.mxu1 %v10092_v49  ;;  %v10123_v49 = vld [vmem:[#allocation4 + $0x460] sm:$0xff]  }
 0x5b6   : > { %9456 = vmatprep.subr.bf16.mxu1 %v12218_v0 }
 0x5b9   : > { %9457 = vmatpush3.bf16.msra.mxu1 %v10093_v60  ;;  %v10124_v60 = vld [vmem:[#allocation4 + $0x468] sm:$0xff]  }
 0x5ba   : > { %9458 = vmatprep.subr.bf16.mxu1 %v12218_v0 }
 0x5bd   : > { %9459 = vmatpush3.bf16.msra.mxu1 %v10094_v5 }
 0x5be   : > { %9464 = vmatprep.subr.bf16.mxu1 %v12218_v0 }
 0x5c0   : > { %9461 = vmatmul.mubr.bf16.vlgmr.msra.gmra.mrb[24].mxu1 %v6944_v53  ;;  %v7436_v53 = vld [vmem:[#allocation3 + $0xc9] ss:$2 sm:$0xf] }
 0x5c1   : > { %9465 = vmatpush3.bf16.msra.mxu1 %v10095_v21  ;;  %9480 = vmatprep.mubr.msk.bf16.mxu1 %vm10272_vm7, %v12218_v0  ;;  %v7434_v21 = vld [vmem:[#allocation3 + $0x99] ss:$2 sm:$0xf] }
 0x5c2   : > { %9466 = vmatprep.subr.bf16.mxu1 %v12218_v0 }
 0x5c5   : > { %9467 = vmatpush3.bf16.msra.mxu1 %v10096_v42  ;;  %v7430_v42 = vld [vmem:[#allocation3 + $0x39] ss:$2 sm:$0xf] }
 0x5c6   : > { %9468 = vmatprep.subr.bf16.mxu1 %v12218_v0 }
 0x5c9   : > { %9469 = vmatpush3.bf16.msra.mxu1 %v10097_v39  ;;  %v10126_v39 = vld [vmem:[#allocation4 + $0x478] sm:$0xff]  }
 0x5ca   : > { %9470 = vmatprep.subr.bf16.mxu1 %v12218_v0 }
 0x5cd   : > { %9471 = vmatpush3.bf16.msra.mxu1 %v10098_v37  ;;  %v7432_v37 = vld [vmem:[#allocation3 + $0x69] ss:$2 sm:$0xf] }
 0x5ce   : > { %9472 = vmatprep.subr.bf16.mxu1 %v12218_v0 }
 0x5d1   : > { %9473 = vmatpush3.bf16.msra.mxu1 %v10099_v58  ;;  %v7442_v58 = vcombine.low %v7434_v21, %v7436_v53 }
 0x5d2   : > { %9474 = vmatprep.subr.bf16.mxu1 %v12218_v0 }
 0x5d5   : > { %9475 = vmatpush3.bf16.msra.mxu1 %v10100_v40  ;;  %v7441_v40 = vcombine.low %v7430_v42, %v7432_v37 }
 0x5d6   : > { %9476 = vmatprep.subr.bf16.mxu1 %v12218_v0 }
 0x5d9   : > { %9477 = vmatpush3.bf16.msra.mxu1 %v10101_v20  ;;  %v7445_v20 = vpack.c.bf16 %v7442_v58, %v7441_v40 }
 0x5da   : > { %9478 = vmatprep.subr.bf16.mxu1 %v12218_v0 }
 0x5dd   : > { %9479 = vmatpush3.bf16.msra.mxu1 %v10102_v29 }
 0x5de   : > { %9484 = vmatprep.subr.bf16.mxu1 %v12218_v0 }
 0x5e0   : > { %9481 = vmatmul.mubr.bf16.vlgmr.msra.gmra.mrb[28].mxu1 %v7069_v27 }
 0x5e1   : > { %9485 = vmatpush3.bf16.msra.mxu1 %v10103_v1  ;;  %9500 = vmatprep.mubr.msk.bf16.mxu1 %vm10272_vm7, %v12218_v0 }
 0x5e2   : > { %9486 = vmatprep.subr.bf16.mxu1 %v12218_v0 }
 0x5e5   : > { %9487 = vmatpush3.bf16.msra.mxu1 %v10104_v26 }
 0x5e6   : > { %9488 = vmatprep.subr.bf16.mxu1 %v12218_v0 }
 0x5e9   : > { %9489 = vmatpush3.bf16.msra.mxu1 %v10105_v17 }
 0x5ea   : > { %9490 = vmatprep.subr.bf16.mxu1 %v12218_v0 }
 0x5ed   : > { %9491 = vmatpush3.bf16.msra.mxu1 %v10106_v36 }
 0x5ee   : > { %9492 = vmatprep.subr.bf16.mxu1 %v12218_v0 }
 0x5f1   : > { %9493 = vmatpush3.bf16.msra.mxu1 %v10107_v9 }
 0x5f2   : > { %9494 = vmatprep.subr.bf16.mxu1 %v12218_v0 }
 0x5f5   : > { %9495 = vmatpush3.bf16.msra.mxu1 %v10108_v24 }
 0x5f6   : > { %9496 = vmatprep.subr.bf16.mxu1 %v12218_v0 }
 0x5f9   : > { %9497 = vmatpush3.bf16.msra.mxu1 %v10109_v54 }
 0x5fa   : > { %9498 = vmatprep.subr.bf16.mxu1 %v12218_v0 }
 0x5fd   : > { %9499 = vmatpush3.bf16.msra.mxu1 %v10110_v19 }
 0x5fe   : > { %9504 = vmatprep.subr.bf16.mxu1 %v12218_v0 }
 0x600   : > { %9501 = vmatmul.mubr.bf16.vlgmr.msra.gmra.mrb[32].mxu1 %v7195_v50 }
 0x601   : > { %9505 = vmatpush3.bf16.msra.mxu1 %v10111_v34  ;;  %9520 = vmatprep.mubr.msk.bf16.mxu1 %vm10272_vm7, %v12218_v0 }
 0x602   : > { %9506 = vmatprep.subr.bf16.mxu1 %v12218_v0 }
 0x605   : > { %9507 = vmatpush3.bf16.msra.mxu1 %v10112_v23 }
 0x606   : > { %9508 = vmatprep.subr.bf16.mxu1 %v12218_v0 }
 0x609   : > { %9509 = vmatpush3.bf16.msra.mxu1 %v10113_v16 }
 0x60a   : > { %9510 = vmatprep.subr.bf16.mxu1 %v12218_v0 }
 0x60d   : > { %9511 = vmatpush3.bf16.msra.mxu1 %v10114_v13 }
 0x60e   : > { %9512 = vmatprep.subr.bf16.mxu1 %v12218_v0 }
 0x611   : > { %9513 = vmatpush3.bf16.msra.mxu1 %v10115_v55 }
 0x612   : > { %9514 = vmatprep.subr.bf16.mxu1 %v12218_v0 }
 0x613   : > { %v6582_v15 = vpop.f32.mrb[8].mxu1 }
 0x614   : > { %v9382_v6 = vpop.f32.mrb[9].mxu1 }
 0x615   : > { %9515 = vmatpush3.bf16.msra.mxu1 %v10116_v47  ;;  %v6585_v28 = vpop.f32.mrb[10].mxu1 }
 0x616   : > { %v9383_v11 = vpop.f32.mrb[11].mxu1  ;;  %9516 = vmatprep.subr.bf16.mxu1 %v12218_v0 }
 0x619   : > { %9517 = vmatpush3.bf16.msra.mxu1 %v10117_v44 }
 0x61a   : > { %9518 = vmatprep.subr.bf16.mxu1 %v12218_v0 }
 0x61d   : > { %9519 = vmatpush3.bf16.msra.mxu1 %v10118_v25 }
 0x61e   : > { %9524 = vmatprep.subr.bf16.mxu1 %v12218_v0 }
 0x620   : > { %9521 = vmatmul.mubr.bf16.vlgmr.msra.gmra.mrb[36].mxu1 %v7320_v51 }
 0x621   : > { %9525 = vmatpush3.bf16.msra.mxu1 %v10119_v63  ;;  %9540 = vmatprep.mubr.msk.bf16.mxu1 %vm10272_vm7, %v12218_v0 }
 0x622   : > { %9526 = vmatprep.subr.bf16.mxu1 %v12218_v0 }
 0x625   : > { %9527 = vmatpush3.bf16.msra.mxu1 %v10120_v33 }
 0x626   : > { %9528 = vmatprep.subr.bf16.mxu1 %v12218_v0 }
 0x629   : > { %9529 = vmatpush3.bf16.msra.mxu1 %v10121_v61 }
 0x62a   : > { %9530 = vmatprep.subr.bf16.mxu1 %v12218_v0 }
 0x62d   : > { %9531 = vmatpush3.bf16.msra.mxu1 %v10122_v45 }
 0x62e   : > { %9532 = vmatprep.subr.bf16.mxu1 %v12218_v0 }
 0x631   : > { %9533 = vmatpush3.bf16.msra.mxu1 %v10123_v49 }
 0x632   : > { %9534 = vmatprep.subr.bf16.mxu1 %v12218_v0 }
 0x633   : > { %v6671_v62 = vpop.f32.mrb[12].mxu1 }
 0x634   : > { %v6672_v35 = vadd.f32 %v6671_v62, %v6582_v15  ;;  %v9402_v14 = vpop.f32.mrb[13].mxu1 }
 0x635   : > { %v6674_v5 = vpop.f32.mrb[14].mxu1  ;;  %9535 = vmatpush3.bf16.msra.mxu1 %v10124_v60 }
 0x636   : > { %v6675_v31 = vadd.f32 %v6674_v5, %v6585_v28  ;;  %v9403_v41 = vpop.f32.mrb[15].mxu1  ;;  %9536 = vmatprep.subr.bf16.mxu1 %v12218_v0 }
 0x639   : > { %9537 = vmatpush3.bf16.msra.mxu1 %v10125_v2 }
 0x63a   : > { %9538 = vmatprep.subr.bf16.mxu1 %v12218_v0 }
 0x63d   : > { %9539 = vmatpush3.bf16.msra.mxu1 %v10126_v39 }
 0x640   : > { %9541 = vmatmul.mubr.bf16.vlgmr.msra.gmra.mrb[40].mxu1 %v7445_v20 }
 0x653   : > { %v6794_v56 = vpop.f32.mrb[16].mxu1 }
 0x654   : > { %v6801_v43 = vadd.f32 %v6794_v56, %v6672_v35  ;;  %v9422_v18 = vpop.f32.mrb[17].mxu1 }
 0x655   : > { %v6797_v29 = vpop.f32.mrb[18].mxu1 }
 0x656   : > { %v6802_v48 = vadd.f32 %v6797_v29, %v6675_v31  ;;  %v9423_v10 = vpop.f32.mrb[19].mxu1 }
 0x673   : > { %v6919_v3 = vpop.f32.mrb[20].mxu1 }
 0x674   : > { %v6926_v1 = vadd.f32 %v6919_v3, %v6801_v43  ;;  %v9442_v27 = vpop.f32.mrb[21].mxu1 }
 0x675   : > { %v6922_v26 = vpop.f32.mrb[22].mxu1 }
 0x676   : > { %v6927_v0 = vadd.f32 %v6922_v26, %v6802_v48  ;;  %v9443_v17 = vpop.f32.mrb[23].mxu1 }
 0x693   : > { %v7044_v36 = vpop.f32.mrb[24].mxu1 }
 0x694   : > { %v7051_v9 = vadd.f32 %v7044_v36, %v6926_v1  ;;  %v9462_v24 = vpop.f32.mrb[25].mxu1 }
 0x695   : > { %v7047_v54 = vpop.f32.mrb[26].mxu1 }
 0x696   : > { %v7052_v57 = vadd.f32 %v7047_v54, %v6927_v0  ;;  %v9463_v52 = vpop.f32.mrb[27].mxu1 }
 0x697   : > { %10181 = shalt.err (!%p10178_p7)
}
 0x698   : > { %s10182_s13 = scalar_lea.hbm %s12334_s7, 1024  ;;  %s10186_s17 = scalar_lea.hbm %s12423_s4, 2048 }
 0x699   : > { %p10183_p8 = scmp.ne.s32.totalorder %s12334_s7, %s10182_s13  ;;  %p10187_p1 = scmp.lt.u32.totalorder %s12334_s7, %s12423_s4 }
 0x69a   : > { %p10188_p0 = scmp.lt.u32.totalorder %s10186_s17, %s10182_s13  ;;  %p10190_p6 = scmp.lt.u32.totalorder %s10182_s13, %s12334_s7 }
 0x69b   : > { %p10184_p11 = pnand %p10183_p8, %p12524_p9 }
 0x69c   : > { %p10189_p5 = por %p10188_p0, %p10187_p1 }
 0x69d   : > { %p10185_p13 = pneg %p10184_p11 }
 0x69e   : > { %p10191_p10 = por %p10190_p6, %p10189_p5 }
 0x6a0   : > { %p10192_p12 = pnand %p10191_p10, %p10185_p13 }
 0x6a2   : > { %10195 = shalt.err (!%p10192_p12)
}
 0x6a3   : > { %s10274_s30 = smov 128   ;;  %s10275_s6 = smov 8   ;;  %v8489_v59 = vld [vmem:[%s12422_s3 + $0x2] ss:$0 sm:$0xff] }
 0x6a4   : > { %9869 = dma.vmem_to_hbm [thread:$0]  (%p12524_p9), %s12328_s25, 1024, %s12334_s7, %s7567_s8, %s10274_s30, %s10274_s30, %s10275_s6  }
 0x6a5   : > { %s7786_s25 = sshll.u32 %s12232_s14, 4  ;;  %s8499_s12 = sshll.u32 %s10328_s22, 8 }
 0x6a6   : > { %s243_s10 = scalar_lea.vmem [#allocation8], %s7786_s25  ;;  %s12373_s15 = scalar_lea.hbm %s12424_s5, %s8499_s12 }
 0x6a7   : > { %s7601_s11 = sshll.u32 %s243_s10, 4  ;;  %s7572_s16 = scalar_lea.sflag [#allocation9], %s12232_s14  ;;  %s12368_s11 = int_to_ptr.vmem [resolvable:$true] %s7601_s11 }
 0x6a8   : > { %s10196_s17 = scalar_lea.vmem %s12368_s11, 256  ;;  %s10276_s22 = smov [#allocation8]  }
 0x6a9   : > { %p10197_p2 = scmp.ne.s32.totalorder %s12368_s11, %s10196_s17  ;;  %s10200_s23 = sshll.u32 %s10276_s22, 4  ;;  %s10201_s23 = int_to_ptr.vmem [resolvable:$false] %s10200_s23 }
 0x6aa   : > { %s10202_s26 = scalar_lea.vmem %s10201_s23, 512  ;;  %p10203_p7 = scmp.lt.s32.totalorder %s12368_s11, %s10201_s23 }
 0x6ab   : > { %p10198_p3 = pnand %p10197_p2, %p12524_p9  ;;  %p10204_p8 = scmp.lt.s32.totalorder %s10202_s26, %s10196_s17 }
 0x6ad   : > { %p10199_p4 = pneg %p10198_p3  ;;  %p10205_p11 = por %p10204_p8, %p10203_p7 }
 0x6af   : > { %p10206_p13 = pnand %p10205_p11, %p10199_p4 }
 0x6b3   : > { %v7169_v30 = vpop.f32.mrb[28].mxu1 }
 0x6b4   : > { %v7176_v19 = vadd.f32 %v7169_v30, %v7051_v9  ;;  %v9482_v32 = vpop.f32.mrb[29].mxu1 }
 0x6b5   : > { %v7172_v12 = vpop.f32.mrb[30].mxu1 }
 0x6b6   : > { %v7177_v22 = vadd.f32 %v7172_v12, %v7052_v57  ;;  %v9483_v34 = vpop.f32.mrb[31].mxu1 }
 0x6d3   : > { %v7295_v50 = vpop.f32.mrb[32].mxu1 }
 0x6d4   : > { %v7302_v23 = vadd.f32 %v7295_v50, %v7176_v19  ;;  %v9502_v16 = vpop.f32.mrb[33].mxu1 }
 0x6d5   : > { %v7298_v13 = vpop.f32.mrb[34].mxu1 }
 0x6d6   : > { %v7303_v55 = vadd.f32 %v7298_v13, %v7177_v22  ;;  %v9503_v47 = vpop.f32.mrb[35].mxu1 }
 0x6f3   : > { %v7420_v15 = vpop.f32.mrb[36].mxu1 }
 0x6f4   : > { %v7427_v6 = vadd.f32 %v7420_v15, %v7302_v23  ;;  %v9522_v28 = vpop.f32.mrb[37].mxu1 }
 0x6f5   : > { %v7423_v44 = vpop.f32.mrb[38].mxu1 }
 0x6f6   : > { %v7428_v11 = vadd.f32 %v7423_v44, %v7303_v55  ;;  %v9523_v7 = vpop.f32.mrb[39].mxu1 }
 0x713   : > { %v7545_v46 = vpop.f32.mrb[40].mxu1 }
 0x714   : > { %v7552_v25 = vadd.f32 %v7545_v46, %v7427_v6  ;;  %v9542_v8 = vpop.f32.mrb[41].mxu1 }
 0x715   : > { %v7548_v4 = vpop.f32.mrb[42].mxu1 }
 0x716   : > { %v7560_v38 = vadd.f32 %v8489_v59, %v7552_v25  ;;  %v7553_v63 = vadd.f32 %v7548_v4, %v7428_v11  ;;  %v9543_v51 = vpop.f32.mrb[43].mxu1 }
 0x718   : > { %v7562_v33 = vmax.f32 %v7560_v38, 0.0  ;;  %v7561_v61 = vadd.f32 %v8489_v59, %v7553_v63 }
 0x71a   : > { %7564 = vst [vmem:[%s243_s10] sm:$0xff] %v7562_v33  ;;  %v7563_v45 = vmax.f32 %v7561_v61, 0.0 }
 0x71c   : > { %7565 = vst [vmem:[%s243_s10 + $0x8] sm:$0xff] %v7563_v45 }
 0x71d   : > { %10209 = shalt.err (!%p10206_p13)
}
 0x71e   : > { %s10210_s25 = scalar_lea.hbm %s12373_s15, 256  ;;  %s10214_s10 = scalar_lea.hbm %s12424_s5, 512 }
 0x71f   : > { %p10211_p1 = scmp.ne.s32.totalorder %s12373_s15, %s10210_s25  ;;  %p10215_p6 = scmp.lt.u32.totalorder %s12373_s15, %s12424_s5 }
 0x720   : > { %p10216_p10 = scmp.lt.u32.totalorder %s10214_s10, %s10210_s25  ;;  %p10218_p2 = scmp.lt.u32.totalorder %s10210_s25, %s12373_s15 }
 0x721   : > { %p10212_p0 = pnand %p10211_p1, %p12524_p9 }
 0x722   : > { %p10217_p12 = por %p10216_p10, %p10215_p6 }
 0x723   : > { %p10213_p5 = pneg %p10212_p0 }
 0x724   : > { %p10219_p3 = por %p10218_p2, %p10217_p12 }
 0x726   : > { %p10220_p4 = pnand %p10219_p3, %p10213_p5 }
 0x728   : > { %10223 = shalt.err (!%p10220_p4)
}
 0x729   : > { %9870 = dma.vmem_to_hbm [thread:$0]  (%p12524_p9), %s12368_s11, 256, %s12373_s15, %s7572_s16, %s10274_s30, %s10274_s30, %s10275_s6  }
 0x72a PF: > { %p9886_p7 = scmp.ge.s32.totalorder %s10266_s21, 2  ;;  %s7616_s13 = sand.u32 1, %s10254_s18  }
 0x72b   : > { %p12525_p8 = scmp.ne.s32.totalorder %s12445_s29, 0  ;;  %s7617_s17 = scalar_lea.sflag [#allocation6], %s7616_s13 }
 0x72d   : > { %p9878_p11 = pnand %p9886_p7, %p12525_p8 }
 0x72f   : > { %10245 = dma.done.wait (!%p9878_p11), %s7617_s17, 1024  }
 0x730   : > { %10247 = vsyncadd (!%p9878_p11), %s7617_s17, 4294966272  ;;  %s7626_s28 = scalar_lea.sflag [#allocation9], %s7616_s13 }
 0x731   : > { %10249 = dma.done.wait (!%p9878_p11), %s7626_s28, 256  }
 0x732   : > { %10251 = vsyncadd (!%p9878_p11), %s7626_s28, 4294967040  ;;  %p20_p9 = scmp.ge.s32.totalorder %s10332_s24, 4   ;;  %s12526_s18 = smov %s10258_s19 }
 0x733   : > { %s12527_s19 = smov %s10262_s20  ;;  %s12528_s20 = smov %s10343_s27 }
 0x734   : > { %s12529_s21 = smov %s10332_s24  ;;  %22 = sbr.rel (!%p20_p9) target bundleno = 6 (0x6), region = 234 }
 0x73b   :  { %7631 = vsyncpa [#allocation5], 1 }
 0x73c   :  { %7633 = vsyncpa [#allocation5 + $0x1], 1 }
 0x73d   :  { %7634 = vsyncpa [#allocation6], 1 }
 0x73e   :  { %7636 = vsyncpa [#allocation6 + $0x1], 1 }
 0x73f   :  { %7637 = vsyncpa [#allocation9], 1 }
 0x740   :  { %7639 = vsyncpa [#allocation9 + $0x1], 1 }

</bundles_post_ra>
